<compile_context>
chip_gen: v6e
topology: v6e:2x2x1
jax: 0.10.0
libtpu: 0.0.40
codegen_flags: <defaults>
</compile_context>

<pallas_src>
import functools

import jax
import jax.numpy as jnp
from jax.experimental import pallas as pl
from jax.experimental.pallas import tpu as pltpu


def _round_up(x, m):
    return (x + m - 1) // m * m


# ----------------------------------------------------------------------------
# Fused 4-layer MLP kernel: one M-tile of the batch per grid step.
# ----------------------------------------------------------------------------
def _fused_decoder_kernel(x_ref,
                          w1_ref, w2_ref, w3_ref, w4_ref,
                          b_ref,
                          o_ref,
                          *, bias_slices):
    """bias_slices: static tuple of (offset, width) into the packed bias row."""

    def layer(h, w_ref, sl, is_last):
        off, width = sl
        # bf16 x bf16 -> f32 accumulate on the MXU.
        y = jnp.dot(h, w_ref[...], preferred_element_type=jnp.float32)
        y = y + b_ref[:, off:off + width]          # bias in f32 (VPU)
        if is_last:
            return y
        return jnp.maximum(y, 0.0).astype(jnp.bfloat16)

    h = x_ref[...]                                  # bf16 (TM, K0P)
    h = layer(h, w1_ref, bias_slices[0], False)
    h = layer(h, w2_ref, bias_slices[1], False)
    h = layer(h, w3_ref, bias_slices[2], False)
    y = layer(h, w4_ref, bias_slices[3], True)
    o_ref[...] = y.astype(o_ref.dtype)


def _fused_decoder_call(xp, weights, bias_packed, bias_slices, tm):
    """xp: (MP, K0P) bf16; weights: 4x bf16 (Kp, Np); bias_packed: (1, sumNp) f32."""
    MP, K0P = xp.shape
    OUTP = weights[-1].shape[1]
    grid = (MP // tm,)

    operands = [xp]
    in_specs = [pl.BlockSpec((tm, K0P), lambda i: (i, 0))]
    for w in weights:
        operands.append(w)
        # Constant index_map -> fetched once, VMEM-resident across M tiles.
        in_specs.append(pl.BlockSpec(w.shape, lambda i: (0, 0)))
    operands.append(bias_packed)
    in_specs.append(pl.BlockSpec(bias_packed.shape, lambda i: (0, 0)))

    flops = 2 * MP * sum(w.shape[0] * w.shape[1] for w in weights)
    bytes_accessed = (
        sum(w.size * w.dtype.itemsize for w in weights)
        + bias_packed.size * bias_packed.dtype.itemsize
        + xp.size * xp.dtype.itemsize
        + MP * OUTP * 4
    )

    kernel = functools.partial(_fused_decoder_kernel, bias_slices=bias_slices)

    return pl.pallas_call(
        kernel,
        out_shape=jax.ShapeDtypeStruct((MP, OUTP), jnp.float32),
        grid=grid,
        in_specs=in_specs,
        out_specs=pl.BlockSpec((tm, OUTP), lambda i: (i, 0)),
        compiler_params=pltpu.CompilerParams(
            # Independent M tiles: lets v7x's two TensorCores split the batch.
            dimension_semantics=("parallel",),
            # Above v5e's 16 MiB default scoped VMEM; safe on v7x (64 MiB).
            vmem_limit_bytes=32 * 1024 * 1024,
        ),
        cost_estimate=pl.CostEstimate(
            flops=flops, transcendentals=0, bytes_accessed=bytes_accessed
        ),
    )(*operands)


# ----------------------------------------------------------------------------
# Parameter init / one-time preparation (padding + bf16 cast hoisted out of
# the per-call path).
# ----------------------------------------------------------------------------
def init_decoder_params(key, input_dim, feature_dim):
    """Deterministic PyTorch-style init: U(-1/sqrt(fan_in), 1/sqrt(fan_in))."""
    dims = [feature_dim, 2000, 500, 500, input_dim]
    params = []
    for li, (din, dout) in enumerate(zip(dims[:-1], dims[1:])):
        kw, kb = jax.random.split(jax.random.fold_in(key, li))
        bound = 1.0 / (din ** 0.5)
        w = jax.random.uniform(kw, (din, dout), jnp.float32, -bound, bound)
        b = jax.random.uniform(kb, (dout,), jnp.float32, -bound, bound)
        params.append((w, b))
    return params


def prepare_decoder_params(params):
    """Pad dims; weights -> bf16, biases packed into one f32 row.

    Layer-1 contraction dim is padded only to the bf16 sublane multiple (16),
    not 128, so its zero-padding is no longer shipped from HBM every call.
    Later layers' input dims equal the previous layer's (128-padded) output.
    Called once at init; reused for every forward.
    """
    weights = []
    biases = []
    for li, (w, b) in enumerate(params):
        din, dout = w.shape
        dinp = _round_up(din, 16) if li == 0 else _round_up(din, 128)
        doutp = _round_up(dout, 128)
        wp = (jnp.zeros((dinp, doutp), jnp.bfloat16)
              .at[:din, :dout].set(w.astype(jnp.bfloat16)))
        bp = jnp.zeros((doutp,), jnp.float32).at[:dout].set(b)
        weights.append(wp)
        biases.append(bp)
    bias_packed = jnp.concatenate(biases)[None, :]   # (1, sum padded_out)
    return tuple(weights), bias_packed


@functools.partial(jax.jit, static_argnums=(2,))
def decoder_forward(x, padded_params, input_dim):
    """x: (batch, feature_dim) f32 -> (batch, input_dim) f32."""
    weights, bias_packed = padded_params
    batch, feature_dim = x.shape
    k0p = weights[0].shape[0]

    # Pad batch to a full bf16 sublane pack (16); tile M at <=256 rows.
    mp = _round_up(batch, 16)
    tm = 256 if mp > 256 else mp
    mp = _round_up(mp, tm)

    xp = (jnp.zeros((mp, k0p), jnp.bfloat16)
          .at[:batch, :feature_dim].set(x.astype(jnp.bfloat16)))

    # Static (offset, width) pairs into the packed bias row.
    bias_slices = []
    off = 0
    for w in weights:
        bias_slices.append((off, w.shape[1]))
        off += w.shape[1]

    out = _fused_decoder_call(xp, weights, bias_packed, tuple(bias_slices), tm)
    return out[:batch, :input_dim]


# ----------------------------------------------------------------------------
# References
# ----------------------------------------------------------------------------
def decoder_reference(x, params):
    """Full-f32 reference matching the PyTorch module semantics."""
    h = x
    for li, (w, b) in enumerate(params):
        h = jnp.dot(h, w, precision=jax.lax.Precision.HIGHEST) + b
        if li < len(params) - 1:
            h = jnp.maximum(h, 0.0)
    return h


def decoder_reference_bf16(x, params):
    """Reference emulating the kernel's bf16-in / f32-accumulate path."""
    h = x.astype(jnp.bfloat16)
    y = None
    for li, (w, b) in enumerate(params):
        y = jnp.dot(h, w.astype(jnp.bfloat16),
                    preferred_element_type=jnp.float32) + b
        if li < len(params) - 1:
            h = jnp.maximum(y, 0.0).astype(jnp.bfloat16)
    return y


if __name__ == "__main__":
    input_dim = 64
    feature_dim = 32
    batch = 2

    key = jax.random.PRNGKey(0)
    kx, kp = jax.random.split(key)
    x = jax.random.normal(kx, (batch, feature_dim), jnp.float32)
    params = init_decoder_params(kp, input_dim, feature_dim)

    # One-time preparation (padding + bf16 cast + bias packing).
    padded_params = prepare_decoder_params(params)

    out = decoder_forward(x, padded_params, input_dim)
    out = jax.block_until_ready(out)
    assert out.shape == (batch, input_dim), out.shape

    # Tight check vs a reference that emulates the kernel's bf16/f32 path.
    ref_bf16 = decoder_reference_bf16(x, params)
    assert jnp.allclose(out, ref_bf16, atol=1e-3, rtol=1e-3), (
        float(jnp.max(jnp.abs(out - ref_bf16)))
    )

    # Semantics check vs the full-f32 PyTorch-equivalent reference
    # (tolerance loosened for the bf16 weight/activation path).
    ref_f32 = decoder_reference(x, params)
    assert jnp.allclose(out, ref_f32, atol=3e-2, rtol=3e-2), (
        float(jnp.max(jnp.abs(out - ref_f32)))
    )

    print("KERNEL_OK")
</pallas_src>

<mosaic_0001>
module attributes {stable_mosaic.version = 11 : i64} {
  func.func @_fused_decoder_kernel(%arg0: i32, %arg1: memref<16x32xbf16, #tpu.memory_space<vmem>>, %arg2: memref<32x2048xbf16, #tpu.memory_space<vmem>>, %arg3: memref<2048x512xbf16, #tpu.memory_space<vmem>>, %arg4: memref<512x512xbf16, #tpu.memory_space<vmem>>, %arg5: memref<512x128xbf16, #tpu.memory_space<vmem>>, %arg6: memref<1x3200xf32, #tpu.memory_space<vmem>>, %arg7: memref<16x128xf32, #tpu.memory_space<vmem>>) attributes {dimension_semantics = [#tpu.dimension_semantics<parallel>], iteration_bounds = array<i64: 1>, scalar_prefetch = 0 : i64, scratch_operands = 0 : i64, tpu.core_type = #tpu.core_type<tc>, window_params = [{transform_indices = @transform_0, window_bounds = array<i64: 16, 32>}, {pipeline_mode = #tpu.pipeline_mode<synchronous>, transform_indices = @transform_1, window_bounds = array<i64: 32, 2048>}, {pipeline_mode = #tpu.pipeline_mode<synchronous>, transform_indices = @transform_2, window_bounds = array<i64: 2048, 512>}, {pipeline_mode = #tpu.pipeline_mode<synchronous>, transform_indices = @transform_3, window_bounds = array<i64: 512, 512>}, {pipeline_mode = #tpu.pipeline_mode<synchronous>, transform_indices = @transform_4, window_bounds = array<i64: 512, 128>}, {pipeline_mode = #tpu.pipeline_mode<synchronous>, transform_indices = @transform_5, window_bounds = array<i64: 1, 3200>}, {transform_indices = @transform_6, window_bounds = array<i64: 16, 128>}]} {
    %c0 = arith.constant 0 : index
    %c0_0 = arith.constant 0 : index
    %0 = vector.load %arg1[%c0, %c0_0] : memref<16x32xbf16, #tpu.memory_space<vmem>>, vector<16x32xbf16>
    %c0_1 = arith.constant 0 : index
    %c0_2 = arith.constant 0 : index
    %1 = vector.load %arg2[%c0_1, %c0_2] : memref<32x2048xbf16, #tpu.memory_space<vmem>>, vector<32x2048xbf16>
    %cst = arith.constant dense<0.000000e+00> : vector<16x2048xf32>
    %2 = tpu.matmul %0, %1, %cst {dimension_numbers = #tpu.dot_dimension_numbers<[1], [0], [0], [1], [0, 0, 1, 1], [], []>} : vector<16x32xbf16>, vector<32x2048xbf16>, vector<16x2048xf32> -> vector<16x2048xf32>
    %c0_3 = arith.constant 0 : index
    %c0_4 = arith.constant 0 : index
    %3 = vector.load %arg6[%c0_3, %c0_4] : memref<1x3200xf32, #tpu.memory_space<vmem>>, vector<1x2048xf32>
    %4 = vector.broadcast %3 : vector<1x2048xf32> to vector<16x2048xf32>
    %5 = arith.addf %2, %4 : vector<16x2048xf32>
    %cst_5 = arith.constant 0.000000e+00 : f32
    %6 = vector.broadcast %cst_5 : f32 to vector<16x2048xf32>
    %7 = arith.maximumf %5, %6 : vector<16x2048xf32>
    %8 = arith.truncf %7 : vector<16x2048xf32> to vector<16x2048xbf16>
    %c0_6 = arith.constant 0 : index
    %c0_7 = arith.constant 0 : index
    %9 = vector.load %arg3[%c0_6, %c0_7] : memref<2048x512xbf16, #tpu.memory_space<vmem>>, vector<2048x512xbf16>
    %cst_8 = arith.constant dense<0.000000e+00> : vector<16x512xf32>
    %10 = tpu.matmul %8, %9, %cst_8 {dimension_numbers = #tpu.dot_dimension_numbers<[1], [0], [0], [1], [0, 0, 1, 1], [], []>} : vector<16x2048xbf16>, vector<2048x512xbf16>, vector<16x512xf32> -> vector<16x512xf32>
    %c0_9 = arith.constant 0 : index
    %c2048 = arith.constant 2048 : index
    %11 = vector.load %arg6[%c0_9, %c2048] : memref<1x3200xf32, #tpu.memory_space<vmem>>, vector<1x512xf32>
    %12 = vector.broadcast %11 : vector<1x512xf32> to vector<16x512xf32>
    %13 = arith.addf %10, %12 : vector<16x512xf32>
    %cst_10 = arith.constant 0.000000e+00 : f32
    %14 = vector.broadcast %cst_10 : f32 to vector<16x512xf32>
    %15 = arith.maximumf %13, %14 : vector<16x512xf32>
    %16 = arith.truncf %15 : vector<16x512xf32> to vector<16x512xbf16>
    %c0_11 = arith.constant 0 : index
    %c0_12 = arith.constant 0 : index
    %17 = vector.load %arg4[%c0_11, %c0_12] : memref<512x512xbf16, #tpu.memory_space<vmem>>, vector<512x512xbf16>
    %cst_13 = arith.constant dense<0.000000e+00> : vector<16x512xf32>
    %18 = tpu.matmul %16, %17, %cst_13 {dimension_numbers = #tpu.dot_dimension_numbers<[1], [0], [0], [1], [0, 0, 1, 1], [], []>} : vector<16x512xbf16>, vector<512x512xbf16>, vector<16x512xf32> -> vector<16x512xf32>
    %c0_14 = arith.constant 0 : index
    %c2560 = arith.constant 2560 : index
    %19 = vector.load %arg6[%c0_14, %c2560] : memref<1x3200xf32, #tpu.memory_space<vmem>>, vector<1x512xf32>
    %20 = vector.broadcast %19 : vector<1x512xf32> to vector<16x512xf32>
    %21 = arith.addf %18, %20 : vector<16x512xf32>
    %cst_15 = arith.constant 0.000000e+00 : f32
    %22 = vector.broadcast %cst_15 : f32 to vector<16x512xf32>
    %23 = arith.maximumf %21, %22 : vector<16x512xf32>
    %24 = arith.truncf %23 : vector<16x512xf32> to vector<16x512xbf16>
    %c0_16 = arith.constant 0 : index
    %c0_17 = arith.constant 0 : index
    %25 = vector.load %arg5[%c0_16, %c0_17] : memref<512x128xbf16, #tpu.memory_space<vmem>>, vector<512x128xbf16>
    %cst_18 = arith.constant dense<0.000000e+00> : vector<16x128xf32>
    %26 = tpu.matmul %24, %25, %cst_18 {dimension_numbers = #tpu.dot_dimension_numbers<[1], [0], [0], [1], [0, 0, 1, 1], [], []>} : vector<16x512xbf16>, vector<512x128xbf16>, vector<16x128xf32> -> vector<16x128xf32>
    %c0_19 = arith.constant 0 : index
    %c3072 = arith.constant 3072 : index
    %27 = vector.load %arg6[%c0_19, %c3072] : memref<1x3200xf32, #tpu.memory_space<vmem>>, vector<1x128xf32>
    %28 = vector.broadcast %27 : vector<1x128xf32> to vector<16x128xf32>
    %29 = arith.addf %26, %28 : vector<16x128xf32>
    %c0_20 = arith.constant 0 : index
    %c0_21 = arith.constant 0 : index
    %30 = vector.load %arg7[%c0_20, %c0_21] : memref<16x128xf32, #tpu.memory_space<vmem>>, vector<16x128xf32>
    tpu.vector_store %arg7[%c0_20, %c0_21], %29 {strides = array<i32>} : memref<16x128xf32, #tpu.memory_space<vmem>>, vector<16x128xf32>,
    return
  }
  func.func @transform_0(%arg0: i32) -> (i32, i32) {
    %c0_i32 = arith.constant 0 : i32
    %c0_i32_0 = arith.constant 0 : i32
    return %arg0, %c0_i32 : i32, i32
  }
  func.func @transform_1(%arg0: i32) -> (i32, i32) {
    %c0_i32 = arith.constant 0 : i32
    %c0_i32_0 = arith.constant 0 : i32
    %c0_i32_1 = arith.constant 0 : i32
    return %c0_i32, %c0_i32_0 : i32, i32
  }
  func.func @transform_2(%arg0: i32) -> (i32, i32) {
    %c0_i32 = arith.constant 0 : i32
    %c0_i32_0 = arith.constant 0 : i32
    %c0_i32_1 = arith.constant 0 : i32
    return %c0_i32, %c0_i32_0 : i32, i32
  }
  func.func @transform_3(%arg0: i32) -> (i32, i32) {
    %c0_i32 = arith.constant 0 : i32
    %c0_i32_0 = arith.constant 0 : i32
    %c0_i32_1 = arith.constant 0 : i32
    return %c0_i32, %c0_i32_0 : i32, i32
  }
  func.func @transform_4(%arg0: i32) -> (i32, i32) {
    %c0_i32 = arith.constant 0 : i32
    %c0_i32_0 = arith.constant 0 : i32
    %c0_i32_1 = arith.constant 0 : i32
    return %c0_i32, %c0_i32_0 : i32, i32
  }
  func.func @transform_5(%arg0: i32) -> (i32, i32) {
    %c0_i32 = arith.constant 0 : i32
    %c0_i32_0 = arith.constant 0 : i32
    %c0_i32_1 = arith.constant 0 : i32
    return %c0_i32, %c0_i32_0 : i32, i32
  }
  func.func @transform_6(%arg0: i32) -> (i32, i32) {
    %c0_i32 = arith.constant 0 : i32
    %c0_i32_0 = arith.constant 0 : i32
    return %arg0, %c0_i32 : i32, i32
  }
}

</mosaic_0001>

<bundles_post_ra>
// kernel: decoder_forward.1
= control target key start
LH: loop header
LB: loop body
LE: loop exit
PB: predicated region body
PF: predicated region fallthrough
CT: control target
= control target key end

     0   :  { %11 = vsyncpa [#allocation3], 0  ;;  %s8115_s0 = inlined_call_operand.vmem [shape: bf16[16,32], index: 0, kind: input, shape index: {}]   ;;  %s8116_s1 = inlined_call_operand.hbm [shape: bf16[32,2048], index: 1, kind: input, shape index: {}]   ;;  %s8117_s2 = inlined_call_operand.hbm [shape: bf16[2048,512], index: 2, kind: input, shape index: {}]   ;;  %s8118_s3 = inlined_call_operand.hbm [shape: bf16[512,512], index: 3, kind: input, shape index: {}]   ;;  %s8119_s4 = inlined_call_operand.hbm [shape: bf16[512,128], index: 4, kind: input, shape index: {}]   ;;  %s8120_s5 = inlined_call_operand.hbm [shape: f32[1,3200], index: 5, kind: input, shape index: {}]   ;;  %s8121_s6 = inlined_call_operand.vmem [shape: f32[16,128], index: 6, kind: output, shape index: {}]  }
   0x1   :  { %12 = vsyncpa [#allocation5], 0 }
   0x2   :  { %13 = vsyncpa [#allocation8], 0  ;;  %s7760_s21 = smov [#allocation4]  }
   0x3   :  { %s33_s22 = sshll.u32 %s7760_s21, 4  ;;  %s34_s22 = int_to_ptr.vmem [resolvable:$true] %s33_s22 }
   0x4   :  { %s7662_s23 = scalar_lea.vmem %s34_s22, 65536  ;;  %p7667_p1 = scmp.lt.s32.totalorder %s34_s22, %s34_s22 }
   0x5   :  { %p7663_p0 = scmp.ne.s32.totalorder %s34_s22, %s7662_s23  ;;  %p7668_p2 = scmp.lt.s32.totalorder %s7662_s23, %s7662_s23 }
   0x7   :  { %p7669_p3 = por %p7668_p2, %p7667_p1 }
   0x9   :  { %p7670_p4 = pnand %p7669_p3, %p7663_p0 }
   0xb   :  { %7673 = shalt.err (!%p7670_p4)
}
   0xc   :  { %s7761_s24 = smov 256   ;;  %s7762_s25 = smov 16  }
   0xd   :  { %39 = dma.hbm_to_vmem [thread:$0]  %s8117_s2, 65536, %s34_s22, [#allocation5], %s7761_s24, %s7761_s24, %s7762_s25  }
   0xe   :  { %s7763_s28 = smov [#allocation7]   ;;  %s7764_s30 = smov [#allocation2]  }
   0xf   :  { %s57_s29 = sshll.u32 %s7763_s28, 4  ;;  %s21_s7 = sshll.u32 %s7764_s30, 4  ;;  %s58_s29 = int_to_ptr.vmem [resolvable:$true] %s57_s29  ;;  %s22_s7 = int_to_ptr.vmem [resolvable:$true] %s21_s7 }
  0x10   :  { %s7682_s8 = scalar_lea.vmem %s58_s29, 4096  ;;  %p7687_p6 = scmp.lt.s32.totalorder %s58_s29, %s58_s29 }
  0x11   :  { %p7683_p5 = scmp.ne.s32.totalorder %s58_s29, %s7682_s8  ;;  %p7688_p7 = scmp.lt.s32.totalorder %s7682_s8, %s7682_s8 }
  0x13   :  { %p7689_p8 = por %p7688_p7, %p7687_p6 }
  0x15   :  { %p7690_p9 = pnand %p7689_p8, %p7683_p5 }
  0x17   :  { %7693 = shalt.err (!%p7690_p9)
}
  0x18   :  { %s7765_s9 = smov 64   ;;  %s7766_s10 = smov 4  }
  0x19   :  { %63 = dma.hbm_to_vmem [thread:$0]  %s8119_s4, 4096, %s58_s29, [#allocation8], %s7765_s9, %s7765_s9, %s7766_s10  }
  0x1a   :  { %s7702_s2 = scalar_lea.vmem %s22_s7, 4096  ;;  %p7707_p11 = scmp.lt.s32.totalorder %s22_s7, %s22_s7 }
  0x1b   :  { %p7703_p10 = scmp.ne.s32.totalorder %s22_s7, %s7702_s2  ;;  %p7708_p12 = scmp.lt.s32.totalorder %s7702_s2, %s7702_s2 }
  0x1d   :  { %p7709_p13 = por %p7708_p12, %p7707_p11 }
  0x1f   :  { %p7710_p0 = pnand %p7709_p13, %p7703_p10 }
  0x21   :  { %7713 = shalt.err (!%p7710_p0)
}
  0x22   :  { %s7767_s13 = smov 1024   ;;  %s7768_s16 = smov [#allocation6]  }
  0x23   :  { %27 = dma.hbm_to_vmem [thread:$0]  %s8116_s1, 4096, %s22_s7, [#allocation3], %s7767_s13, %s7767_s13, %s7765_s9  }
  0x24   :  { %s45_s17 = sshll.u32 %s7768_s16, 4  ;;  %s7769_s18 = smov [#allocation9]   ;;  %s46_s17 = int_to_ptr.vmem [resolvable:$true] %s45_s17 }
  0x25   :  { %s70_s19 = sshll.u32 %s7769_s18, 4  ;;  %s7722_s4 = scalar_lea.vmem %s46_s17, 16384  ;;  %s71_s19 = int_to_ptr.vmem [resolvable:$true] %s70_s19 }
  0x26   :  { %p7723_p1 = scmp.ne.s32.totalorder %s46_s17, %s7722_s4  ;;  %p7727_p2 = scmp.lt.s32.totalorder %s46_s17, %s46_s17 }
  0x27   :  { %p7728_p3 = scmp.lt.s32.totalorder %s7722_s4, %s7722_s4 }
  0x29   :  { %p7729_p4 = por %p7728_p3, %p7727_p2 }
  0x2b   :  { %p7730_p5 = pnand %p7729_p4, %p7723_p1 }
  0x2d   :  { %7733 = shalt.err (!%p7730_p5)
}
  0x2e   :  { %51 = dma.hbm_to_vmem [thread:$0]  %s8118_s3, 16384, %s46_s17, [#allocation5], %s7761_s24, %s7761_s24, %s7762_s25  }
  0x2f   :  { %s7742_s1 = scalar_lea.vmem %s71_s19, 400  ;;  %s7746_s22 = scalar_lea.vmem %s71_s19, 416 }
  0x30   :  { %p7743_p6 = scmp.ne.s32.totalorder %s71_s19, %s7742_s1  ;;  %p7747_p7 = scmp.lt.s32.totalorder %s71_s19, %s71_s19 }
  0x31   :  { %p7748_p8 = scmp.lt.s32.totalorder %s7746_s22, %s7742_s1 }
  0x33   :  { %p7749_p9 = por %p7748_p8, %p7747_p7 }
  0x35   :  { %p7750_p10 = pnand %p7749_p9, %p7743_p6 }
  0x37   :  { %7753 = shalt.err (!%p7750_p10)
}
  0x38   :  { %73 = dma.hbm_to_vmem [thread:$0]  %s8120_s5, 400, %s71_s19, [#allocation8]  }
  0x39   :  { %7754 = dma.done.wait [#allocation3], 4096  }
  0x3a   :  { %7755 = vsyncadd [#allocation3], 4294963200 }
  0x3b   :  { %7756 = dma.done.wait [#allocation5], 81920  }
  0x3c   :  { %7757 = vsyncadd [#allocation5], 4294885376 }
  0x3d   :  { %7758 = dma.done.wait [#allocation8], 4496  }
  0x3e   :  { %7759 = vsyncadd [#allocation8], 4294962800  ;;  %v7770_v0 = vmov 0   ;;  %v108_v1 = vld [vmem:[#allocation2 + $0x80] sm:$0xff]  ;;  %v109_v3 = vld [vmem:[#allocation2 + $0x88] sm:$0xff]  ;;  %vm373_vm0 = vcmask 261120  }
  0x3f   :  { %409 = vmatprep.mubr.bf16.mxu0 %v7770_v0  ;;  %452 = vmatprep.mubr.bf16.mxu1 %v7770_v0  ;;  %v116_v2 = vld [vmem:[#allocation2 + $0xc0] sm:$0xff]  ;;  %v117_v5 = vld [vmem:[#allocation2 + $0xc8] sm:$0xff]  ;;  %v110_v15 = vld [vmem:[#allocation2 + $0x90] sm:$0xff] }
  0x40   :  { %v5909_v4 = vcombine.high %v108_v1, %v116_v2  ;;  %v5908_v6 = vcombine.low %v108_v1, %v116_v2  ;;  %v92_v7 = vld [vmem:[#allocation2] sm:$0xff]  ;;  %v5911_v9 = vcombine.high %v109_v3, %v117_v5  ;;  %v5910_v10 = vcombine.low %v109_v3, %v117_v5  ;;  %v93_v12 = vld [vmem:[#allocation2 + $0x8] sm:$0xff]  ;;  %v118_v17 = vld [vmem:[#allocation2 + $0xd0] sm:$0xff] }
  0x41   :  { %v100_v8 = vld [vmem:[#allocation2 + $0x40] sm:$0xff]  ;;  %v101_v13 = vld [vmem:[#allocation2 + $0x48] sm:$0xff]  ;;  %v111_v18 = vld [vmem:[#allocation2 + $0x98] sm:$0xff]  ;;  %v5913_v21 = vcombine.high %v110_v15, %v118_v17  ;;  %v5912_v28 = vcombine.low %v110_v15, %v118_v17 }
  0x42   :  { %v5893_v11 = vcombine.high %v92_v7, %v100_v8  ;;  %389 = vmatprep.subr.bf16.mxu0 %v5909_v4  ;;  %v5895_v14 = vcombine.high %v93_v12, %v101_v13  ;;  %432 = vmatprep.subr.bf16.mxu1 %v5911_v9  ;;  %v5892_v16 = vcombine.low %v92_v7, %v100_v8  ;;  %v119_v19 = vld [vmem:[#allocation2 + $0xd8] sm:$0xff]  ;;  %v94_v23 = vld [vmem:[#allocation2 + $0x10] sm:$0xff]  ;;  %v7832_v25 = vld [vmem:[%s8115_s0] sm:$0xff]  }
  0x43   :  { %390 = vmatpush1.bf16.msra.mxu0 %v5908_v6  ;;  %433 = vmatpush1.bf16.msra.mxu1 %v5910_v10  ;;  %v5894_v20 = vcombine.low %v93_v12, %v101_v13  ;;  %v5915_v22 = vcombine.high %v111_v18, %v119_v19  ;;  %v102_v24 = vld [vmem:[#allocation2 + $0x50] sm:$0xff]  ;;  %v95_v26 = vld [vmem:[#allocation2 + $0x18] sm:$0xff]  ;;  %v5914_v29 = vcombine.low %v111_v18, %v119_v19  ;;  %v112_v32 = vld [vmem:[#allocation2 + $0xa0] sm:$0xff] }
  0x44   :  { %391 = vmatprep.subr.bf16.mxu0 %v5893_v11  ;;  %434 = vmatprep.subr.bf16.mxu1 %v5895_v14  ;;  %v103_v27 = vld [vmem:[#allocation2 + $0x58] sm:$0xff]  ;;  %v5897_v30 = vcombine.high %v94_v23, %v102_v24  ;;  %v120_v33 = vld [vmem:[#allocation2 + $0xe0] sm:$0xff]  ;;  %v113_v34 = vld [vmem:[#allocation2 + $0xa8] sm:$0xff]  ;;  %v5896_v36 = vcombine.low %v94_v23, %v102_v24 }
  0x45   :  { %v5899_v31 = vcombine.high %v95_v26, %v103_v27  ;;  %v121_v35 = vld [vmem:[#allocation2 + $0xe8] sm:$0xff]  ;;  %v5898_v37 = vcombine.low %v95_v26, %v103_v27  ;;  %v5917_v38 = vcombine.high %v112_v32, %v120_v33  ;;  %v96_v39 = vld [vmem:[#allocation2 + $0x20] sm:$0xff]  ;;  %v5916_v44 = vcombine.low %v112_v32, %v120_v33  ;;  %v114_v47 = vld [vmem:[#allocation2 + $0xb0] sm:$0xff] }
  0x46   :  { %v5919_v40 = vcombine.high %v113_v34, %v121_v35  ;;  %v104_v41 = vld [vmem:[#allocation2 + $0x60] sm:$0xff]  ;;  %v97_v42 = vld [vmem:[#allocation2 + $0x28] sm:$0xff]  ;;  %v5918_v45 = vcombine.low %v113_v34, %v121_v35  ;;  %v122_v49 = vld [vmem:[#allocation2 + $0xf0] sm:$0xff] }
  0x47   :  { %392 = vmatpush1.bf16.msra.mxu0 %v5892_v16  ;;  %435 = vmatpush1.bf16.msra.mxu1 %v5894_v20  ;;  %v105_v43 = vld [vmem:[#allocation2 + $0x68] sm:$0xff]  ;;  %v5901_v46 = vcombine.high %v96_v39, %v104_v41  ;;  %v115_v50 = vld [vmem:[#allocation2 + $0xb8] sm:$0xff]  ;;  %v5900_v52 = vcombine.low %v96_v39, %v104_v41  ;;  %v5921_v54 = vcombine.high %v114_v47, %v122_v49  ;;  %v98_v55 = vld [vmem:[#allocation2 + $0x30] sm:$0xff] }
  0x48   :  { %475 = vmatprep.subr.bf16.mxu0 %v5913_v21  ;;  %518 = vmatprep.subr.bf16.mxu1 %v5915_v22  ;;  %v5903_v48 = vcombine.high %v97_v42, %v105_v43  ;;  %v123_v51 = vld [vmem:[#allocation2 + $0xf8] sm:$0xff]  ;;  %v5902_v53 = vcombine.low %v97_v42, %v105_v43  ;;  %v106_v57 = vld [vmem:[#allocation2 + $0x70] sm:$0xff]  ;;  %v5920_v60 = vcombine.low %v114_v47, %v122_v49 }
  0x49   :  { %v5923_v56 = vcombine.high %v115_v50, %v123_v51  ;;  %v99_v58 = vld [vmem:[#allocation2 + $0x38] sm:$0xff]  ;;  %v5922_v61 = vcombine.low %v115_v50, %v123_v51  ;;  %v5905_v62 = vcombine.high %v98_v55, %v106_v57  ;;  %v5904_v1 = vcombine.low %v98_v55, %v106_v57  ;;  %v6663_v3 = vld [vmem:[#allocation4 + $0xe4] ss:$16 sps:$4 sm:$0xff]   ;;  %v6661_v5 = vld [vmem:[#allocation4 + $0xe0] ss:$16 sps:$4 sm:$0xff]  }
  0x4a   :  { %5924 = vmatmul.mubr.msk.bf16.vlgmr.msra.gmra.mxu0 %vm373_vm0, %v7832_v25  ;;  %5925 = vmatmul.mubr.msk.bf16.vlgmr.msra.gmra.mxu1 %vm373_vm0, %v7832_v25  ;;  %v107_v59 = vld [vmem:[#allocation2 + $0x78] sm:$0xff]  ;;  %v6666_v4 = vld [vmem:[#allocation4 + $0x2e4] ss:$16 sps:$4 sm:$0xff]   ;;  %v6664_v6 = vld [vmem:[#allocation4 + $0x2e0] ss:$16 sps:$4 sm:$0xff]  }
  0x4b   :  { %476 = vmatpush1.bf16.msra.mxu0 %v5912_v28  ;;  %519 = vmatpush1.bf16.msra.mxu1 %v5914_v29  ;;  %v5907_v63 = vcombine.high %v99_v58, %v107_v59  ;;  %v5906_v2 = vcombine.low %v99_v58, %v107_v59  ;;  %v6669_v7 = vld [vmem:[#allocation4 + $0xc4] ss:$16 sps:$4 sm:$0xff]   ;;  %v6667_v9 = vld [vmem:[#allocation4 + $0xc0] ss:$16 sps:$4 sm:$0xff]  }
  0x4c   :  { %477 = vmatprep.subr.bf16.mxu0 %v5897_v30  ;;  %520 = vmatprep.subr.bf16.mxu1 %v5899_v31  ;;  %v6672_v8 = vld [vmem:[#allocation4 + $0x2c4] ss:$16 sps:$4 sm:$0xff]   ;;  %v6670_v10 = vld [vmem:[#allocation4 + $0x2c0] ss:$16 sps:$4 sm:$0xff]  }
  0x4d   :  { %495 = vmatprep.mubr.bf16.mxu0 %v7770_v0  ;;  %538 = vmatprep.mubr.bf16.mxu1 %v7770_v0  ;;  %v6678_v11 = vld [vmem:[#allocation4 + $0x2a4] ss:$16 sps:$4 sm:$0xff]   ;;  %v6673_v12 = vld [vmem:[#allocation4 + $0xa0] ss:$16 sps:$4 sm:$0xff]  }
  0x4e   :  { %v6676_v13 = vld [vmem:[#allocation4 + $0x2a0] ss:$16 sps:$4 sm:$0xff]   ;;  %v6681_v14 = vld [vmem:[#allocation4 + $0x84] ss:$16 sps:$4 sm:$0xff]  }
  0x4f   :  { %478 = vmatpush1.bf16.msra.mxu0 %v5896_v36  ;;  %521 = vmatpush1.bf16.msra.mxu1 %v5898_v37  ;;  %v6684_v15 = vld [vmem:[#allocation4 + $0x284] ss:$16 sps:$4 sm:$0xff]   ;;  %v6679_v16 = vld [vmem:[#allocation4 + $0x80] ss:$16 sps:$4 sm:$0xff]  }
  0x50   :  { %561 = vmatprep.subr.bf16.mxu0 %v5917_v38  ;;  %604 = vmatprep.subr.bf16.mxu1 %v5919_v40  ;;  %v6682_v17 = vld [vmem:[#allocation4 + $0x280] ss:$16 sps:$4 sm:$0xff]   ;;  %v6687_v18 = vld [vmem:[#allocation4 + $0x64] ss:$16 sps:$4 sm:$0xff]  }
  0x51   :  { %v6685_v19 = vld [vmem:[#allocation4 + $0x60] ss:$16 sps:$4 sm:$0xff]   ;;  %v6690_v20 = vld [vmem:[#allocation4 + $0x264] ss:$16 sps:$4 sm:$0xff]  }
  0x52   :  { %5926 = vmatmul.mubr.msk.bf16.vlgmr.msra.gmra.mxu0 %vm373_vm0, %v7832_v25  ;;  %5927 = vmatmul.mubr.msk.bf16.vlgmr.msra.gmra.mxu1 %vm373_vm0, %v7832_v25  ;;  %v6688_v21 = vld [vmem:[#allocation4 + $0x260] ss:$16 sps:$4 sm:$0xff]   ;;  %v6693_v22 = vld [vmem:[#allocation4 + $0x44] ss:$16 sps:$4 sm:$0xff]  }
  0x53   :  { %562 = vmatpush1.bf16.msra.mxu0 %v5916_v44  ;;  %605 = vmatpush1.bf16.msra.mxu1 %v5918_v45  ;;  %v6696_v23 = vld [vmem:[#allocation4 + $0x244] ss:$16 sps:$4 sm:$0xff]   ;;  %v6691_v24 = vld [vmem:[#allocation4 + $0x40] ss:$16 sps:$4 sm:$0xff]  }
  0x54   :  { %563 = vmatprep.subr.bf16.mxu0 %v5901_v46  ;;  %606 = vmatprep.subr.bf16.mxu1 %v5903_v48  ;;  %v6699_v26 = vld [vmem:[#allocation4 + $0x24] ss:$16 sps:$4 sm:$0xff]   ;;  %v6697_v28 = vld [vmem:[#allocation4 + $0x20] ss:$16 sps:$4 sm:$0xff]  }
  0x55   :  { %581 = vmatprep.mubr.bf16.mxu0 %v7770_v0  ;;  %624 = vmatprep.mubr.bf16.mxu1 %v7770_v0  ;;  %v6702_v27 = vld [vmem:[#allocation4 + $0x224] ss:$16 sps:$4 sm:$0xff]   ;;  %v6700_v29 = vld [vmem:[#allocation4 + $0x220] ss:$16 sps:$4 sm:$0xff]  }
  0x56   :  { %v6705_v30 = vld [vmem:[#allocation4 + $0x4] ss:$16 sps:$4 sm:$0xff]   ;;  %v6703_v32 = vld [vmem:[#allocation4] ss:$16 sps:$4 sm:$0xff]  }
  0x57   :  { %564 = vmatpush1.bf16.msra.mxu0 %v5900_v52  ;;  %607 = vmatpush1.bf16.msra.mxu1 %v5902_v53  ;;  %v6708_v31 = vld [vmem:[#allocation4 + $0x204] ss:$16 sps:$4 sm:$0xff]   ;;  %v6706_v33 = vld [vmem:[#allocation4 + $0x200] ss:$16 sps:$4 sm:$0xff]  }
  0x58   :  { %647 = vmatprep.subr.bf16.mxu0 %v5921_v54  ;;  %690 = vmatprep.subr.bf16.mxu1 %v5923_v56  ;;  %v6711_v34 = vld [vmem:[#allocation4 + $0x1e4] ss:$16 sps:$4 sm:$0xff]   ;;  %v6709_v36 = vld [vmem:[#allocation4 + $0x1e0] ss:$16 sps:$4 sm:$0xff]  }
  0x59   :  { %v6714_v35 = vld [vmem:[#allocation4 + $0x3e4] ss:$16 sps:$4 sm:$0xff]   ;;  %v6712_v37 = vld [vmem:[#allocation4 + $0x3e0] ss:$16 sps:$4 sm:$0xff]  }
  0x5a   :  { %5928 = vmatmul.mubr.msk.bf16.vlgmr.msra.gmra.mxu0 %vm373_vm0, %v7832_v25  ;;  %5929 = vmatmul.mubr.msk.bf16.vlgmr.msra.gmra.mxu1 %vm373_vm0, %v7832_v25  ;;  %v6717_v38 = vld [vmem:[#allocation4 + $0x1c4] ss:$16 sps:$4 sm:$0xff]   ;;  %v6715_v40 = vld [vmem:[#allocation4 + $0x1c0] ss:$16 sps:$4 sm:$0xff]  }
  0x5b   :  { %648 = vmatpush1.bf16.msra.mxu0 %v5920_v60  ;;  %691 = vmatpush1.bf16.msra.mxu1 %v5922_v61  ;;  %v6720_v39 = vld [vmem:[#allocation4 + $0x3c4] ss:$16 sps:$4 sm:$0xff]   ;;  %v6718_v41 = vld [vmem:[#allocation4 + $0x3c0] ss:$16 sps:$4 sm:$0xff]  }
  0x5c   :  { %649 = vmatprep.subr.bf16.mxu0 %v5905_v62  ;;  %692 = vmatprep.subr.bf16.mxu1 %v5907_v63  ;;  %v6723_v42 = vld [vmem:[#allocation4 + $0x1a4] ss:$16 sps:$4 sm:$0xff]   ;;  %v6721_v44 = vld [vmem:[#allocation4 + $0x1a0] ss:$16 sps:$4 sm:$0xff]  }
  0x5d   :  { %667 = vmatprep.mubr.bf16.mxu0 %v7770_v0  ;;  %710 = vmatprep.mubr.bf16.mxu1 %v7770_v0  ;;  %v6675_v0 = vld [vmem:[#allocation4 + $0xa4] ss:$16 sps:$4 sm:$0xff]   ;;  %v6724_v45 = vld [vmem:[#allocation4 + $0x3a0] ss:$16 sps:$4 sm:$0xff]  }
  0x5e   :  { %v6726_v43 = vld [vmem:[#allocation4 + $0x3a4] ss:$16 sps:$4 sm:$0xff]   ;;  %v6727_v48 = vld [vmem:[#allocation4 + $0x180] ss:$16 sps:$4 sm:$0xff]  }
  0x5f   :  { %650 = vmatpush1.bf16.msra.mxu0 %v5904_v1  ;;  %693 = vmatpush1.bf16.msra.mxu1 %v5906_v2  ;;  %v6729_v46 = vld [vmem:[#allocation4 + $0x184] ss:$16 sps:$4 sm:$0xff]   ;;  %v6730_v49 = vld [vmem:[#allocation4 + $0x380] ss:$16 sps:$4 sm:$0xff]  }
  0x60   :  { %3863 = vmatprep.subr.bf16.mxu0 %v6663_v3  ;;  %3906 = vmatprep.subr.bf16.mxu1 %v6666_v4  ;;  %v6732_v47 = vld [vmem:[#allocation4 + $0x384] ss:$16 sps:$4 sm:$0xff]   ;;  %v6733_v52 = vld [vmem:[#allocation4 + $0x160] ss:$16 sps:$4 sm:$0xff]  }
  0x61   :  { %v6735_v50 = vld [vmem:[#allocation4 + $0x164] ss:$16 sps:$4 sm:$0xff]   ;;  %v6736_v53 = vld [vmem:[#allocation4 + $0x360] ss:$16 sps:$4 sm:$0xff]  }
  0x62   :  { %5930 = vmatmul.mubr.msk.bf16.vlgmr.msra.gmra.mxu0 %vm373_vm0, %v7832_v25  ;;  %5931 = vmatmul.mubr.msk.bf16.vlgmr.msra.gmra.mxu1 %vm373_vm0, %v7832_v25  ;;  %v6694_v25 = vld [vmem:[#allocation4 + $0x240] ss:$16 sps:$4 sm:$0xff]   ;;  %v6738_v51 = vld [vmem:[#allocation4 + $0x364] ss:$16 sps:$4 sm:$0xff]  }
  0x63   :  { %3864 = vmatpush1.bf16.msra.mxu0 %v6661_v5  ;;  %3907 = vmatpush1.bf16.msra.mxu1 %v6664_v6  ;;  %v6741_v54 = vld [vmem:[#allocation4 + $0x144] ss:$16 sps:$4 sm:$0xff]   ;;  %v6739_v56 = vld [vmem:[#allocation4 + $0x140] ss:$16 sps:$4 sm:$0xff]   ;;  %v128_v5 = vlaneseq }
  0x64   :  { %3865 = vmatprep.subr.bf16.mxu0 %v6669_v7  ;;  %3908 = vmatprep.subr.bf16.mxu1 %v6672_v8  ;;  %v6744_v55 = vld [vmem:[#allocation4 + $0x344] ss:$16 sps:$4 sm:$0xff]   ;;  %v6742_v57 = vld [vmem:[#allocation4 + $0x340] ss:$16 sps:$4 sm:$0xff]  }
  0x65   :  { %v6747_v58 = vld [vmem:[#allocation4 + $0x124] ss:$16 sps:$4 sm:$0xff]   ;;  %v6745_v60 = vld [vmem:[#allocation4 + $0x120] ss:$16 sps:$4 sm:$0xff]   ;;  %v7856_v6 = vshrl.u32 %v128_v5, 7 }
  0x66   :  { %v6750_v59 = vld [vmem:[#allocation4 + $0x324] ss:$16 sps:$4 sm:$0xff]   ;;  %v6748_v61 = vld [vmem:[#allocation4 + $0x320] ss:$16 sps:$4 sm:$0xff]  }
  0x67   :  { %3866 = vmatpush1.bf16.msra.mxu0 %v6667_v9  ;;  %3909 = vmatpush1.bf16.msra.mxu1 %v6670_v10  ;;  %v6753_v62 = vld [vmem:[#allocation4 + $0x104] ss:$16 sps:$4 sm:$0xff]   ;;  %v6751_v1 = vld [vmem:[#allocation4 + $0x100] ss:$16 sps:$4 sm:$0xff]   ;;  %v7861_v8 = vsub.s32 1, %v7856_v6  ;;  %v7864_v9 = vsub.s32 0, %v7856_v6 }
  0x68   :  { %3867 = vmatprep.subr.bf16.mxu0 %v6675_v0  ;;  %3910 = vmatprep.subr.bf16.mxu1 %v6678_v11  ;;  %v6756_v63 = vld [vmem:[#allocation4 + $0x304] ss:$16 sps:$4 sm:$0xff]   ;;  %v6754_v2 = vld [vmem:[#allocation4 + $0x300] ss:$16 sps:$4 sm:$0xff]   ;;  %v7867_v10 = vsub.s32 3, %v7856_v6  ;;  %v7870_v0 = vsub.s32 2, %v7856_v6 }
  0x69   :  { %v6759_v3 = vld [vmem:[#allocation4 + $0x4e4] ss:$16 sps:$4 sm:$0xff]  }
  0x6a   :  { %v6762_v4 = vld [vmem:[#allocation4 + $0x6e4] ss:$16 sps:$4 sm:$0xff]  }
  0x6b   :  { %3868 = vmatpush1.bf16.msra.mxu0 %v6673_v12  ;;  %3911 = vmatpush1.bf16.msra.mxu1 %v6676_v13  ;;  %v7858_v7 = vld [vmem:[#allocation9] sm:$0xff] }
  0x6c   :  { %3869 = vmatprep.subr.bf16.mxu0 %v6681_v14  ;;  %3912 = vmatprep.subr.bf16.mxu1 %v6684_v15  ;;  %v135_v13 = vrot.slane %v7858_v7, %v7861_v8  ;;  %v131_v14 = vrot.slane %v7858_v7, %v7864_v9 }
  0x6f   :  { %3870 = vmatpush1.bf16.msra.mxu0 %v6679_v16  ;;  %3913 = vmatpush1.bf16.msra.mxu1 %v6682_v17  ;;  %v143_v16 = vrot.slane %v7858_v7, %v7867_v10  ;;  %v139_v17 = vrot.slane %v7858_v7, %v7870_v0 }
  0x70   :  { %3871 = vmatprep.subr.bf16.mxu0 %v6687_v18  ;;  %3914 = vmatprep.subr.bf16.mxu1 %v6690_v20 }
  0x73   :  { %3872 = vmatpush1.bf16.msra.mxu0 %v6685_v19  ;;  %3915 = vmatpush1.bf16.msra.mxu1 %v6688_v21  ;;  %v150_v19 = vsub.s32 5, %v7856_v6  ;;  %v158_v21 = vsub.s32 7, %v7856_v6 }
  0x74   :  { %3873 = vmatprep.subr.bf16.mxu0 %v6693_v22  ;;  %3916 = vmatprep.subr.bf16.mxu1 %v6696_v23 }
  0x77   :  { %3874 = vmatpush1.bf16.msra.mxu0 %v6691_v24  ;;  %3917 = vmatpush1.bf16.msra.mxu1 %v6694_v25 }
  0x78   :  { %3875 = vmatprep.subr.bf16.mxu0 %v6699_v26  ;;  %3918 = vmatprep.subr.bf16.mxu1 %v6702_v27 }
  0x7b   :  { %3876 = vmatpush1.bf16.msra.mxu0 %v6697_v28  ;;  %3919 = vmatpush1.bf16.msra.mxu1 %v6700_v29 }
  0x7c   :  { %3877 = vmatprep.subr.bf16.mxu0 %v6705_v30  ;;  %3920 = vmatprep.subr.bf16.mxu1 %v6708_v31 }
  0x7f   :  { %3878 = vmatpush1.bf16.msra.mxu0 %v6703_v32  ;;  %3921 = vmatpush1.bf16.msra.mxu1 %v6706_v33  ;;  %v151_v32 = vrot.slane %v7858_v7, %v150_v19 }
  0x80   :  { %3879 = vmatprep.subr.bf16.mxu0 %v6711_v34  ;;  %3922 = vmatprep.subr.bf16.mxu1 %v6714_v35 }
  0x83   :  { %3880 = vmatpush2.bf16.msra.mxu0 %v6709_v36  ;;  %3923 = vmatpush2.bf16.msra.mxu1 %v6712_v37  ;;  %v159_v36 = vrot.slane %v7858_v7, %v158_v21 }
  0x84   :  { %3881 = vmatprep.subr.bf16.mxu0 %v6717_v38  ;;  %3924 = vmatprep.subr.bf16.mxu1 %v6720_v39 }
  0x87   :  { %3882 = vmatpush2.bf16.msra.mxu0 %v6715_v40  ;;  %3925 = vmatpush2.bf16.msra.mxu1 %v6718_v41  ;;  %v6757_v40 = vld [vmem:[#allocation4 + $0x4e0] ss:$16 sps:$4 sm:$0xff]  }
  0x88   :  { %3883 = vmatprep.subr.bf16.mxu0 %v6723_v42  ;;  %3926 = vmatprep.subr.bf16.mxu1 %v6726_v43 }
  0x8b   :  { %3884 = vmatpush2.bf16.msra.mxu0 %v6721_v44  ;;  %3927 = vmatpush2.bf16.msra.mxu1 %v6724_v45  ;;  %v6760_v45 = vld [vmem:[#allocation4 + $0x6e0] ss:$16 sps:$4 sm:$0xff]  }
  0x8c   :  { %3885 = vmatprep.subr.bf16.mxu0 %v6729_v46  ;;  %3928 = vmatprep.subr.bf16.mxu1 %v6732_v47  ;;  %v6765_v46 = vld [vmem:[#allocation4 + $0x4c4] ss:$16 sps:$4 sm:$0xff]  }
  0x8f   :  { %3886 = vmatpush2.bf16.msra.mxu0 %v6727_v48  ;;  %3929 = vmatpush2.bf16.msra.mxu1 %v6730_v49 }
  0x90   :  { %3887 = vmatprep.subr.bf16.mxu0 %v6735_v50  ;;  %3930 = vmatprep.subr.bf16.mxu1 %v6738_v51 }
  0x93   :  { %3888 = vmatpush2.bf16.msra.mxu0 %v6733_v52  ;;  %3931 = vmatpush2.bf16.msra.mxu1 %v6736_v53 }
  0x94   :  { %3889 = vmatprep.subr.bf16.mxu0 %v6741_v54  ;;  %3932 = vmatprep.subr.bf16.mxu1 %v6744_v55 }
  0x97   :  { %3890 = vmatpush2.bf16.msra.mxu0 %v6739_v56  ;;  %3933 = vmatpush2.bf16.msra.mxu1 %v6742_v57  ;;  %v6768_v57 = vld [vmem:[#allocation4 + $0x6c4] ss:$16 sps:$4 sm:$0xff]  }
  0x98   :  { %3891 = vmatprep.subr.bf16.mxu0 %v6747_v58  ;;  %3934 = vmatprep.subr.bf16.mxu1 %v6750_v59  ;;  %v6763_v59 = vld [vmem:[#allocation4 + $0x4c0] ss:$16 sps:$4 sm:$0xff]  }
  0x9b   :  { %3892 = vmatpush2.bf16.msra.mxu0 %v6745_v60  ;;  %3935 = vmatpush2.bf16.msra.mxu1 %v6748_v61 }
  0x9c   :  { %3893 = vmatprep.subr.bf16.mxu0 %v6753_v62  ;;  %3936 = vmatprep.subr.bf16.mxu1 %v6756_v63 }
  0x9f   :  { %3894 = vmatpush2.bf16.msra.mxu0 %v6751_v1  ;;  %3937 = vmatpush2.bf16.msra.mxu1 %v6754_v2  ;;  %v6766_v1 = vld [vmem:[#allocation4 + $0x6c0] ss:$16 sps:$4 sm:$0xff]   ;;  %v6771_v2 = vld [vmem:[#allocation4 + $0x4a4] ss:$16 sps:$4 sm:$0xff]  }
  0xa0   :  { %3949 = vmatprep.subr.bf16.mxu0 %v6759_v3  ;;  %3992 = vmatprep.subr.bf16.mxu1 %v6762_v4 }
 0x10a   :  { %v411_v11 = vpop.f32.mrf.mxu0  ;;  %v454_v12 = vpop.f32.mrf.mxu1 }
 0x10b   :  { %v412_v25 = vadd.f32 %v411_v11, %v131_v14  ;;  %v455_v29 = vadd.f32 %v454_v12, %v139_v17  ;;  %v6769_v11 = vld [vmem:[#allocation4 + $0x4a0] ss:$16 sps:$4 sm:$0xff]   ;;  %v6774_v12 = vld [vmem:[#allocation4 + $0x6a4] ss:$16 sps:$4 sm:$0xff]  }
 0x10c   :  { %v413_v15 = vpop.f32.mrf.mxu0  ;;  %v456_v18 = vpop.f32.mrf.mxu1 }
 0x10d   :  { %v414_v22 = vadd.f32 %v413_v15, %v135_v13  ;;  %v457_v26 = vadd.f32 %v456_v18, %v143_v16  ;;  %v721_v42 = vmax.f32 %v412_v25, 0.0  ;;  %v723_v48 = vmax.f32 %v455_v29, 0.0  ;;  %v6772_v15 = vld [vmem:[#allocation4 + $0x6a0] ss:$16 sps:$4 sm:$0xff]   ;;  %v6780_v29 = vld [vmem:[#allocation4 + $0x684] ss:$16 sps:$4 sm:$0xff]  }
 0x10e   :  { %v415_v20 = vpop.f32.mrf.mxu0  ;;  %v458_v24 = vpop.f32.mrf.mxu1  ;;  %v146_v18 = vsub.s32 4, %v7856_v6 }
 0x10f   :  { %v416_v23 = vadd.f32 %v415_v20, %v131_v14  ;;  %v459_v27 = vadd.f32 %v458_v24, %v139_v17  ;;  %v722_v37 = vmax.f32 %v414_v22, 0.0  ;;  %v724_v43 = vmax.f32 %v457_v26, 0.0  ;;  %v7922_v26 = vld [vmem:[#allocation9 + $0x8] sm:$0xff] }
 0x110   :  { %v417_v28 = vpop.f32.mrf.mxu0  ;;  %v460_v31 = vpop.f32.mrf.mxu1  ;;  %v154_v24 = vsub.s32 6, %v7856_v6  ;;  %v6945_v6 = vld [vmem:[#allocation4 + $0x904] ss:$16 sps:$4 sm:$0xff]  }
 0x111   :  { %v418_v30 = vadd.f32 %v417_v28, %v135_v13  ;;  %v737_v33 = vmax.f32 %v416_v23, 0.0  ;;  %v461_v34 = vadd.f32 %v460_v31, %v143_v16  ;;  %v739_v38 = vmax.f32 %v459_v27, 0.0  ;;  %v6777_v23 = vld [vmem:[#allocation4 + $0x484] ss:$16 sps:$4 sm:$0xff]   ;;  %v6775_v28 = vld [vmem:[#allocation4 + $0x480] ss:$16 sps:$4 sm:$0xff]  }
 0x112   :  { %v7885_v35 = vpop.f32.mrf.mxu0  ;;  %v7890_v41 = vpop.f32.mrf.mxu1  ;;  %v179_v31 = vrot.slane %v7922_v26, %v146_v18 }
 0x113   :  { %v738_v39 = vmax.f32 %v418_v30, 0.0  ;;  %v740_v44 = vmax.f32 %v461_v34, 0.0  ;;  %v7894_v52 = vpack.c.bf16 %v737_v33, %v721_v42  ;;  %v7900_v56 = vpack.c.bf16 %v739_v38, %v723_v48  ;;  %v6789_v48 = vld [vmem:[#allocation4 + $0x444] ss:$16 sps:$4 sm:$0xff]  }
 0x114   :  { %v499_v47 = vpop.f32.mrf.mxu0  ;;  %v542_v51 = vpop.f32.mrf.mxu1  ;;  %v187_v33 = vrot.slane %v7922_v26, %v154_v24 }
 0x115   :  { %v7892_v49 = vpack.c.bf16 %v738_v39, %v722_v37  ;;  %v500_v50 = vadd.f32 %v499_v47, %v151_v32  ;;  %v7896_v53 = vpack.c.bf16 %v740_v44, %v724_v43  ;;  %v543_v55 = vadd.f32 %v542_v51, %v159_v36  ;;  %v6783_v37 = vld [vmem:[#allocation4 + $0x464] ss:$16 sps:$4 sm:$0xff]   ;;  %v6781_v39 = vld [vmem:[#allocation4 + $0x460] ss:$16 sps:$4 sm:$0xff]  }
 0x116   :  { %v7898_v54 = vpop.f32.mrf.mxu0  ;;  %v7903_v58 = vpop.f32.mrf.mxu1  ;;  %v6784_v47 = vld [vmem:[#allocation4 + $0x660] ss:$16 sps:$4 sm:$0xff]  }
 0x117   :  { %3895 = vmatprep.mubr.bf16.mxu0 %v7892_v49  ;;  %3938 = vmatprep.mubr.bf16.mxu1 %v7896_v53  ;;  %v726_v61 = vmax.f32 %v500_v50, 0.0  ;;  %v728_v3 = vmax.f32 %v543_v55, 0.0  ;;  %v6787_v51 = vld [vmem:[#allocation4 + $0x440] ss:$16 sps:$4 sm:$0xff]   ;;  %v6792_v55 = vld [vmem:[#allocation4 + $0x644] ss:$16 sps:$4 sm:$0xff]  }
 0x118   :  { %3896 = vmatmul.mubr.bf16.vlgmr.msra.gmra.mxu0 %v7894_v52  ;;  %v503_v60 = vpop.f32.mrf.mxu0  ;;  %3939 = vmatmul.mubr.bf16.vlgmr.msra.gmra.mxu1 %v7900_v56  ;;  %v546_v63 = vpop.f32.mrf.mxu1 }
 0x119   :  { %3950 = vmatpush1.bf16.msra.mxu0 %v6757_v40  ;;  %v504_v62 = vadd.f32 %v503_v60, %v151_v32  ;;  %3993 = vmatpush1.bf16.msra.mxu1 %v6760_v45  ;;  %v547_v4 = vadd.f32 %v546_v63, %v159_v36  ;;  %v6778_v36 = vld [vmem:[#allocation4 + $0x680] ss:$16 sps:$4 sm:$0xff]   ;;  %v6786_v40 = vld [vmem:[#allocation4 + $0x664] ss:$16 sps:$4 sm:$0xff]  }
 0x11a   :  { %3951 = vmatprep.subr.bf16.mxu0 %v6765_v46  ;;  %v7908_v5 = vpop.f32.mrf.mxu0  ;;  %3994 = vmatprep.subr.bf16.mxu1 %v6768_v57  ;;  %v7910_v14 = vpop.f32.mrf.mxu1 }
 0x11b   :  { %v742_v13 = vmax.f32 %v504_v62, 0.0  ;;  %v744_v16 = vmax.f32 %v547_v4, 0.0  ;;  %v6793_v4 = vld [vmem:[#allocation4 + $0x420] ss:$16 sps:$4 sm:$0xff]  }
 0x11c   :  { %v7912_v17 = vpop.f32.mrf.mxu0  ;;  %v7917_v22 = vpop.f32.mrf.mxu1 }
 0x11d   :  { %3952 = vmatpush1.bf16.msra.mxu0 %v6763_v59  ;;  %v7915_v20 = vpack.c.bf16 %v742_v13, %v726_v61  ;;  %3995 = vmatpush1.bf16.msra.mxu1 %v6766_v1  ;;  %v7920_v25 = vpack.c.bf16 %v744_v16, %v728_v3  ;;  %v6790_v1 = vld [vmem:[#allocation4 + $0x640] ss:$16 sps:$4 sm:$0xff]   ;;  %v6801_v16 = vld [vmem:[#allocation4 + $0x404] ss:$16 sps:$4 sm:$0xff]  }
 0x11e   :  { %3953 = vmatprep.subr.bf16.mxu0 %v6771_v2  ;;  %v7924_v27 = vpop.f32.mrf.mxu0  ;;  %3996 = vmatprep.subr.bf16.mxu1 %v6774_v12  ;;  %v7927_v30 = vpop.f32.mrf.mxu1  ;;  %v6795_v2 = vld [vmem:[#allocation4 + $0x424] ss:$16 sps:$4 sm:$0xff]  }
 0x11f   :  { %3981 = vmatprep.mubr.bf16.mxu0 %v7915_v20  ;;  %4024 = vmatprep.mubr.bf16.mxu1 %v7920_v25 }
 0x120   :  { %v7933_v32 = vpop.f32.mrf.mxu0  ;;  %v7938_v34 = vpop.f32.mrf.mxu1 }
 0x121   :  { %3954 = vmatpush1.bf16.msra.mxu0 %v6769_v11  ;;  %3997 = vmatpush1.bf16.msra.mxu1 %v6772_v15  ;;  %v6798_v11 = vld [vmem:[#allocation4 + $0x624] ss:$16 sps:$4 sm:$0xff]   ;;  %v6796_v15 = vld [vmem:[#allocation4 + $0x620] ss:$16 sps:$4 sm:$0xff]  }
 0x122   :  { %3955 = vmatprep.subr.bf16.mxu0 %v6777_v23  ;;  %v669_v38 = vpop.f32.mrf.mxu0  ;;  %3998 = vmatprep.subr.bf16.mxu1 %v6780_v29  ;;  %v712_v43 = vpop.f32.mrf.mxu1  ;;  %v6799_v23 = vld [vmem:[#allocation4 + $0x400] ss:$16 sps:$4 sm:$0xff]  }
 0x123   :  { %v670_v42 = vadd.f32 %v669_v38, %v179_v31  ;;  %v713_v45 = vadd.f32 %v712_v43, %v187_v33  ;;  %v6802_v29 = vld [vmem:[#allocation4 + $0x600] ss:$16 sps:$4 sm:$0xff]   ;;  %v6813_v38 = vld [vmem:[#allocation4 + $0x5c4] ss:$16 sps:$4 sm:$0xff]  }
 0x124   :  { %v7940_v44 = vpop.f32.mrf.mxu0  ;;  %v7942_v46 = vpop.f32.mrf.mxu1  ;;  %v6819_v43 = vld [vmem:[#allocation4 + $0x5a4] ss:$16 sps:$4 sm:$0xff]  }
 0x125   :  { %3956 = vmatpush1.bf16.msra.mxu0 %v6775_v28  ;;  %3999 = vmatpush1.bf16.msra.mxu1 %v6778_v36  ;;  %v733_v57 = vmax.f32 %v670_v42, 0.0  ;;  %v735_v61 = vmax.f32 %v713_v45, 0.0  ;;  %v6804_v28 = vld [vmem:[#allocation4 + $0x604] ss:$16 sps:$4 sm:$0xff]   ;;  %v6814_v42 = vld [vmem:[#allocation4 + $0x7c0] ss:$16 sps:$4 sm:$0xff]  }
 0x126   :  { %3957 = vmatprep.subr.bf16.mxu0 %v6783_v37  ;;  %v673_v50 = vpop.f32.mrf.mxu0  ;;  %4000 = vmatprep.subr.bf16.mxu1 %v6786_v40  ;;  %v716_v60 = vpop.f32.mrf.mxu1  ;;  %v6810_v36 = vld [vmem:[#allocation4 + $0x7e4] ss:$16 sps:$4 sm:$0xff]   ;;  %v6808_v37 = vld [vmem:[#allocation4 + $0x7e0] ss:$16 sps:$4 sm:$0xff]  }
 0x127   :  { %v674_v59 = vadd.f32 %v673_v50, %v179_v31  ;;  %v717_v62 = vadd.f32 %v716_v60, %v187_v33  ;;  %v6807_v31 = vld [vmem:[#allocation4 + $0x5e4] ss:$16 sps:$4 sm:$0xff]   ;;  %v6805_v33 = vld [vmem:[#allocation4 + $0x5e0] ss:$16 sps:$4 sm:$0xff]  }
 0x128   :  { %v6816_v40 = vld [vmem:[#allocation4 + $0x7c4] ss:$16 sps:$4 sm:$0xff]   ;;  %v6817_v45 = vld [vmem:[#allocation4 + $0x5a0] ss:$16 sps:$4 sm:$0xff]  }
 0x129   :  { %3958 = vmatpush1.bf16.msra.mxu0 %v6781_v39  ;;  %v749_v63 = vmax.f32 %v674_v59, 0.0  ;;  %4001 = vmatpush1.bf16.msra.mxu1 %v6784_v47  ;;  %v751_v3 = vmax.f32 %v717_v62, 0.0  ;;  %v6811_v39 = vld [vmem:[#allocation4 + $0x5c0] ss:$16 sps:$4 sm:$0xff]   ;;  %v6822_v47 = vld [vmem:[#allocation4 + $0x7a4] ss:$16 sps:$4 sm:$0xff]  }
 0x12a   :  { %3959 = vmatprep.subr.bf16.mxu0 %v6789_v48  ;;  %4002 = vmatprep.subr.bf16.mxu1 %v6792_v55  ;;  %v6820_v48 = vld [vmem:[#allocation4 + $0x7a0] ss:$16 sps:$4 sm:$0xff]   ;;  %v6825_v50 = vld [vmem:[#allocation4 + $0x584] ss:$16 sps:$4 sm:$0xff]  }
 0x12b   :  { %v7944_v12 = vpack.c.bf16 %v749_v63, %v733_v57  ;;  %v7946_v13 = vpack.c.bf16 %v751_v3, %v735_v61  ;;  %v6828_v55 = vld [vmem:[#allocation4 + $0x784] ss:$16 sps:$4 sm:$0xff]   ;;  %v6826_v57 = vld [vmem:[#allocation4 + $0x780] ss:$16 sps:$4 sm:$0xff]   ;;  %v147_v3 = vrot.slane %v7858_v7, %v146_v18 }
 0x12c   :  { %v6831_v59 = vld [vmem:[#allocation4 + $0x564] ss:$16 sps:$4 sm:$0xff]   ;;  %v6829_v60 = vld [vmem:[#allocation4 + $0x560] ss:$16 sps:$4 sm:$0xff]  }
 0x12d   :  { %3960 = vmatpush1.bf16.msra.mxu0 %v6787_v51  ;;  %4003 = vmatpush1.bf16.msra.mxu1 %v6790_v1  ;;  %v6823_v51 = vld [vmem:[#allocation4 + $0x580] ss:$16 sps:$4 sm:$0xff]   ;;  %v6834_v61 = vld [vmem:[#allocation4 + $0x764] ss:$16 sps:$4 sm:$0xff]   ;;  %v498_v18 = vadd.f32 %v7885_v35, %v147_v3 }
 0x12e   :  { %3961 = vmatprep.subr.bf16.mxu0 %v6795_v2  ;;  %4004 = vmatprep.subr.bf16.mxu1 %v6798_v11  ;;  %v6832_v62 = vld [vmem:[#allocation4 + $0x760] ss:$16 sps:$4 sm:$0xff]   ;;  %v6837_v63 = vld [vmem:[#allocation4 + $0x544] ss:$16 sps:$4 sm:$0xff]  }
 0x12f   :  { %v6835_v1 = vld [vmem:[#allocation4 + $0x540] ss:$16 sps:$4 sm:$0xff]   ;;  %v6840_v2 = vld [vmem:[#allocation4 + $0x744] ss:$16 sps:$4 sm:$0xff]  }
 0x130   :  { %v6843_v11 = vld [vmem:[#allocation4 + $0x524] ss:$16 sps:$4 sm:$0xff]  }
 0x131   :  { %3962 = vmatpush1.bf16.msra.mxu0 %v6793_v4  ;;  %4005 = vmatpush1.bf16.msra.mxu1 %v6796_v15  ;;  %v6838_v4 = vld [vmem:[#allocation4 + $0x740] ss:$16 sps:$4 sm:$0xff]   ;;  %v155_v15 = vrot.slane %v7858_v7, %v154_v24 }
 0x132   :  { %3963 = vmatprep.subr.bf16.mxu0 %v6801_v16  ;;  %4006 = vmatprep.subr.bf16.mxu1 %v6804_v28  ;;  %v6841_v16 = vld [vmem:[#allocation4 + $0x520] ss:$16 sps:$4 sm:$0xff]   ;;  %v167_v28 = vrot.slane %v7922_v26, %v7861_v8 }
 0x133   :  { %v541_v7 = vadd.f32 %v7890_v41, %v155_v15  ;;  %v545_v24 = vadd.f32 %v7903_v58, %v155_v15  ;;  %v6855_v41 = vld [vmem:[#allocation4 + $0x8e4] ss:$16 sps:$4 sm:$0xff]  }
 0x134   :  { %v6873_v15 = vld [vmem:[#allocation4 + $0x884] ss:$16 sps:$4 sm:$0xff]  }
 0x135   :  { %3964 = vmatpush1.bf16.msra.mxu0 %v6799_v23  ;;  %4007 = vmatpush1.bf16.msra.mxu1 %v6802_v29  ;;  %v6846_v23 = vld [vmem:[#allocation4 + $0x724] ss:$16 sps:$4 sm:$0xff]   ;;  %v175_v29 = vrot.slane %v7922_v26, %v7867_v10  ;;  %v727_v58 = vmax.f32 %v541_v7, 0.0  ;;  %v6883_v7 = vld [vmem:[#allocation4 + $0x840] ss:$16 sps:$4 sm:$0xff]  }
 0x136   :  { %3965 = vmatprep.subr.bf16.mxu0 %v6807_v31  ;;  %4008 = vmatprep.subr.bf16.mxu1 %v6810_v36  ;;  %v502_v31 = vadd.f32 %v7898_v54, %v147_v3  ;;  %v6849_v36 = vld [vmem:[#allocation4 + $0x504] ss:$16 sps:$4 sm:$0xff]  }
 0x137   :  { %v629_v35 = vadd.f32 %v7917_v22, %v175_v29  ;;  %v633_v54 = vadd.f32 %v7938_v34, %v175_v29  ;;  %v6870_v3 = vld [vmem:[#allocation4 + $0xaa4] ss:$16 sps:$4 sm:$0xff]  }
 0x138   :  { %v6879_v29 = vld [vmem:[#allocation4 + $0x864] ss:$16 sps:$4 sm:$0xff]  }
 0x139   :  { %3966 = vmatpush2.bf16.msra.mxu0 %v6805_v33  ;;  %4009 = vmatpush2.bf16.msra.mxu1 %v6808_v37  ;;  %v6844_v33 = vld [vmem:[#allocation4 + $0x720] ss:$16 sps:$4 sm:$0xff]  }
 0x13a   :  { %3967 = vmatprep.subr.bf16.mxu0 %v6813_v38  ;;  %4010 = vmatprep.subr.bf16.mxu1 %v6816_v40  ;;  %v6847_v37 = vld [vmem:[#allocation4 + $0x500] ss:$16 sps:$4 sm:$0xff]   ;;  %v6852_v38 = vld [vmem:[#allocation4 + $0x704] ss:$16 sps:$4 sm:$0xff]   ;;  %v590_v40 = vadd.f32 %v7933_v32, %v167_v28 }
 0x13b   :  { %v6861_v32 = vld [vmem:[#allocation4 + $0x8c4] ss:$16 sps:$4 sm:$0xff]  }
 0x13d   :  { %3968 = vmatpush2.bf16.msra.mxu0 %v6811_v39  ;;  %4011 = vmatpush2.bf16.msra.mxu1 %v6814_v42  ;;  %v586_v39 = vadd.f32 %v7912_v17, %v167_v28  ;;  %v6850_v42 = vld [vmem:[#allocation4 + $0x700] ss:$16 sps:$4 sm:$0xff]   ;;  %v746_v17 = vmax.f32 %v590_v40, 0.0  ;;  %v6894_v40 = vld [vmem:[#allocation4 + $0xa24] ss:$16 sps:$4 sm:$0xff]  }
 0x13e   :  { %3969 = vmatprep.subr.bf16.mxu0 %v6819_v43  ;;  %4012 = vmatprep.subr.bf16.mxu1 %v6822_v47  ;;  %v725_v43 = vmax.f32 %v498_v18, 0.0  ;;  %v6858_v47 = vld [vmem:[#allocation4 + $0xae4] ss:$16 sps:$4 sm:$0xff]   ;;  %v6874_v28 = vld [vmem:[#allocation4 + $0xa80] ss:$16 sps:$4 sm:$0xff]  }
 0x13f   :  { %v6877_v18 = vld [vmem:[#allocation4 + $0x860] ss:$16 sps:$4 sm:$0xff]  }
 0x141   :  { %3970 = vmatpush2.bf16.msra.mxu0 %v6817_v45  ;;  %4013 = vmatpush2.bf16.msra.mxu1 %v6820_v48  ;;  %v741_v45 = vmax.f32 %v502_v31, 0.0  ;;  %v743_v48 = vmax.f32 %v545_v24, 0.0  ;;  %v6882_v31 = vld [vmem:[#allocation4 + $0xa64] ss:$16 sps:$4 sm:$0xff]  }
 0x142   :  { %3971 = vmatprep.subr.bf16.mxu0 %v6825_v50  ;;  %4014 = vmatprep.subr.bf16.mxu1 %v6828_v55  ;;  %v6853_v50 = vld [vmem:[#allocation4 + $0x8e0] ss:$16 sps:$4 sm:$0xff]   ;;  %v6888_v24 = vld [vmem:[#allocation4 + $0xa44] ss:$16 sps:$4 sm:$0xff]  }
 0x143   :  { %v6856_v55 = vld [vmem:[#allocation4 + $0xae0] ss:$16 sps:$4 sm:$0xff]   ;;  %v7966_v22 = vpack.c.bf16 %v741_v45, %v725_v43  ;;  %v7968_v34 = vpack.c.bf16 %v743_v48, %v727_v58  ;;  %v6900_v43 = vld [vmem:[#allocation4 + $0xa04] ss:$16 sps:$4 sm:$0xff]  }
 0x144   :  { %v6898_v45 = vld [vmem:[#allocation4 + $0xa00] ss:$16 sps:$4 sm:$0xff]   ;;  %v6906_v58 = vld [vmem:[#allocation4 + $0xbe4] ss:$16 sps:$4 sm:$0xff]  }
 0x145   :  { %3972 = vmatpush2.bf16.msra.mxu0 %v6823_v51  ;;  %4015 = vmatpush2.bf16.msra.mxu1 %v6826_v57  ;;  %v730_v51 = vmax.f32 %v586_v39, 0.0  ;;  %v732_v57 = vmax.f32 %v629_v35, 0.0  ;;  %v6889_v39 = vld [vmem:[#allocation4 + $0x820] ss:$16 sps:$4 sm:$0xff]   ;;  %v6897_v35 = vld [vmem:[#allocation4 + $0x804] ss:$16 sps:$4 sm:$0xff]  }
 0x146   :  { %3973 = vmatprep.subr.bf16.mxu0 %v6831_v59  ;;  %4016 = vmatprep.subr.bf16.mxu1 %v6834_v61  ;;  %v748_v59 = vmax.f32 %v633_v54, 0.0  ;;  %v6895_v54 = vld [vmem:[#allocation4 + $0x800] ss:$16 sps:$4 sm:$0xff]  }
 0x147   :  { %v7970_v61 = vpack.c.bf16 %v746_v17, %v730_v51  ;;  %v6904_v48 = vld [vmem:[#allocation4 + $0xbe0] ss:$16 sps:$4 sm:$0xff]   ;;  %v6912_v17 = vld [vmem:[#allocation4 + $0xbc4] ss:$16 sps:$4 sm:$0xff]  }
 0x148   :  { %v6907_v51 = vld [vmem:[#allocation4 + $0x9c0] ss:$16 sps:$4 sm:$0xff]  }
 0x149   :  { %3974 = vmatpush2.bf16.msra.mxu0 %v6829_v60  ;;  %4017 = vmatpush2.bf16.msra.mxu1 %v6832_v62  ;;  %v6864_v60 = vld [vmem:[#allocation4 + $0xac4] ss:$16 sps:$4 sm:$0xff]   ;;  %v6859_v62 = vld [vmem:[#allocation4 + $0x8c0] ss:$16 sps:$4 sm:$0xff]  }
 0x14a   :  { %3975 = vmatprep.subr.bf16.mxu0 %v6837_v63  ;;  %4018 = vmatprep.subr.bf16.mxu1 %v6840_v2  ;;  %v6862_v63 = vld [vmem:[#allocation4 + $0xac0] ss:$16 sps:$4 sm:$0xff]   ;;  %v7973_v2 = vpack.c.bf16 %v748_v59, %v732_v57  ;;  %v6918_v59 = vld [vmem:[#allocation4 + $0xba4] ss:$16 sps:$4 sm:$0xff]  }
 0x14b   :  { %v6913_v57 = vld [vmem:[#allocation4 + $0x9a0] ss:$16 sps:$4 sm:$0xff]  }
 0x14d   :  { %3976 = vmatpush2.bf16.msra.mxu0 %v6835_v1  ;;  %4019 = vmatpush2.bf16.msra.mxu1 %v6838_v4  ;;  %v6867_v1 = vld [vmem:[#allocation4 + $0x8a4] ss:$16 sps:$4 sm:$0xff]   ;;  %v6865_v4 = vld [vmem:[#allocation4 + $0x8a0] ss:$16 sps:$4 sm:$0xff]  }
 0x14e   :  { %3977 = vmatprep.subr.bf16.mxu0 %v6843_v11  ;;  %4020 = vmatprep.subr.bf16.mxu1 %v6846_v23  ;;  %v6868_v11 = vld [vmem:[#allocation4 + $0xaa0] ss:$16 sps:$4 sm:$0xff]  }
 0x14f   :  { %v6871_v23 = vld [vmem:[#allocation4 + $0x880] ss:$16 sps:$4 sm:$0xff]  }
 0x151   :  { %3978 = vmatpush2.bf16.msra.mxu0 %v6841_v16  ;;  %4021 = vmatpush2.bf16.msra.mxu1 %v6844_v33  ;;  %v6876_v16 = vld [vmem:[#allocation4 + $0xa84] ss:$16 sps:$4 sm:$0xff]   ;;  %v6880_v33 = vld [vmem:[#allocation4 + $0xa60] ss:$16 sps:$4 sm:$0xff]  }
 0x152   :  { %3979 = vmatprep.subr.bf16.mxu0 %v6849_v36  ;;  %4022 = vmatprep.subr.bf16.mxu1 %v6852_v38  ;;  %v6885_v36 = vld [vmem:[#allocation4 + $0x844] ss:$16 sps:$4 sm:$0xff]  }
 0x153   :  { %v6891_v38 = vld [vmem:[#allocation4 + $0x824] ss:$16 sps:$4 sm:$0xff]  }
 0x155   :  { %3980 = vmatpush2.bf16.msra.mxu0 %v6847_v37  ;;  %4023 = vmatpush2.bf16.msra.mxu1 %v6850_v42  ;;  %v6886_v37 = vld [vmem:[#allocation4 + $0xa40] ss:$16 sps:$4 sm:$0xff]  }
 0x156   :  { %4035 = vmatprep.subr.bf16.mxu0 %v6855_v41  ;;  %4078 = vmatprep.subr.bf16.mxu1 %v6858_v47  ;;  %v6892_v42 = vld [vmem:[#allocation4 + $0xa20] ss:$16 sps:$4 sm:$0xff]   ;;  %v6903_v41 = vld [vmem:[#allocation4 + $0x9e4] ss:$16 sps:$4 sm:$0xff]  }
 0x157   :  { %v6901_v47 = vld [vmem:[#allocation4 + $0x9e0] ss:$16 sps:$4 sm:$0xff]  }
 0x158   :  { %3982 = vmatmul.mubr.bf16.vlgmr.msra.gmra.mxu0 %v7966_v22  ;;  %4025 = vmatmul.mubr.bf16.vlgmr.msra.gmra.mxu1 %v7968_v34 }
 0x159   :  { %4036 = vmatpush1.bf16.msra.mxu0 %v6853_v50  ;;  %4079 = vmatpush1.bf16.msra.mxu1 %v6856_v55  ;;  %v6909_v50 = vld [vmem:[#allocation4 + $0x9c4] ss:$16 sps:$4 sm:$0xff]   ;;  %v6910_v55 = vld [vmem:[#allocation4 + $0xbc0] ss:$16 sps:$4 sm:$0xff]  }
 0x15a   :  { %4037 = vmatprep.subr.bf16.mxu0 %v6861_v32  ;;  %4080 = vmatprep.subr.bf16.mxu1 %v6864_v60  ;;  %v6915_v32 = vld [vmem:[#allocation4 + $0x9a4] ss:$16 sps:$4 sm:$0xff]   ;;  %v6916_v60 = vld [vmem:[#allocation4 + $0xba0] ss:$16 sps:$4 sm:$0xff]  }
 0x15b   :  { %4067 = vmatprep.mubr.bf16.mxu0 %v7970_v61  ;;  %4110 = vmatprep.mubr.bf16.mxu1 %v7973_v2 }
 0x15d   :  { %4038 = vmatpush1.bf16.msra.mxu0 %v6859_v62  ;;  %4081 = vmatpush1.bf16.msra.mxu1 %v6862_v63  ;;  %v6921_v62 = vld [vmem:[#allocation4 + $0x984] ss:$16 sps:$4 sm:$0xff]   ;;  %v6919_v63 = vld [vmem:[#allocation4 + $0x980] ss:$16 sps:$4 sm:$0xff]  }
 0x15e   :  { %4039 = vmatprep.subr.bf16.mxu0 %v6867_v1  ;;  %4082 = vmatprep.subr.bf16.mxu1 %v6870_v3  ;;  %v6924_v1 = vld [vmem:[#allocation4 + $0xb84] ss:$16 sps:$4 sm:$0xff]   ;;  %v6922_v3 = vld [vmem:[#allocation4 + $0xb80] ss:$16 sps:$4 sm:$0xff]  }
 0x161   :  { %4040 = vmatpush1.bf16.msra.mxu0 %v6865_v4  ;;  %4083 = vmatpush1.bf16.msra.mxu1 %v6868_v11  ;;  %v6927_v4 = vld [vmem:[#allocation4 + $0x964] ss:$16 sps:$4 sm:$0xff]   ;;  %v6925_v11 = vld [vmem:[#allocation4 + $0x960] ss:$16 sps:$4 sm:$0xff]  }
 0x162   :  { %4041 = vmatprep.subr.bf16.mxu0 %v6873_v15  ;;  %4084 = vmatprep.subr.bf16.mxu1 %v6876_v16  ;;  %v6930_v15 = vld [vmem:[#allocation4 + $0xb64] ss:$16 sps:$4 sm:$0xff]   ;;  %v6928_v16 = vld [vmem:[#allocation4 + $0xb60] ss:$16 sps:$4 sm:$0xff]  }
 0x165   :  { %4042 = vmatpush1.bf16.msra.mxu0 %v6871_v23  ;;  %4085 = vmatpush1.bf16.msra.mxu1 %v6874_v28  ;;  %v6933_v23 = vld [vmem:[#allocation4 + $0x944] ss:$16 sps:$4 sm:$0xff]   ;;  %v163_v28 = vrot.slane %v7922_v26, %v7864_v9 }
 0x166   :  { %4043 = vmatprep.subr.bf16.mxu0 %v6879_v29  ;;  %4086 = vmatprep.subr.bf16.mxu1 %v6882_v31  ;;  %v171_v29 = vrot.slane %v7922_v26, %v7870_v0  ;;  %v6936_v31 = vld [vmem:[#allocation4 + $0xb44] ss:$16 sps:$4 sm:$0xff]  }
 0x169   :  { %4044 = vmatpush1.bf16.msra.mxu0 %v6877_v18  ;;  %4087 = vmatpush1.bf16.msra.mxu1 %v6880_v33  ;;  %v6931_v18 = vld [vmem:[#allocation4 + $0x940] ss:$16 sps:$4 sm:$0xff]  }
 0x16a   :  { %4045 = vmatprep.subr.bf16.mxu0 %v6885_v36  ;;  %4088 = vmatprep.subr.bf16.mxu1 %v6888_v24  ;;  %v6934_v33 = vld [vmem:[#allocation4 + $0xb40] ss:$16 sps:$4 sm:$0xff]   ;;  %v6939_v36 = vld [vmem:[#allocation4 + $0x924] ss:$16 sps:$4 sm:$0xff]   ;;  %v191_v24 = vrot.slane %v7922_v26, %v158_v21 }
 0x16d   :  { %4046 = vmatpush1.bf16.msra.mxu0 %v6883_v7  ;;  %4089 = vmatpush1.bf16.msra.mxu1 %v6886_v37  ;;  %v183_v7 = vrot.slane %v7922_v26, %v150_v19  ;;  %v584_v37 = vadd.f32 %v7908_v5, %v163_v28  ;;  %v6940_v19 = vld [vmem:[#allocation4 + $0xb20] ss:$16 sps:$4 sm:$0xff]   ;;  %v715_v5 = vadd.f32 %v7942_v46, %v191_v24 }
 0x16e   :  { %4047 = vmatprep.subr.bf16.mxu0 %v6891_v38  ;;  %4090 = vmatprep.subr.bf16.mxu1 %v6894_v40  ;;  %v627_v38 = vadd.f32 %v7910_v14, %v171_v29  ;;  %v6942_v40 = vld [vmem:[#allocation4 + $0xb24] ss:$16 sps:$4 sm:$0xff]  }
 0x16f   :  { %v672_v21 = vadd.f32 %v7940_v44, %v183_v7  ;;  %v729_v14 = vmax.f32 %v584_v37, 0.0  ;;  %v6949_v44 = vld [vmem:[#allocation4 + $0xce0] ss:$16 sps:$4 sm:$0xff]  }
 0x170   :  { %v731_v26 = vmax.f32 %v627_v38, 0.0  ;;  %v6976_v37 = vld [vmem:[#allocation4 + $0xe60] ss:$16 sps:$4 sm:$0xff]   ;;  %v6981_v38 = vld [vmem:[#allocation4 + $0xc44] ss:$16 sps:$4 sm:$0xff]  }
 0x171   :  { %4048 = vmatpush1.bf16.msra.mxu0 %v6889_v39  ;;  %4091 = vmatpush1.bf16.msra.mxu1 %v6892_v42  ;;  %v6937_v39 = vld [vmem:[#allocation4 + $0x920] ss:$16 sps:$4 sm:$0xff]   ;;  %v675_v42 = vpop.f32.mrf.mxu0 }
 0x172   :  { %4049 = vmatprep.subr.bf16.mxu0 %v6897_v35  ;;  %4092 = vmatprep.subr.bf16.mxu1 %v6900_v43  ;;  %v718_v35 = vpop.f32.mrf.mxu1  ;;  %v631_v43 = vadd.f32 %v7927_v30, %v171_v29  ;;  %v6969_v29 = vld [vmem:[#allocation4 + $0xc84] ss:$16 sps:$4 sm:$0xff]  }
 0x174   :  { %v747_v30 = vmax.f32 %v631_v43, 0.0  ;;  %v6985_v43 = vld [vmem:[#allocation4 + $0xc20] ss:$16 sps:$4 sm:$0xff]  }
 0x175   :  { %4050 = vmatpush1.bf16.msra.mxu0 %v6895_v54  ;;  %4093 = vmatpush1.bf16.msra.mxu1 %v6898_v45  ;;  %v588_v54 = vadd.f32 %v7924_v27, %v163_v28  ;;  %v6948_v45 = vld [vmem:[#allocation4 + $0xb04] ss:$16 sps:$4 sm:$0xff]   ;;  %v6964_v28 = vld [vmem:[#allocation4 + $0xea0] ss:$16 sps:$4 sm:$0xff]  }
 0x176   :  { %4051 = vmatprep.subr.bf16.mxu0 %v6903_v41  ;;  %4094 = vmatprep.subr.bf16.mxu1 %v6906_v58  ;;  %v6943_v41 = vld [vmem:[#allocation4 + $0x900] ss:$16 sps:$4 sm:$0xff]   ;;  %v719_v58 = vadd.f32 %v718_v35, %v191_v24  ;;  %v6951_v27 = vld [vmem:[#allocation4 + $0xce4] ss:$16 sps:$4 sm:$0xff]  }
 0x177   :  { %v6978_v24 = vld [vmem:[#allocation4 + $0xe64] ss:$16 sps:$4 sm:$0xff]  }
 0x178   :  { %v752_v46 = vmax.f32 %v719_v58, 0.0  ;;  %v6987_v35 = vld [vmem:[#allocation4 + $0xc24] ss:$16 sps:$4 sm:$0xff]  }
 0x179   :  { %4052 = vmatpush2.bf16.msra.mxu0 %v6901_v47  ;;  %4095 = vmatpush2.bf16.msra.mxu1 %v6904_v48  ;;  %v676_v47 = vadd.f32 %v675_v42, %v183_v7  ;;  %v6946_v48 = vld [vmem:[#allocation4 + $0xb00] ss:$16 sps:$4 sm:$0xff]   ;;  %v7005_v58 = vld [vmem:[#allocation4 + $0xdc4] ss:$16 sps:$4 sm:$0xff]  }
 0x17a   :  { %4053 = vmatprep.subr.bf16.mxu0 %v6909_v50  ;;  %4096 = vmatprep.subr.bf16.mxu1 %v6912_v17  ;;  %v745_v50 = vmax.f32 %v588_v54, 0.0  ;;  %v736_v17 = vmax.f32 %v715_v5, 0.0  ;;  %v6973_v7 = vld [vmem:[#allocation4 + $0xc60] ss:$16 sps:$4 sm:$0xff]   ;;  %v6990_v54 = vld [vmem:[#allocation4 + $0xe24] ss:$16 sps:$4 sm:$0xff]  }
 0x17b   :  { %v6982_v42 = vld [vmem:[#allocation4 + $0xe40] ss:$16 sps:$4 sm:$0xff]  }
 0x17c   :  { %v6994_v5 = vld [vmem:[#allocation4 + $0xe00] ss:$16 sps:$4 sm:$0xff]  }
 0x17d   :  { %4054 = vmatpush2.bf16.msra.mxu0 %v6907_v51  ;;  %4097 = vmatpush2.bf16.msra.mxu1 %v6910_v55  ;;  %v734_v51 = vmax.f32 %v672_v21, 0.0  ;;  %v6954_v55 = vld [vmem:[#allocation4 + $0xee4] ss:$16 sps:$4 sm:$0xff]   ;;  %v6991_v21 = vld [vmem:[#allocation4 + $0xc00] ss:$16 sps:$4 sm:$0xff]  }
 0x17e   :  { %4055 = vmatprep.subr.bf16.mxu0 %v6915_v32  ;;  %4098 = vmatprep.subr.bf16.mxu1 %v6918_v59  ;;  %v750_v32 = vmax.f32 %v676_v47, 0.0  ;;  %v6957_v59 = vld [vmem:[#allocation4 + $0xcc4] ss:$16 sps:$4 sm:$0xff]   ;;  %v7000_v47 = vld [vmem:[#allocation4 + $0xfe0] ss:$16 sps:$4 sm:$0xff]  }
 0x181   :  { %4056 = vmatpush2.bf16.msra.mxu0 %v6913_v57  ;;  %4099 = vmatpush2.bf16.msra.mxu1 %v6916_v60  ;;  %v6952_v57 = vld [vmem:[#allocation4 + $0xee0] ss:$16 sps:$4 sm:$0xff]   ;;  %v6960_v60 = vld [vmem:[#allocation4 + $0xec4] ss:$16 sps:$4 sm:$0xff]  }
 0x182   :  { %4057 = vmatprep.subr.bf16.mxu0 %v6921_v62  ;;  %4100 = vmatprep.subr.bf16.mxu1 %v6924_v1  ;;  %v7994_v62 = vpack.c.bf16 %v745_v50, %v729_v14  ;;  %v7998_v1 = vpack.c.bf16 %v750_v32, %v734_v51  ;;  %v6999_v14 = vld [vmem:[#allocation4 + $0xde4] ss:$16 sps:$4 sm:$0xff]   ;;  %v7006_v50 = vld [vmem:[#allocation4 + $0xfc0] ss:$16 sps:$4 sm:$0xff]  }
 0x183   :  { %v7014_v51 = vld [vmem:[#allocation4 + $0xfa4] ss:$16 sps:$4 sm:$0xff]  }
 0x184   :  { %v7020_v32 = vld [vmem:[#allocation4 + $0xf84] ss:$16 sps:$4 sm:$0xff]  }
 0x185   :  { %4058 = vmatpush2.bf16.msra.mxu0 %v6919_v63  ;;  %4101 = vmatpush2.bf16.msra.mxu1 %v6922_v3  ;;  %v7996_v63 = vpack.c.bf16 %v747_v30, %v731_v26  ;;  %v8001_v3 = vpack.c.bf16 %v752_v46, %v736_v17  ;;  %v7002_v26 = vld [vmem:[#allocation4 + $0xfe4] ss:$16 sps:$4 sm:$0xff]   ;;  %v7009_v17 = vld [vmem:[#allocation4 + $0xda0] ss:$16 sps:$4 sm:$0xff]  }
 0x186   :  { %4059 = vmatprep.subr.bf16.mxu0 %v6927_v4  ;;  %4102 = vmatprep.subr.bf16.mxu1 %v6930_v15  ;;  %v6955_v4 = vld [vmem:[#allocation4 + $0xcc0] ss:$16 sps:$4 sm:$0xff]   ;;  %v6963_v15 = vld [vmem:[#allocation4 + $0xca4] ss:$16 sps:$4 sm:$0xff]  }
 0x187   :  { %v7011_v30 = vld [vmem:[#allocation4 + $0xda4] ss:$16 sps:$4 sm:$0xff]   ;;  %v7015_v46 = vld [vmem:[#allocation4 + $0xd80] ss:$16 sps:$4 sm:$0xff]  }
 0x189   :  { %4060 = vmatpush2.bf16.msra.mxu0 %v6925_v11  ;;  %4103 = vmatpush2.bf16.msra.mxu1 %v6928_v16  ;;  %v6958_v11 = vld [vmem:[#allocation4 + $0xec0] ss:$16 sps:$4 sm:$0xff]   ;;  %v6966_v16 = vld [vmem:[#allocation4 + $0xea4] ss:$16 sps:$4 sm:$0xff]  }
 0x18a   :  { %4061 = vmatprep.subr.bf16.mxu0 %v6933_v23  ;;  %4104 = vmatprep.subr.bf16.mxu1 %v6936_v31  ;;  %v6961_v23 = vld [vmem:[#allocation4 + $0xca0] ss:$16 sps:$4 sm:$0xff]  }
 0x18b   :  { %v6967_v31 = vld [vmem:[#allocation4 + $0xc80] ss:$16 sps:$4 sm:$0xff]  }
 0x18d   :  { %4062 = vmatpush2.bf16.msra.mxu0 %v6931_v18  ;;  %4105 = vmatpush2.bf16.msra.mxu1 %v6934_v33  ;;  %v6972_v18 = vld [vmem:[#allocation4 + $0xe84] ss:$16 sps:$4 sm:$0xff]   ;;  %v6970_v33 = vld [vmem:[#allocation4 + $0xe80] ss:$16 sps:$4 sm:$0xff]  }
 0x18e   :  { %4063 = vmatprep.subr.bf16.mxu0 %v6939_v36  ;;  %4106 = vmatprep.subr.bf16.mxu1 %v6942_v40  ;;  %v6975_v36 = vld [vmem:[#allocation4 + $0xc64] ss:$16 sps:$4 sm:$0xff]   ;;  %v6979_v40 = vld [vmem:[#allocation4 + $0xc40] ss:$16 sps:$4 sm:$0xff]  }
 0x191   :  { %4064 = vmatpush2.bf16.msra.mxu0 %v6937_v39  ;;  %4107 = vmatpush2.bf16.msra.mxu1 %v6940_v19  ;;  %v6984_v39 = vld [vmem:[#allocation4 + $0xe44] ss:$16 sps:$4 sm:$0xff]   ;;  %v6988_v19 = vld [vmem:[#allocation4 + $0xe20] ss:$16 sps:$4 sm:$0xff]  }
 0x192   :  { %4065 = vmatprep.subr.bf16.mxu0 %v6945_v6  ;;  %4108 = vmatprep.subr.bf16.mxu1 %v6948_v45  ;;  %v6993_v6 = vld [vmem:[#allocation4 + $0xc04] ss:$16 sps:$4 sm:$0xff]  }
 0x193   :  { %v6996_v45 = vld [vmem:[#allocation4 + $0xe04] ss:$16 sps:$4 sm:$0xff]  }
 0x195   :  { %4066 = vmatpush2.bf16.msra.mxu0 %v6943_v41  ;;  %4109 = vmatpush2.bf16.msra.mxu1 %v6946_v48  ;;  %v6997_v41 = vld [vmem:[#allocation4 + $0xde0] ss:$16 sps:$4 sm:$0xff]   ;;  %v7008_v48 = vld [vmem:[#allocation4 + $0xfc4] ss:$16 sps:$4 sm:$0xff]  }
 0x196   :  { %4121 = vmatprep.subr.bf16.mxu0 %v6951_v27  ;;  %4164 = vmatprep.subr.bf16.mxu1 %v6954_v55  ;;  %v7003_v27 = vld [vmem:[#allocation4 + $0xdc0] ss:$16 sps:$4 sm:$0xff]  }
 0x197   :  { %v7012_v55 = vld [vmem:[#allocation4 + $0xfa0] ss:$16 sps:$4 sm:$0xff]  }
 0x198   :  { %4068 = vmatmul.mubr.bf16.vlgmr.msra.gmra.mxu0 %v7994_v62  ;;  %4111 = vmatmul.mubr.bf16.vlgmr.msra.gmra.mxu1 %v7996_v63 }
 0x199   :  { %4122 = vmatpush1.bf16.msra.mxu0 %v6949_v44  ;;  %4165 = vmatpush1.bf16.msra.mxu1 %v6952_v57  ;;  %v7017_v44 = vld [vmem:[#allocation4 + $0xd84] ss:$16 sps:$4 sm:$0xff]   ;;  %v7018_v57 = vld [vmem:[#allocation4 + $0xf80] ss:$16 sps:$4 sm:$0xff]  }
 0x19a   :  { %4123 = vmatprep.subr.bf16.mxu0 %v6957_v59  ;;  %4166 = vmatprep.subr.bf16.mxu1 %v6960_v60  ;;  %v7023_v59 = vld [vmem:[#allocation4 + $0xd64] ss:$16 sps:$4 sm:$0xff]  }
 0x19b   :  { %4153 = vmatprep.mubr.bf16.mxu0 %v7998_v1  ;;  %4196 = vmatprep.mubr.bf16.mxu1 %v8001_v3  ;;  %v7026_v60 = vld [vmem:[#allocation4 + $0xf64] ss:$16 sps:$4 sm:$0xff]  }
 0x19d   :  { %4124 = vmatpush1.bf16.msra.mxu0 %v6955_v4  ;;  %4167 = vmatpush1.bf16.msra.mxu1 %v6958_v11  ;;  %v7021_v4 = vld [vmem:[#allocation4 + $0xd60] ss:$16 sps:$4 sm:$0xff]  }
 0x19e   :  { %4125 = vmatprep.subr.bf16.mxu0 %v6963_v15  ;;  %4168 = vmatprep.subr.bf16.mxu1 %v6966_v16  ;;  %v7024_v11 = vld [vmem:[#allocation4 + $0xf60] ss:$16 sps:$4 sm:$0xff]   ;;  %v7029_v15 = vld [vmem:[#allocation4 + $0xd44] ss:$16 sps:$4 sm:$0xff]  }
 0x19f   :  { %v7032_v16 = vld [vmem:[#allocation4 + $0xf44] ss:$16 sps:$4 sm:$0xff]  }
 0x1a1   :  { %4126 = vmatpush1.bf16.msra.mxu0 %v6961_v23  ;;  %4169 = vmatpush1.bf16.msra.mxu1 %v6964_v28  ;;  %v7027_v23 = vld [vmem:[#allocation4 + $0xd40] ss:$16 sps:$4 sm:$0xff]  }
 0x1a2   :  { %4127 = vmatprep.subr.bf16.mxu0 %v6969_v29  ;;  %4170 = vmatprep.subr.bf16.mxu1 %v6972_v18  ;;  %v7030_v28 = vld [vmem:[#allocation4 + $0xf40] ss:$16 sps:$4 sm:$0xff]   ;;  %v7035_v29 = vld [vmem:[#allocation4 + $0xd24] ss:$16 sps:$4 sm:$0xff]  }
 0x1a3   :  { %v7038_v18 = vld [vmem:[#allocation4 + $0xf24] ss:$16 sps:$4 sm:$0xff]  }
 0x1a5   :  { %4128 = vmatpush1.bf16.msra.mxu0 %v6967_v31  ;;  %4171 = vmatpush1.bf16.msra.mxu1 %v6970_v33  ;;  %v7033_v31 = vld [vmem:[#allocation4 + $0xd20] ss:$16 sps:$4 sm:$0xff]  }
 0x1a6   :  { %4129 = vmatprep.subr.bf16.mxu0 %v6975_v36  ;;  %4172 = vmatprep.subr.bf16.mxu1 %v6978_v24  ;;  %v7036_v33 = vld [vmem:[#allocation4 + $0xf20] ss:$16 sps:$4 sm:$0xff]   ;;  %v7041_v36 = vld [vmem:[#allocation4 + $0xd04] ss:$16 sps:$4 sm:$0xff]  }
 0x1a7   :  { %v7039_v24 = vld [vmem:[#allocation4 + $0xd00] ss:$16 sps:$4 sm:$0xff]  }
 0x1a9   :  { %4130 = vmatpush1.bf16.msra.mxu0 %v6973_v7  ;;  %4173 = vmatpush1.bf16.msra.mxu1 %v6976_v37  ;;  %v7044_v7 = vld [vmem:[#allocation4 + $0xf04] ss:$16 sps:$4 sm:$0xff]   ;;  %v7042_v37 = vld [vmem:[#allocation4 + $0xf00] ss:$16 sps:$4 sm:$0xff]  }
 0x1aa   :  { %4131 = vmatprep.subr.bf16.mxu0 %v6981_v38  ;;  %4174 = vmatprep.subr.bf16.mxu1 %v6984_v39  ;;  %v7047_v38 = vld [vmem:[#allocation4 + $0xec] ss:$16 sps:$4 sm:$0xff]   ;;  %v1281_v39 = vld [vmem:[#allocation9 + $0x10] sm:$0xf] }
 0x1ad   :  { %4132 = vmatpush1.bf16.msra.mxu0 %v6979_v40  ;;  %4175 = vmatpush1.bf16.msra.mxu1 %v6982_v42  ;;  %v7050_v40 = vld [vmem:[#allocation4 + $0x2ec] ss:$16 sps:$4 sm:$0xff]   ;;  %v7045_v42 = vld [vmem:[#allocation4 + $0xe8] ss:$16 sps:$4 sm:$0xff]  }
 0x1ae   :  { %4133 = vmatprep.subr.bf16.mxu0 %v6987_v35  ;;  %4176 = vmatprep.subr.bf16.mxu1 %v6990_v54  ;;  %v1286_v35 = vrot.slane %v1281_v39, %v7864_v9  ;;  %v7048_v54 = vld [vmem:[#allocation4 + $0x2e8] ss:$16 sps:$4 sm:$0xff]  }
 0x1af   :  { %v7096_v39 = vld [vmem:[#allocation4 + $0x3e8] ss:$16 sps:$4 sm:$0xff]  }
 0x1b1   :  { %4134 = vmatpush1.bf16.msra.mxu0 %v6985_v43  ;;  %4177 = vmatpush1.bf16.msra.mxu1 %v6988_v19  ;;  %v7053_v43 = vld [vmem:[#allocation4 + $0xcc] ss:$16 sps:$4 sm:$0xff]  }
 0x1b2   :  { %4135 = vmatprep.subr.bf16.mxu0 %v6993_v6  ;;  %4178 = vmatprep.subr.bf16.mxu1 %v6996_v45  ;;  %v7056_v6 = vld [vmem:[#allocation4 + $0x2cc] ss:$16 sps:$4 sm:$0xff]  }
 0x1b5   :  { %4136 = vmatpush1.bf16.msra.mxu0 %v6991_v21  ;;  %4179 = vmatpush1.bf16.msra.mxu1 %v6994_v5  ;;  %v7051_v5 = vld [vmem:[#allocation4 + $0xc8] ss:$16 sps:$4 sm:$0xff]  }
 0x1b6   :  { %4137 = vmatprep.subr.bf16.mxu0 %v6999_v14  ;;  %4180 = vmatprep.subr.bf16.mxu1 %v7002_v26  ;;  %v7054_v26 = vld [vmem:[#allocation4 + $0x2c8] ss:$16 sps:$4 sm:$0xff]  }
 0x1b9   :  { %4138 = vmatpush2.bf16.msra.mxu0 %v6997_v41  ;;  %4181 = vmatpush2.bf16.msra.mxu1 %v7000_v47  ;;  %v7059_v41 = vld [vmem:[#allocation4 + $0xac] ss:$16 sps:$4 sm:$0xff]  }
 0x1ba   :  { %4139 = vmatprep.subr.bf16.mxu0 %v7005_v58  ;;  %4182 = vmatprep.subr.bf16.mxu1 %v7008_v48  ;;  %v7062_v48 = vld [vmem:[#allocation4 + $0x2ac] ss:$16 sps:$4 sm:$0xff]  }
 0x1bd   :  { %4140 = vmatpush2.bf16.msra.mxu0 %v7003_v27  ;;  %4183 = vmatpush2.bf16.msra.mxu1 %v7006_v50 }
 0x1be   :  { %4141 = vmatprep.subr.bf16.mxu0 %v7011_v30  ;;  %4184 = vmatprep.subr.bf16.mxu1 %v7014_v51  ;;  %v7057_v30 = vld [vmem:[#allocation4 + $0xa8] ss:$16 sps:$4 sm:$0xff]  }
 0x1c1   :  { %4142 = vmatpush2.bf16.msra.mxu0 %v7009_v17  ;;  %4185 = vmatpush2.bf16.msra.mxu1 %v7012_v55  ;;  %v7065_v17 = vld [vmem:[#allocation4 + $0x8c] ss:$16 sps:$4 sm:$0xff]  }
 0x1c2   :  { %4143 = vmatprep.subr.bf16.mxu0 %v7017_v44  ;;  %4186 = vmatprep.subr.bf16.mxu1 %v7020_v32  ;;  %v7068_v44 = vld [vmem:[#allocation4 + $0x28c] ss:$16 sps:$4 sm:$0xff]   ;;  %v7066_v32 = vld [vmem:[#allocation4 + $0x288] ss:$16 sps:$4 sm:$0xff]  }
 0x1c5   :  { %4144 = vmatpush2.bf16.msra.mxu0 %v7015_v46  ;;  %4187 = vmatpush2.bf16.msra.mxu1 %v7018_v57  ;;  %v7071_v46 = vld [vmem:[#allocation4 + $0x6c] ss:$16 sps:$4 sm:$0xff]  }
 0x1c6   :  { %4145 = vmatprep.subr.bf16.mxu0 %v7023_v59  ;;  %4188 = vmatprep.subr.bf16.mxu1 %v7026_v60  ;;  %v7074_v57 = vld [vmem:[#allocation4 + $0x26c] ss:$16 sps:$4 sm:$0xff]   ;;  %v7069_v59 = vld [vmem:[#allocation4 + $0x68] ss:$16 sps:$4 sm:$0xff]  }
 0x1c7   :  { %v7072_v60 = vld [vmem:[#allocation4 + $0x268] ss:$16 sps:$4 sm:$0xff]  }
 0x1c9   :  { %4146 = vmatpush2.bf16.msra.mxu0 %v7021_v4  ;;  %4189 = vmatpush2.bf16.msra.mxu1 %v7024_v11  ;;  %v7077_v4 = vld [vmem:[#allocation4 + $0x4c] ss:$16 sps:$4 sm:$0xff]  }
 0x1ca   :  { %4147 = vmatprep.subr.bf16.mxu0 %v7029_v15  ;;  %4190 = vmatprep.subr.bf16.mxu1 %v7032_v16  ;;  %v7080_v11 = vld [vmem:[#allocation4 + $0x24c] ss:$16 sps:$4 sm:$0xff]   ;;  %v7075_v15 = vld [vmem:[#allocation4 + $0x48] ss:$16 sps:$4 sm:$0xff]  }
 0x1cb   :  { %v7078_v16 = vld [vmem:[#allocation4 + $0x248] ss:$16 sps:$4 sm:$0xff]  }
 0x1cd   :  { %4148 = vmatpush2.bf16.msra.mxu0 %v7027_v23  ;;  %4191 = vmatpush2.bf16.msra.mxu1 %v7030_v28  ;;  %v7083_v23 = vld [vmem:[#allocation4 + $0x2c] ss:$16 sps:$4 sm:$0xff]  }
 0x1ce   :  { %4149 = vmatprep.subr.bf16.mxu0 %v7035_v29  ;;  %4192 = vmatprep.subr.bf16.mxu1 %v7038_v18  ;;  %v7086_v28 = vld [vmem:[#allocation4 + $0x22c] ss:$16 sps:$4 sm:$0xff]   ;;  %v7081_v29 = vld [vmem:[#allocation4 + $0x28] ss:$16 sps:$4 sm:$0xff]  }
 0x1cf   :  { %v7084_v18 = vld [vmem:[#allocation4 + $0x228] ss:$16 sps:$4 sm:$0xff]  }
 0x1d1   :  { %4150 = vmatpush2.bf16.msra.mxu0 %v7033_v31  ;;  %4193 = vmatpush2.bf16.msra.mxu1 %v7036_v33  ;;  %v7089_v31 = vld [vmem:[#allocation4 + $0xc] ss:$16 sps:$4 sm:$0xff]  }
 0x1d2   :  { %4151 = vmatprep.subr.bf16.mxu0 %v7041_v36  ;;  %4194 = vmatprep.subr.bf16.mxu1 %v7044_v7  ;;  %v7092_v33 = vld [vmem:[#allocation4 + $0x20c] ss:$16 sps:$4 sm:$0xff]   ;;  %v7087_v36 = vld [vmem:[#allocation4 + $0x8] ss:$16 sps:$4 sm:$0xff]  }
 0x1d3   :  { %v7090_v7 = vld [vmem:[#allocation4 + $0x208] ss:$16 sps:$4 sm:$0xff]  }
 0x1d5   :  { %4152 = vmatpush2.bf16.msra.mxu0 %v7039_v24  ;;  %4195 = vmatpush2.bf16.msra.mxu1 %v7042_v37  ;;  %v7095_v24 = vld [vmem:[#allocation4 + $0x1ec] ss:$16 sps:$4 sm:$0xff]  }
 0x1d6   :  { %4207 = vmatprep.subr.bf16.mxu0 %v7047_v38  ;;  %4250 = vmatprep.subr.bf16.mxu1 %v7050_v40  ;;  %v7098_v37 = vld [vmem:[#allocation4 + $0x3ec] ss:$16 sps:$4 sm:$0xff]   ;;  %v7093_v38 = vld [vmem:[#allocation4 + $0x1e8] ss:$16 sps:$4 sm:$0xff]  }
 0x1d7   :  { %v7101_v40 = vld [vmem:[#allocation4 + $0x1cc] ss:$16 sps:$4 sm:$0xff]  }
 0x1d8   :  { %4154 = vmatmul.mubr.bf16.vlgmr.msra.gmra.mxu0 %v7944_v12  ;;  %v3897_v19 = vpop.f32.mrf.mxu0  ;;  %4197 = vmatmul.mubr.bf16.vlgmr.msra.gmra.mxu1 %v7946_v13  ;;  %v3940_v21 = vpop.f32.mrf.mxu1 }
 0x1d9   :  { %v3898_v45 = vadd.f32 %v3897_v19, %v1286_v35  ;;  %4208 = vmatpush1.bf16.msra.mxu0 %v7045_v42  ;;  %4239 = vmatprep.mubr.bf16.mxu0 %v7892_v49  ;;  %v7060_v49 = vld [vmem:[#allocation4 + $0x2a8] ss:$16 sps:$4 sm:$0xff]   ;;  %v7104_v42 = vld [vmem:[#allocation4 + $0x3cc] ss:$16 sps:$4 sm:$0xff]  }
 0x1da   :  { %4251 = vmatpush1.bf16.msra.mxu1 %v7048_v54  ;;  %v8010_v14 = vpop.f32.mrf.mxu0  ;;  %4282 = vmatprep.mubr.bf16.mxu1 %v7896_v53  ;;  %v8015_v58 = vpop.f32.mrf.mxu1  ;;  %v7063_v53 = vld [vmem:[#allocation4 + $0x88] ss:$16 sps:$4 sm:$0xff]   ;;  %v7110_v19 = vld [vmem:[#allocation4 + $0x3ac] ss:$16 sps:$4 sm:$0xff]  }
 0x1db   :  { %v8012_v47 = vadd.f32 %v3940_v21, %v3898_v45  ;;  %4209 = vmatprep.subr.bf16.mxu0 %v7053_v43  ;;  %4252 = vmatprep.subr.bf16.mxu1 %v7056_v6  ;;  %v7102_v54 = vld [vmem:[#allocation4 + $0x3c8] ss:$16 sps:$4 sm:$0xff]   ;;  %v7107_v43 = vld [vmem:[#allocation4 + $0x1ac] ss:$16 sps:$4 sm:$0xff]  }
 0x1dc   :  { %v3901_v27 = vpop.f32.mrf.mxu0  ;;  %v3944_v51 = vpop.f32.mrf.mxu1  ;;  %v7105_v6 = vld [vmem:[#allocation4 + $0x1a8] ss:$16 sps:$4 sm:$0xff]   ;;  %v7113_v21 = vld [vmem:[#allocation4 + $0x18c] ss:$16 sps:$4 sm:$0xff]  }
 0x1dd   :  { %v3902_v50 = vadd.f32 %v3901_v27, %v1286_v35  ;;  %4210 = vmatpush1.bf16.msra.mxu0 %v7051_v5  ;;  %v7099_v35 = vld [vmem:[#allocation4 + $0x1c8] ss:$16 sps:$4 sm:$0xff]   ;;  %v7116_v5 = vld [vmem:[#allocation4 + $0x38c] ss:$16 sps:$4 sm:$0xff]  }
 0x1de   :  { %4253 = vmatpush1.bf16.msra.mxu1 %v7054_v26  ;;  %4211 = vmatprep.subr.bf16.mxu0 %v7059_v41  ;;  %v7108_v45 = vld [vmem:[#allocation4 + $0x3a8] ss:$16 sps:$4 sm:$0xff]   ;;  %v7122_v27 = vld [vmem:[#allocation4 + $0x36c] ss:$16 sps:$4 sm:$0xff]  }
 0x1df   :  { %v8017_v55 = vadd.f32 %v3944_v51, %v3902_v50  ;;  %4254 = vmatprep.subr.bf16.mxu1 %v7062_v48  ;;  %v7111_v26 = vld [vmem:[#allocation4 + $0x188] ss:$16 sps:$4 sm:$0xff]   ;;  %v7119_v48 = vld [vmem:[#allocation4 + $0x16c] ss:$16 sps:$4 sm:$0xff]  }
 0x1e0   :  { %v7114_v41 = vld [vmem:[#allocation4 + $0x388] ss:$16 sps:$4 sm:$0xff]   ;;  %v7125_v51 = vld [vmem:[#allocation4 + $0x14c] ss:$16 sps:$4 sm:$0xff]  }
 0x1e1   :  { %4212 = vmatpush1.bf16.msra.mxu0 %v7057_v30  ;;  %v7117_v50 = vld [vmem:[#allocation4 + $0x168] ss:$16 sps:$4 sm:$0xff]  }
 0x1e2   :  { %4255 = vmatpush1.bf16.msra.mxu1 %v7060_v49  ;;  %4213 = vmatprep.subr.bf16.mxu0 %v7065_v17  ;;  %v7120_v30 = vld [vmem:[#allocation4 + $0x368] ss:$16 sps:$4 sm:$0xff]   ;;  %v7128_v49 = vld [vmem:[#allocation4 + $0x34c] ss:$16 sps:$4 sm:$0xff]  }
 0x1e3   :  { %4256 = vmatprep.subr.bf16.mxu1 %v7068_v44  ;;  %v7123_v17 = vld [vmem:[#allocation4 + $0x148] ss:$16 sps:$4 sm:$0xff]  }
 0x1e4   :  { %v7126_v44 = vld [vmem:[#allocation4 + $0x348] ss:$16 sps:$4 sm:$0xff]  }
 0x1e5   :  { %4214 = vmatpush1.bf16.msra.mxu0 %v7063_v53  ;;  %v7131_v53 = vld [vmem:[#allocation4 + $0x12c] ss:$16 sps:$4 sm:$0xff]  }
 0x1e6   :  { %4257 = vmatpush1.bf16.msra.mxu1 %v7066_v32  ;;  %4215 = vmatprep.subr.bf16.mxu0 %v7071_v46  ;;  %v7134_v32 = vld [vmem:[#allocation4 + $0x32c] ss:$16 sps:$4 sm:$0xff]   ;;  %v7129_v46 = vld [vmem:[#allocation4 + $0x128] ss:$16 sps:$4 sm:$0xff]  }
 0x1e7   :  { %4258 = vmatprep.subr.bf16.mxu1 %v7074_v57  ;;  %v7132_v57 = vld [vmem:[#allocation4 + $0x328] ss:$16 sps:$4 sm:$0xff]  }
 0x1e9   :  { %4216 = vmatpush1.bf16.msra.mxu0 %v7069_v59  ;;  %v7137_v59 = vld [vmem:[#allocation4 + $0x10c] ss:$16 sps:$4 sm:$0xff]  }
 0x1ea   :  { %4259 = vmatpush1.bf16.msra.mxu1 %v7072_v60  ;;  %4217 = vmatprep.subr.bf16.mxu0 %v7077_v4  ;;  %v7140_v60 = vld [vmem:[#allocation4 + $0x30c] ss:$16 sps:$4 sm:$0xff]   ;;  %v7135_v4 = vld [vmem:[#allocation4 + $0x108] ss:$16 sps:$4 sm:$0xff]  }
 0x1eb   :  { %4260 = vmatprep.subr.bf16.mxu1 %v7080_v11  ;;  %v7138_v11 = vld [vmem:[#allocation4 + $0x308] ss:$16 sps:$4 sm:$0xff]  }
 0x1ed   :  { %4218 = vmatpush1.bf16.msra.mxu0 %v7075_v15  ;;  %v7143_v15 = vld [vmem:[#allocation4 + $0x4ec] ss:$16 sps:$4 sm:$0xff]  }
 0x1ee   :  { %4261 = vmatpush1.bf16.msra.mxu1 %v7078_v16  ;;  %4219 = vmatprep.subr.bf16.mxu0 %v7083_v23  ;;  %v7146_v16 = vld [vmem:[#allocation4 + $0x6ec] ss:$16 sps:$4 sm:$0xff]   ;;  %v7141_v23 = vld [vmem:[#allocation4 + $0x4e8] ss:$16 sps:$4 sm:$0xff]  }
 0x1ef   :  { %4262 = vmatprep.subr.bf16.mxu1 %v7086_v28  ;;  %v8019_v28 = vpop.f32.mrf.mxu0 }
 0x1f1   :  { %4220 = vmatpush1.bf16.msra.mxu0 %v7081_v29  ;;  %v7144_v29 = vld [vmem:[#allocation4 + $0x6e8] ss:$16 sps:$4 sm:$0xff]  }
 0x1f2   :  { %4263 = vmatpush1.bf16.msra.mxu1 %v7084_v18  ;;  %4221 = vmatprep.subr.bf16.mxu0 %v7089_v31  ;;  %v8021_v18 = vpop.f32.mrf.mxu1  ;;  %v7149_v31 = vld [vmem:[#allocation4 + $0x4cc] ss:$16 sps:$4 sm:$0xff]  }
 0x1f3   :  { %4264 = vmatprep.subr.bf16.mxu1 %v7092_v33 }
 0x1f5   :  { %4222 = vmatpush1.bf16.msra.mxu0 %v7087_v36  ;;  %v7152_v36 = vld [vmem:[#allocation4 + $0x6cc] ss:$16 sps:$4 sm:$0xff]  }
 0x1f6   :  { %4265 = vmatpush1.bf16.msra.mxu1 %v7090_v7  ;;  %4223 = vmatprep.subr.bf16.mxu0 %v7095_v24 }
 0x1f7   :  { %4266 = vmatprep.subr.bf16.mxu1 %v7098_v37  ;;  %v7147_v37 = vld [vmem:[#allocation4 + $0x4c8] ss:$16 sps:$4 sm:$0xff]  }
 0x1f9   :  { %4224 = vmatpush2.bf16.msra.mxu0 %v7093_v38 }
 0x1fa   :  { %4267 = vmatpush2.bf16.msra.mxu1 %v7096_v39  ;;  %4225 = vmatprep.subr.bf16.mxu0 %v7101_v40  ;;  %v7150_v39 = vld [vmem:[#allocation4 + $0x6c8] ss:$16 sps:$4 sm:$0xff]   ;;  %v7155_v40 = vld [vmem:[#allocation4 + $0x4ac] ss:$16 sps:$4 sm:$0xff]  }
 0x1fb   :  { %4268 = vmatprep.subr.bf16.mxu1 %v7104_v42 }
 0x1fd   :  { %4226 = vmatpush2.bf16.msra.mxu0 %v7099_v35 }
 0x1fe   :  { %4269 = vmatpush2.bf16.msra.mxu1 %v7102_v54  ;;  %4227 = vmatprep.subr.bf16.mxu0 %v7107_v43  ;;  %v7153_v54 = vld [vmem:[#allocation4 + $0x4a8] ss:$16 sps:$4 sm:$0xff]  }
 0x1ff   :  { %4270 = vmatprep.subr.bf16.mxu1 %v7110_v19  ;;  %v7156_v43 = vld [vmem:[#allocation4 + $0x6a8] ss:$16 sps:$4 sm:$0xff]   ;;  %v7161_v19 = vld [vmem:[#allocation4 + $0x48c] ss:$16 sps:$4 sm:$0xff]  }
 0x201   :  { %4228 = vmatpush2.bf16.msra.mxu0 %v7105_v6 }
 0x202   :  { %4271 = vmatpush2.bf16.msra.mxu1 %v7108_v45  ;;  %4229 = vmatprep.subr.bf16.mxu0 %v7113_v21  ;;  %v7164_v45 = vld [vmem:[#allocation4 + $0x68c] ss:$16 sps:$4 sm:$0xff]   ;;  %v7162_v21 = vld [vmem:[#allocation4 + $0x688] ss:$16 sps:$4 sm:$0xff]  }
 0x203   :  { %4272 = vmatprep.subr.bf16.mxu1 %v7116_v5  ;;  %v7167_v5 = vld [vmem:[#allocation4 + $0x46c] ss:$16 sps:$4 sm:$0xff]  }
 0x205   :  { %4230 = vmatpush2.bf16.msra.mxu0 %v7111_v26  ;;  %v7170_v26 = vld [vmem:[#allocation4 + $0x66c] ss:$16 sps:$4 sm:$0xff]  }
 0x206   :  { %4273 = vmatpush2.bf16.msra.mxu1 %v7114_v41  ;;  %4231 = vmatprep.subr.bf16.mxu0 %v7119_v48  ;;  %v7168_v41 = vld [vmem:[#allocation4 + $0x668] ss:$16 sps:$4 sm:$0xff]   ;;  %v7173_v48 = vld [vmem:[#allocation4 + $0x44c] ss:$16 sps:$4 sm:$0xff]  }
 0x207   :  { %4274 = vmatprep.subr.bf16.mxu1 %v7122_v27  ;;  %v7176_v27 = vld [vmem:[#allocation4 + $0x64c] ss:$16 sps:$4 sm:$0xff]  }
 0x209   :  { %4232 = vmatpush2.bf16.msra.mxu0 %v7117_v50  ;;  %v7171_v50 = vld [vmem:[#allocation4 + $0x448] ss:$16 sps:$4 sm:$0xff]  }
 0x20a   :  { %4275 = vmatpush2.bf16.msra.mxu1 %v7120_v30  ;;  %4233 = vmatprep.subr.bf16.mxu0 %v7125_v51  ;;  %v7174_v30 = vld [vmem:[#allocation4 + $0x648] ss:$16 sps:$4 sm:$0xff]   ;;  %v7179_v51 = vld [vmem:[#allocation4 + $0x42c] ss:$16 sps:$4 sm:$0xff]  }
 0x20b   :  { %4276 = vmatprep.subr.bf16.mxu1 %v7128_v49  ;;  %v7182_v49 = vld [vmem:[#allocation4 + $0x62c] ss:$16 sps:$4 sm:$0xff]  }
 0x20d   :  { %4234 = vmatpush2.bf16.msra.mxu0 %v7123_v17  ;;  %v7177_v17 = vld [vmem:[#allocation4 + $0x428] ss:$16 sps:$4 sm:$0xff]  }
 0x20e   :  { %4277 = vmatpush2.bf16.msra.mxu1 %v7126_v44  ;;  %4235 = vmatprep.subr.bf16.mxu0 %v7131_v53  ;;  %v7180_v44 = vld [vmem:[#allocation4 + $0x628] ss:$16 sps:$4 sm:$0xff]   ;;  %v7185_v53 = vld [vmem:[#allocation4 + $0x40c] ss:$16 sps:$4 sm:$0xff]  }
 0x20f   :  { %4278 = vmatprep.subr.bf16.mxu1 %v7134_v32  ;;  %v7188_v32 = vld [vmem:[#allocation4 + $0x60c] ss:$16 sps:$4 sm:$0xff]  }
 0x211   :  { %4236 = vmatpush2.bf16.msra.mxu0 %v7129_v46  ;;  %v7183_v46 = vld [vmem:[#allocation4 + $0x408] ss:$16 sps:$4 sm:$0xff]  }
 0x212   :  { %4279 = vmatpush2.bf16.msra.mxu1 %v7132_v57  ;;  %4237 = vmatprep.subr.bf16.mxu0 %v7137_v59  ;;  %v7186_v57 = vld [vmem:[#allocation4 + $0x608] ss:$16 sps:$4 sm:$0xff]   ;;  %v7191_v59 = vld [vmem:[#allocation4 + $0x5ec] ss:$16 sps:$4 sm:$0xff]  }
 0x213   :  { %4280 = vmatprep.subr.bf16.mxu1 %v7140_v60  ;;  %v7194_v60 = vld [vmem:[#allocation4 + $0x7ec] ss:$16 sps:$4 sm:$0xff]  }
 0x215   :  { %4238 = vmatpush2.bf16.msra.mxu0 %v7135_v4  ;;  %v7189_v4 = vld [vmem:[#allocation4 + $0x5e8] ss:$16 sps:$4 sm:$0xff]  }
 0x216   :  { %4281 = vmatpush2.bf16.msra.mxu1 %v7138_v11  ;;  %4293 = vmatprep.subr.bf16.mxu0 %v7143_v15  ;;  %v7192_v11 = vld [vmem:[#allocation4 + $0x7e8] ss:$16 sps:$4 sm:$0xff]   ;;  %v7197_v15 = vld [vmem:[#allocation4 + $0x5cc] ss:$16 sps:$4 sm:$0xff]  }
 0x217   :  { %4336 = vmatprep.subr.bf16.mxu1 %v7146_v16  ;;  %v7200_v16 = vld [vmem:[#allocation4 + $0x7cc] ss:$16 sps:$4 sm:$0xff]  }
 0x218   :  { %v3983_v33 = vpop.f32.mrf.mxu0  ;;  %4240 = vmatmul.mubr.bf16.vlgmr.msra.gmra.mxu0 %v7894_v52  ;;  %v4026_v24 = vpop.f32.mrf.mxu1 }
 0x219   :  { %v3984_v7 = vadd.f32 %v3983_v33, %v8012_v47  ;;  %4283 = vmatmul.mubr.bf16.vlgmr.msra.gmra.mxu1 %v7900_v56  ;;  %4294 = vmatpush1.bf16.msra.mxu0 %v7141_v23  ;;  %v7158_v47 = vld [vmem:[#allocation4 + $0x6ac] ss:$16 sps:$4 sm:$0xff]   ;;  %v7195_v23 = vld [vmem:[#allocation4 + $0x5c8] ss:$16 sps:$4 sm:$0xff]  }
 0x21a   :  { %4325 = vmatprep.mubr.bf16.mxu0 %v7915_v20  ;;  %4337 = vmatpush1.bf16.msra.mxu1 %v7144_v29  ;;  %v8027_v38 = vpop.f32.mrf.mxu0  ;;  %v8032_v52 = vpop.f32.mrf.mxu1  ;;  %v7198_v29 = vld [vmem:[#allocation4 + $0x7c8] ss:$16 sps:$4 sm:$0xff]   ;;  %v7206_v33 = vld [vmem:[#allocation4 + $0x7ac] ss:$16 sps:$4 sm:$0xff]  }
 0x21b   :  { %v8029_v42 = vadd.f32 %v4026_v24, %v3984_v7  ;;  %4368 = vmatprep.mubr.bf16.mxu1 %v7920_v25  ;;  %4295 = vmatprep.subr.bf16.mxu0 %v7149_v31  ;;  %v7159_v25 = vld [vmem:[#allocation4 + $0x488] ss:$16 sps:$4 sm:$0xff]   ;;  %v7203_v31 = vld [vmem:[#allocation4 + $0x5ac] ss:$16 sps:$4 sm:$0xff]  }
 0x21c   :  { %v3987_v35 = vpop.f32.mrf.mxu0  ;;  %4338 = vmatprep.subr.bf16.mxu1 %v7152_v36  ;;  %v4030_v20 = vpop.f32.mrf.mxu1  ;;  %v7201_v36 = vld [vmem:[#allocation4 + $0x5a8] ss:$16 sps:$4 sm:$0xff]   ;;  %v7209_v24 = vld [vmem:[#allocation4 + $0x58c] ss:$16 sps:$4 sm:$0xff]  }
 0x21d   :  { %v3988_v56 = vadd.f32 %v3987_v35, %v8017_v55  ;;  %4296 = vmatpush1.bf16.msra.mxu0 %v7147_v37  ;;  %v7165_v55 = vld [vmem:[#allocation4 + $0x468] ss:$16 sps:$4 sm:$0xff]   ;;  %v7212_v37 = vld [vmem:[#allocation4 + $0x78c] ss:$16 sps:$4 sm:$0xff]  }
 0x21e   :  { %4339 = vmatpush1.bf16.msra.mxu1 %v7150_v39  ;;  %4297 = vmatprep.subr.bf16.mxu0 %v7155_v40  ;;  %v7204_v7 = vld [vmem:[#allocation4 + $0x7a8] ss:$16 sps:$4 sm:$0xff]   ;;  %v7218_v35 = vld [vmem:[#allocation4 + $0x76c] ss:$16 sps:$4 sm:$0xff]  }
 0x21f   :  { %v8035_v6 = vadd.f32 %v4030_v20, %v3988_v56  ;;  %4340 = vmatprep.subr.bf16.mxu1 %v7158_v47  ;;  %v7207_v39 = vld [vmem:[#allocation4 + $0x588] ss:$16 sps:$4 sm:$0xff]   ;;  %v7215_v47 = vld [vmem:[#allocation4 + $0x56c] ss:$16 sps:$4 sm:$0xff]  }
 0x220   :  { %v7210_v40 = vld [vmem:[#allocation4 + $0x788] ss:$16 sps:$4 sm:$0xff]   ;;  %v7221_v20 = vld [vmem:[#allocation4 + $0x54c] ss:$16 sps:$4 sm:$0xff]  }
 0x221   :  { %4298 = vmatpush1.bf16.msra.mxu0 %v7153_v54  ;;  %v7213_v56 = vld [vmem:[#allocation4 + $0x568] ss:$16 sps:$4 sm:$0xff]  }
 0x222   :  { %4341 = vmatpush1.bf16.msra.mxu1 %v7156_v43  ;;  %4299 = vmatprep.subr.bf16.mxu0 %v7161_v19  ;;  %v7216_v54 = vld [vmem:[#allocation4 + $0x768] ss:$16 sps:$4 sm:$0xff]   ;;  %v7224_v43 = vld [vmem:[#allocation4 + $0x74c] ss:$16 sps:$4 sm:$0xff]  }
 0x223   :  { %4342 = vmatprep.subr.bf16.mxu1 %v7164_v45  ;;  %v7219_v19 = vld [vmem:[#allocation4 + $0x548] ss:$16 sps:$4 sm:$0xff]  }
 0x224   :  { %v7222_v45 = vld [vmem:[#allocation4 + $0x748] ss:$16 sps:$4 sm:$0xff]  }
 0x225   :  { %4300 = vmatpush1.bf16.msra.mxu0 %v7159_v25  ;;  %v7227_v25 = vld [vmem:[#allocation4 + $0x52c] ss:$16 sps:$4 sm:$0xff]  }
 0x226   :  { %4343 = vmatpush1.bf16.msra.mxu1 %v7162_v21  ;;  %4301 = vmatprep.subr.bf16.mxu0 %v7167_v5  ;;  %v7230_v21 = vld [vmem:[#allocation4 + $0x72c] ss:$16 sps:$4 sm:$0xff]   ;;  %v7225_v5 = vld [vmem:[#allocation4 + $0x528] ss:$16 sps:$4 sm:$0xff]  }
 0x227   :  { %4344 = vmatprep.subr.bf16.mxu1 %v7170_v26  ;;  %v7228_v26 = vld [vmem:[#allocation4 + $0x728] ss:$16 sps:$4 sm:$0xff]  }
 0x229   :  { %4302 = vmatpush1.bf16.msra.mxu0 %v7165_v55  ;;  %v7233_v55 = vld [vmem:[#allocation4 + $0x50c] ss:$16 sps:$4 sm:$0xff]  }
 0x22a   :  { %4345 = vmatpush1.bf16.msra.mxu1 %v7168_v41  ;;  %4303 = vmatprep.subr.bf16.mxu0 %v7173_v48  ;;  %v7236_v41 = vld [vmem:[#allocation4 + $0x70c] ss:$16 sps:$4 sm:$0xff]   ;;  %v7231_v48 = vld [vmem:[#allocation4 + $0x508] ss:$16 sps:$4 sm:$0xff]  }
 0x22b   :  { %4346 = vmatprep.subr.bf16.mxu1 %v7176_v27  ;;  %v7234_v27 = vld [vmem:[#allocation4 + $0x708] ss:$16 sps:$4 sm:$0xff]  }
 0x22d   :  { %4304 = vmatpush1.bf16.msra.mxu0 %v7171_v50  ;;  %v7239_v50 = vld [vmem:[#allocation4 + $0x8ec] ss:$16 sps:$4 sm:$0xff]  }
 0x22e   :  { %4347 = vmatpush1.bf16.msra.mxu1 %v7174_v30  ;;  %4305 = vmatprep.subr.bf16.mxu0 %v7179_v51  ;;  %v7242_v30 = vld [vmem:[#allocation4 + $0xaec] ss:$16 sps:$4 sm:$0xff]   ;;  %v7237_v51 = vld [vmem:[#allocation4 + $0x8e8] ss:$16 sps:$4 sm:$0xff]  }
 0x22f   :  { %4348 = vmatprep.subr.bf16.mxu1 %v7182_v49  ;;  %v8037_v49 = vpop.f32.mrf.mxu0 }
 0x231   :  { %4306 = vmatpush1.bf16.msra.mxu0 %v7177_v17  ;;  %v7240_v17 = vld [vmem:[#allocation4 + $0xae8] ss:$16 sps:$4 sm:$0xff]  }
 0x232   :  { %4349 = vmatpush1.bf16.msra.mxu1 %v7180_v44  ;;  %4307 = vmatprep.subr.bf16.mxu0 %v7185_v53  ;;  %v8039_v44 = vpop.f32.mrf.mxu1  ;;  %v7245_v53 = vld [vmem:[#allocation4 + $0x8cc] ss:$16 sps:$4 sm:$0xff]  }
 0x233   :  { %4350 = vmatprep.subr.bf16.mxu1 %v7188_v32 }
 0x235   :  { %4308 = vmatpush1.bf16.msra.mxu0 %v7183_v46  ;;  %v7248_v46 = vld [vmem:[#allocation4 + $0xacc] ss:$16 sps:$4 sm:$0xff]  }
 0x236   :  { %4351 = vmatpush1.bf16.msra.mxu1 %v7186_v57  ;;  %4309 = vmatprep.subr.bf16.mxu0 %v7191_v59 }
 0x237   :  { %4352 = vmatprep.subr.bf16.mxu1 %v7194_v60  ;;  %v7243_v60 = vld [vmem:[#allocation4 + $0x8c8] ss:$16 sps:$4 sm:$0xff]  }
 0x239   :  { %4310 = vmatpush2.bf16.msra.mxu0 %v7189_v4 }
 0x23a   :  { %4353 = vmatpush2.bf16.msra.mxu1 %v7192_v11  ;;  %4311 = vmatprep.subr.bf16.mxu0 %v7197_v15  ;;  %v7246_v11 = vld [vmem:[#allocation4 + $0xac8] ss:$16 sps:$4 sm:$0xff]   ;;  %v7251_v15 = vld [vmem:[#allocation4 + $0x8ac] ss:$16 sps:$4 sm:$0xff]  }
 0x23b   :  { %4354 = vmatprep.subr.bf16.mxu1 %v7200_v16 }
 0x23d   :  { %4312 = vmatpush2.bf16.msra.mxu0 %v7195_v23 }
 0x23e   :  { %4355 = vmatpush2.bf16.msra.mxu1 %v7198_v29  ;;  %4313 = vmatprep.subr.bf16.mxu0 %v7203_v31  ;;  %v7249_v29 = vld [vmem:[#allocation4 + $0x8a8] ss:$16 sps:$4 sm:$0xff]  }
 0x23f   :  { %4356 = vmatprep.subr.bf16.mxu1 %v7206_v33  ;;  %v7252_v31 = vld [vmem:[#allocation4 + $0xaa8] ss:$16 sps:$4 sm:$0xff]   ;;  %v7257_v33 = vld [vmem:[#allocation4 + $0x88c] ss:$16 sps:$4 sm:$0xff]  }
 0x241   :  { %4314 = vmatpush2.bf16.msra.mxu0 %v7201_v36 }
 0x242   :  { %4357 = vmatpush2.bf16.msra.mxu1 %v7204_v7  ;;  %4315 = vmatprep.subr.bf16.mxu0 %v7209_v24  ;;  %v7260_v7 = vld [vmem:[#allocation4 + $0xa8c] ss:$16 sps:$4 sm:$0xff]   ;;  %v7258_v24 = vld [vmem:[#allocation4 + $0xa88] ss:$16 sps:$4 sm:$0xff]  }
 0x243   :  { %4358 = vmatprep.subr.bf16.mxu1 %v7212_v37  ;;  %v7263_v37 = vld [vmem:[#allocation4 + $0x86c] ss:$16 sps:$4 sm:$0xff]  }
 0x245   :  { %4316 = vmatpush2.bf16.msra.mxu0 %v7207_v39  ;;  %v7266_v39 = vld [vmem:[#allocation4 + $0xa6c] ss:$16 sps:$4 sm:$0xff]  }
 0x246   :  { %4359 = vmatpush2.bf16.msra.mxu1 %v7210_v40  ;;  %4317 = vmatprep.subr.bf16.mxu0 %v7215_v47  ;;  %v7264_v40 = vld [vmem:[#allocation4 + $0xa68] ss:$16 sps:$4 sm:$0xff]   ;;  %v7269_v47 = vld [vmem:[#allocation4 + $0x84c] ss:$16 sps:$4 sm:$0xff]  }
 0x247   :  { %4360 = vmatprep.subr.bf16.mxu1 %v7218_v35  ;;  %v7272_v35 = vld [vmem:[#allocation4 + $0xa4c] ss:$16 sps:$4 sm:$0xff]  }
 0x249   :  { %4318 = vmatpush2.bf16.msra.mxu0 %v7213_v56  ;;  %v7267_v56 = vld [vmem:[#allocation4 + $0x848] ss:$16 sps:$4 sm:$0xff]  }
 0x24a   :  { %4361 = vmatpush2.bf16.msra.mxu1 %v7216_v54  ;;  %4319 = vmatprep.subr.bf16.mxu0 %v7221_v20  ;;  %v7270_v54 = vld [vmem:[#allocation4 + $0xa48] ss:$16 sps:$4 sm:$0xff]   ;;  %v7275_v20 = vld [vmem:[#allocation4 + $0x82c] ss:$16 sps:$4 sm:$0xff]  }
 0x24b   :  { %4362 = vmatprep.subr.bf16.mxu1 %v7224_v43  ;;  %v7278_v43 = vld [vmem:[#allocation4 + $0xa2c] ss:$16 sps:$4 sm:$0xff]  }
 0x24d   :  { %4320 = vmatpush2.bf16.msra.mxu0 %v7219_v19  ;;  %v7273_v19 = vld [vmem:[#allocation4 + $0x828] ss:$16 sps:$4 sm:$0xff]  }
 0x24e   :  { %4363 = vmatpush2.bf16.msra.mxu1 %v7222_v45  ;;  %4321 = vmatprep.subr.bf16.mxu0 %v7227_v25  ;;  %v7276_v45 = vld [vmem:[#allocation4 + $0xa28] ss:$16 sps:$4 sm:$0xff]   ;;  %v7281_v25 = vld [vmem:[#allocation4 + $0x80c] ss:$16 sps:$4 sm:$0xff]  }
 0x24f   :  { %4364 = vmatprep.subr.bf16.mxu1 %v7230_v21  ;;  %v7284_v21 = vld [vmem:[#allocation4 + $0xa0c] ss:$16 sps:$4 sm:$0xff]  }
 0x251   :  { %4322 = vmatpush2.bf16.msra.mxu0 %v7225_v5  ;;  %v7279_v5 = vld [vmem:[#allocation4 + $0x808] ss:$16 sps:$4 sm:$0xff]  }
 0x252   :  { %4365 = vmatpush2.bf16.msra.mxu1 %v7228_v26  ;;  %4323 = vmatprep.subr.bf16.mxu0 %v7233_v55  ;;  %v7282_v26 = vld [vmem:[#allocation4 + $0xa08] ss:$16 sps:$4 sm:$0xff]   ;;  %v7287_v55 = vld [vmem:[#allocation4 + $0x9ec] ss:$16 sps:$4 sm:$0xff]  }
 0x253   :  { %4366 = vmatprep.subr.bf16.mxu1 %v7236_v41  ;;  %v7290_v41 = vld [vmem:[#allocation4 + $0xbec] ss:$16 sps:$4 sm:$0xff]  }
 0x255   :  { %4324 = vmatpush2.bf16.msra.mxu0 %v7231_v48  ;;  %v7285_v48 = vld [vmem:[#allocation4 + $0x9e8] ss:$16 sps:$4 sm:$0xff]  }
 0x256   :  { %4367 = vmatpush2.bf16.msra.mxu1 %v7234_v27  ;;  %4379 = vmatprep.subr.bf16.mxu0 %v7239_v50  ;;  %v7288_v27 = vld [vmem:[#allocation4 + $0xbe8] ss:$16 sps:$4 sm:$0xff]   ;;  %v7293_v50 = vld [vmem:[#allocation4 + $0x9cc] ss:$16 sps:$4 sm:$0xff]  }
 0x257   :  { %4422 = vmatprep.subr.bf16.mxu1 %v7242_v30  ;;  %v7296_v30 = vld [vmem:[#allocation4 + $0xbcc] ss:$16 sps:$4 sm:$0xff]  }
 0x258   :  { %v4069_v32 = vpop.f32.mrf.mxu0  ;;  %4326 = vmatmul.mubr.bf16.vlgmr.msra.gmra.mxu0 %v7966_v22  ;;  %v4112_v59 = vpop.f32.mrf.mxu1 }
 0x259   :  { %v4070_v57 = vadd.f32 %v4069_v32, %v8029_v42  ;;  %4369 = vmatmul.mubr.bf16.vlgmr.msra.gmra.mxu1 %v7968_v34  ;;  %4380 = vmatpush1.bf16.msra.mxu0 %v7237_v51  ;;  %v7254_v42 = vld [vmem:[#allocation4 + $0xaac] ss:$16 sps:$4 sm:$0xff]   ;;  %v7291_v51 = vld [vmem:[#allocation4 + $0x9c8] ss:$16 sps:$4 sm:$0xff]  }
 0x25a   :  { %4411 = vmatprep.mubr.bf16.mxu0 %v7970_v61  ;;  %4423 = vmatpush1.bf16.msra.mxu1 %v7240_v17  ;;  %v8045_v4 = vpop.f32.mrf.mxu0  ;;  %v8050_v22 = vpop.f32.mrf.mxu1  ;;  %v7294_v17 = vld [vmem:[#allocation4 + $0xbc8] ss:$16 sps:$4 sm:$0xff]   ;;  %v7302_v32 = vld [vmem:[#allocation4 + $0xbac] ss:$16 sps:$4 sm:$0xff]  }
 0x25b   :  { %v8047_v16 = vadd.f32 %v4112_v59, %v4070_v57  ;;  %4454 = vmatprep.mubr.bf16.mxu1 %v7973_v2  ;;  %4381 = vmatprep.subr.bf16.mxu0 %v7245_v53  ;;  %v7255_v2 = vld [vmem:[#allocation4 + $0x888] ss:$16 sps:$4 sm:$0xff]   ;;  %v7299_v53 = vld [vmem:[#allocation4 + $0x9ac] ss:$16 sps:$4 sm:$0xff]  }
 0x25c   :  { %v4073_v23 = vpop.f32.mrf.mxu0  ;;  %4424 = vmatprep.subr.bf16.mxu1 %v7248_v46  ;;  %v4116_v61 = vpop.f32.mrf.mxu1  ;;  %v7297_v46 = vld [vmem:[#allocation4 + $0x9a8] ss:$16 sps:$4 sm:$0xff]   ;;  %v7305_v59 = vld [vmem:[#allocation4 + $0x98c] ss:$16 sps:$4 sm:$0xff]  }
 0x25d   :  { %v4074_v34 = vadd.f32 %v4073_v23, %v8035_v6  ;;  %4382 = vmatpush1.bf16.msra.mxu0 %v7243_v60  ;;  %v7261_v6 = vld [vmem:[#allocation4 + $0x868] ss:$16 sps:$4 sm:$0xff]   ;;  %v7308_v60 = vld [vmem:[#allocation4 + $0xb8c] ss:$16 sps:$4 sm:$0xff]  }
 0x25e   :  { %4425 = vmatpush1.bf16.msra.mxu1 %v7246_v11  ;;  %4383 = vmatprep.subr.bf16.mxu0 %v7251_v15  ;;  %v7300_v57 = vld [vmem:[#allocation4 + $0xba8] ss:$16 sps:$4 sm:$0xff]   ;;  %v7314_v23 = vld [vmem:[#allocation4 + $0xb6c] ss:$16 sps:$4 sm:$0xff]  }
 0x25f   :  { %v8053_v36 = vadd.f32 %v4116_v61, %v4074_v34  ;;  %4426 = vmatprep.subr.bf16.mxu1 %v7254_v42  ;;  %v7303_v11 = vld [vmem:[#allocation4 + $0x988] ss:$16 sps:$4 sm:$0xff]   ;;  %v7311_v42 = vld [vmem:[#allocation4 + $0x96c] ss:$16 sps:$4 sm:$0xff]  }
 0x260   :  { %v7306_v15 = vld [vmem:[#allocation4 + $0xb88] ss:$16 sps:$4 sm:$0xff]   ;;  %v7317_v61 = vld [vmem:[#allocation4 + $0x94c] ss:$16 sps:$4 sm:$0xff]  }
 0x261   :  { %4384 = vmatpush1.bf16.msra.mxu0 %v7249_v29  ;;  %v7309_v34 = vld [vmem:[#allocation4 + $0x968] ss:$16 sps:$4 sm:$0xff]  }
 0x262   :  { %4427 = vmatpush1.bf16.msra.mxu1 %v7252_v31  ;;  %4385 = vmatprep.subr.bf16.mxu0 %v7257_v33  ;;  %v7312_v29 = vld [vmem:[#allocation4 + $0xb68] ss:$16 sps:$4 sm:$0xff]   ;;  %v7320_v31 = vld [vmem:[#allocation4 + $0xb4c] ss:$16 sps:$4 sm:$0xff]  }
 0x263   :  { %4428 = vmatprep.subr.bf16.mxu1 %v7260_v7  ;;  %v7315_v33 = vld [vmem:[#allocation4 + $0x948] ss:$16 sps:$4 sm:$0xff]  }
 0x264   :  { %v7318_v7 = vld [vmem:[#allocation4 + $0xb48] ss:$16 sps:$4 sm:$0xff]  }
 0x265   :  { %4386 = vmatpush1.bf16.msra.mxu0 %v7255_v2  ;;  %v7323_v2 = vld [vmem:[#allocation4 + $0x92c] ss:$16 sps:$4 sm:$0xff]  }
 0x266   :  { %4429 = vmatpush1.bf16.msra.mxu1 %v7258_v24  ;;  %4387 = vmatprep.subr.bf16.mxu0 %v7263_v37  ;;  %v7326_v24 = vld [vmem:[#allocation4 + $0xb2c] ss:$16 sps:$4 sm:$0xff]   ;;  %v7321_v37 = vld [vmem:[#allocation4 + $0x928] ss:$16 sps:$4 sm:$0xff]  }
 0x267   :  { %4430 = vmatprep.subr.bf16.mxu1 %v7266_v39  ;;  %v7324_v39 = vld [vmem:[#allocation4 + $0xb28] ss:$16 sps:$4 sm:$0xff]  }
 0x269   :  { %4388 = vmatpush1.bf16.msra.mxu0 %v7261_v6  ;;  %v7329_v6 = vld [vmem:[#allocation4 + $0x90c] ss:$16 sps:$4 sm:$0xff]  }
 0x26a   :  { %4431 = vmatpush1.bf16.msra.mxu1 %v7264_v40  ;;  %4389 = vmatprep.subr.bf16.mxu0 %v7269_v47  ;;  %v7332_v40 = vld [vmem:[#allocation4 + $0xb0c] ss:$16 sps:$4 sm:$0xff]   ;;  %v7327_v47 = vld [vmem:[#allocation4 + $0x908] ss:$16 sps:$4 sm:$0xff]  }
 0x26b   :  { %4432 = vmatprep.subr.bf16.mxu1 %v7272_v35  ;;  %v7330_v35 = vld [vmem:[#allocation4 + $0xb08] ss:$16 sps:$4 sm:$0xff]  }
 0x26d   :  { %4390 = vmatpush1.bf16.msra.mxu0 %v7267_v56  ;;  %v7335_v56 = vld [vmem:[#allocation4 + $0xcec] ss:$16 sps:$4 sm:$0xff]  }
 0x26e   :  { %4433 = vmatpush1.bf16.msra.mxu1 %v7270_v54  ;;  %4391 = vmatprep.subr.bf16.mxu0 %v7275_v20  ;;  %v7338_v54 = vld [vmem:[#allocation4 + $0xeec] ss:$16 sps:$4 sm:$0xff]   ;;  %v7333_v20 = vld [vmem:[#allocation4 + $0xce8] ss:$16 sps:$4 sm:$0xff]  }
 0x26f   :  { %4434 = vmatprep.subr.bf16.mxu1 %v7278_v43  ;;  %v8055_v43 = vpop.f32.mrf.mxu0 }
 0x271   :  { %4392 = vmatpush1.bf16.msra.mxu0 %v7273_v19  ;;  %v7336_v19 = vld [vmem:[#allocation4 + $0xee8] ss:$16 sps:$4 sm:$0xff]  }
 0x272   :  { %4435 = vmatpush1.bf16.msra.mxu1 %v7276_v45  ;;  %4393 = vmatprep.subr.bf16.mxu0 %v7281_v25  ;;  %v8057_v45 = vpop.f32.mrf.mxu1  ;;  %v7341_v25 = vld [vmem:[#allocation4 + $0xccc] ss:$16 sps:$4 sm:$0xff]  }
 0x273   :  { %4436 = vmatprep.subr.bf16.mxu1 %v7284_v21 }
 0x275   :  { %4394 = vmatpush1.bf16.msra.mxu0 %v7279_v5  ;;  %v7344_v5 = vld [vmem:[#allocation4 + $0xecc] ss:$16 sps:$4 sm:$0xff]  }
 0x276   :  { %4437 = vmatpush1.bf16.msra.mxu1 %v7282_v26  ;;  %4395 = vmatprep.subr.bf16.mxu0 %v7287_v55 }
 0x277   :  { %4438 = vmatprep.subr.bf16.mxu1 %v7290_v41  ;;  %v7339_v41 = vld [vmem:[#allocation4 + $0xcc8] ss:$16 sps:$4 sm:$0xff]  }
 0x279   :  { %4396 = vmatpush2.bf16.msra.mxu0 %v7285_v48 }
 0x27a   :  { %4439 = vmatpush2.bf16.msra.mxu1 %v7288_v27  ;;  %4397 = vmatprep.subr.bf16.mxu0 %v7293_v50  ;;  %v7342_v27 = vld [vmem:[#allocation4 + $0xec8] ss:$16 sps:$4 sm:$0xff]   ;;  %v7347_v50 = vld [vmem:[#allocation4 + $0xcac] ss:$16 sps:$4 sm:$0xff]  }
 0x27b   :  { %4440 = vmatprep.subr.bf16.mxu1 %v7296_v30 }
 0x27d   :  { %4398 = vmatpush2.bf16.msra.mxu0 %v7291_v51 }
 0x27e   :  { %4441 = vmatpush2.bf16.msra.mxu1 %v7294_v17  ;;  %4399 = vmatprep.subr.bf16.mxu0 %v7299_v53  ;;  %v7345_v17 = vld [vmem:[#allocation4 + $0xca8] ss:$16 sps:$4 sm:$0xff]  }
 0x27f   :  { %4442 = vmatprep.subr.bf16.mxu1 %v7302_v32  ;;  %v7353_v32 = vld [vmem:[#allocation4 + $0xc8c] ss:$16 sps:$4 sm:$0xff]  }
 0x281   :  { %4400 = vmatpush2.bf16.msra.mxu0 %v7297_v46 }
 0x282   :  { %4443 = vmatpush2.bf16.msra.mxu1 %v7300_v57  ;;  %4401 = vmatprep.subr.bf16.mxu0 %v7305_v59  ;;  %v7356_v57 = vld [vmem:[#allocation4 + $0xe8c] ss:$16 sps:$4 sm:$0xff]  }
 0x283   :  { %4444 = vmatprep.subr.bf16.mxu1 %v7308_v60  ;;  %v7351_v60 = vld [vmem:[#allocation4 + $0xc88] ss:$16 sps:$4 sm:$0xff]  }
 0x285   :  { %4402 = vmatpush2.bf16.msra.mxu0 %v7303_v11  ;;  %v7354_v11 = vld [vmem:[#allocation4 + $0xe88] ss:$16 sps:$4 sm:$0xff]  }
 0x286   :  { %4445 = vmatpush2.bf16.msra.mxu1 %v7306_v15  ;;  %4403 = vmatprep.subr.bf16.mxu0 %v7311_v42  ;;  %v7359_v15 = vld [vmem:[#allocation4 + $0xc6c] ss:$16 sps:$4 sm:$0xff]  }
 0x287   :  { %4446 = vmatprep.subr.bf16.mxu1 %v7314_v23  ;;  %v7357_v23 = vld [vmem:[#allocation4 + $0xc68] ss:$16 sps:$4 sm:$0xff]  }
 0x289   :  { %4404 = vmatpush2.bf16.msra.mxu0 %v7309_v34  ;;  %v7360_v34 = vld [vmem:[#allocation4 + $0xe68] ss:$16 sps:$4 sm:$0xff]  }
 0x28a   :  { %4447 = vmatpush2.bf16.msra.mxu1 %v7312_v29  ;;  %4405 = vmatprep.subr.bf16.mxu0 %v7317_v61  ;;  %v7365_v29 = vld [vmem:[#allocation4 + $0xc4c] ss:$16 sps:$4 sm:$0xff]  }
 0x28b   :  { %4448 = vmatprep.subr.bf16.mxu1 %v7320_v31  ;;  %v7368_v61 = vld [vmem:[#allocation4 + $0xe4c] ss:$16 sps:$4 sm:$0xff]   ;;  %v7363_v31 = vld [vmem:[#allocation4 + $0xc48] ss:$16 sps:$4 sm:$0xff]  }
 0x28d   :  { %4406 = vmatpush2.bf16.msra.mxu0 %v7315_v33  ;;  %v7366_v33 = vld [vmem:[#allocation4 + $0xe48] ss:$16 sps:$4 sm:$0xff]  }
 0x28e   :  { %4449 = vmatpush2.bf16.msra.mxu1 %v7318_v7  ;;  %4407 = vmatprep.subr.bf16.mxu0 %v7323_v2  ;;  %v7371_v7 = vld [vmem:[#allocation4 + $0xc2c] ss:$16 sps:$4 sm:$0xff]  }
 0x28f   :  { %4450 = vmatprep.subr.bf16.mxu1 %v7326_v24  ;;  %v7374_v2 = vld [vmem:[#allocation4 + $0xe2c] ss:$16 sps:$4 sm:$0xff]   ;;  %v7369_v24 = vld [vmem:[#allocation4 + $0xc28] ss:$16 sps:$4 sm:$0xff]  }
 0x291   :  { %4408 = vmatpush2.bf16.msra.mxu0 %v7321_v37  ;;  %v7372_v37 = vld [vmem:[#allocation4 + $0xe28] ss:$16 sps:$4 sm:$0xff]  }
 0x292   :  { %4451 = vmatpush2.bf16.msra.mxu1 %v7324_v39  ;;  %4409 = vmatprep.subr.bf16.mxu0 %v7329_v6  ;;  %v7377_v39 = vld [vmem:[#allocation4 + $0xc0c] ss:$16 sps:$4 sm:$0xff]  }
 0x293   :  { %4452 = vmatprep.subr.bf16.mxu1 %v7332_v40  ;;  %v7380_v6 = vld [vmem:[#allocation4 + $0xe0c] ss:$16 sps:$4 sm:$0xff]   ;;  %v7375_v40 = vld [vmem:[#allocation4 + $0xc08] ss:$16 sps:$4 sm:$0xff]  }
 0x295   :  { %4410 = vmatpush2.bf16.msra.mxu0 %v7327_v47  ;;  %v7378_v47 = vld [vmem:[#allocation4 + $0xe08] ss:$16 sps:$4 sm:$0xff]  }
 0x296   :  { %4453 = vmatpush2.bf16.msra.mxu1 %v7330_v35  ;;  %4465 = vmatprep.subr.bf16.mxu0 %v7335_v56  ;;  %v7383_v35 = vld [vmem:[#allocation4 + $0xdec] ss:$16 sps:$4 sm:$0xff]  }
 0x297   :  { %4508 = vmatprep.subr.bf16.mxu1 %v7338_v54  ;;  %v7386_v56 = vld [vmem:[#allocation4 + $0xfec] ss:$16 sps:$4 sm:$0xff]   ;;  %v7381_v54 = vld [vmem:[#allocation4 + $0xde8] ss:$16 sps:$4 sm:$0xff]  }
 0x298   :  { %v4155_v21 = vpop.f32.mrf.mxu0  ;;  %4412 = vmatmul.mubr.bf16.vlgmr.msra.gmra.mxu0 %v7994_v62  ;;  %v4198_v55 = vpop.f32.mrf.mxu1  ;;  %v7350_v62 = vld [vmem:[#allocation4 + $0xeac] ss:$16 sps:$4 sm:$0xff]  }
 0x299   :  { %v4156_v26 = vadd.f32 %v4155_v21, %v8047_v16  ;;  %4455 = vmatmul.mubr.bf16.vlgmr.msra.gmra.mxu1 %v7996_v63  ;;  %4466 = vmatpush1.bf16.msra.mxu0 %v7333_v20  ;;  %v7384_v20 = vld [vmem:[#allocation4 + $0xfe8] ss:$16 sps:$4 sm:$0xff]   ;;  %v8071_v21 = vld [vmem:[#allocation9 + $0x10] sm:$0xf] }
 0x29a   :  { %4497 = vmatprep.mubr.bf16.mxu0 %v7998_v1  ;;  %4509 = vmatpush1.bf16.msra.mxu1 %v7336_v19  ;;  %v8063_v48 = vpop.f32.mrf.mxu0  ;;  %v8066_v51 = vpop.f32.mrf.mxu1  ;;  %v7348_v1 = vld [vmem:[#allocation4 + $0xea8] ss:$16 sps:$4 sm:$0xff]   ;;  %v7389_v19 = vld [vmem:[#allocation4 + $0xdcc] ss:$16 sps:$4 sm:$0xff]  }
 0x29b   :  { %v4199_v30 = vadd.f32 %v4198_v55, %v4156_v26  ;;  %4540 = vmatprep.mubr.bf16.mxu1 %v8001_v3  ;;  %4467 = vmatprep.subr.bf16.mxu0 %v7341_v25  ;;  %v7392_v25 = vld [vmem:[#allocation4 + $0xfcc] ss:$16 sps:$4 sm:$0xff]   ;;  %v7387_v26 = vld [vmem:[#allocation4 + $0xdc8] ss:$16 sps:$4 sm:$0xff]  }
 0x29c   :  { %v4159_v16 = vpop.f32.mrf.mxu0  ;;  %4510 = vmatprep.subr.bf16.mxu1 %v7344_v5  ;;  %v4202_v53 = vpop.f32.mrf.mxu1  ;;  %v1290_v5 = vrot.slane %v8071_v21, %v7861_v8 }
 0x29d   :  { %v4160_v63 = vadd.f32 %v4159_v16, %v8053_v36  ;;  %4468 = vmatpush1.bf16.msra.mxu0 %v7339_v41  ;;  %v4551_v59 = vmax.f32 %v4199_v30, 0.0  ;;  %v7362_v36 = vld [vmem:[#allocation4 + $0xe6c] ss:$16 sps:$4 sm:$0xff]   ;;  %v7390_v41 = vld [vmem:[#allocation4 + $0xfc8] ss:$16 sps:$4 sm:$0xff]  }
 0x29e   :  { %4511 = vmatpush1.bf16.msra.mxu1 %v7342_v27  ;;  %4469 = vmatprep.subr.bf16.mxu0 %v7347_v50  ;;  %v3904_v55 = vadd.f32 %v8019_v28, %v1290_v5  ;;  %v7395_v27 = vld [vmem:[#allocation4 + $0xdac] ss:$16 sps:$4 sm:$0xff]   ;;  %v3900_v30 = vadd.f32 %v8010_v14, %v1290_v5  ;;  %v7402_v14 = vld [vmem:[#allocation4 + $0xf88] ss:$16 sps:$4 sm:$0xff]   ;;  %v7525_v5 = vld [vmem:[#allocation6 + $0x2e0] ss:$16 sps:$4 sm:$0xff]  }
 0x29f   :  { %v4203_v46 = vadd.f32 %v4202_v53, %v4160_v63  ;;  %4512 = vmatprep.subr.bf16.mxu1 %v7350_v62  ;;  %v7398_v50 = vld [vmem:[#allocation4 + $0xfac] ss:$16 sps:$4 sm:$0xff]   ;;  %v7393_v62 = vld [vmem:[#allocation4 + $0xda8] ss:$16 sps:$4 sm:$0xff]  }
 0x2a0   :  { %v3947_v16 = vadd.f32 %v8021_v18, %v3904_v55  ;;  %v7396_v63 = vld [vmem:[#allocation4 + $0xfa8] ss:$16 sps:$4 sm:$0xff]   ;;  %v7404_v53 = vld [vmem:[#allocation4 + $0xf8c] ss:$16 sps:$4 sm:$0xff]   ;;  %v3943_v28 = vadd.f32 %v8015_v58, %v3900_v30  ;;  %v7443_v55 = vld [vmem:[#allocation6 + $0x64] ss:$16 sps:$4 sm:$0xff]  }
 0x2a1   :  { %v4555_v3 = vmax.f32 %v4203_v46, 0.0  ;;  %4470 = vmatpush1.bf16.msra.mxu0 %v7345_v17  ;;  %v7401_v17 = vld [vmem:[#allocation4 + $0xd8c] ss:$16 sps:$4 sm:$0xff]   ;;  %v7531_v30 = vld [vmem:[#allocation6 + $0x2a0] ss:$16 sps:$4 sm:$0xff]  }
 0x2a2   :  { %4513 = vmatpush1.bf16.msra.mxu1 %v7348_v1  ;;  %4471 = vmatprep.subr.bf16.mxu0 %v7353_v32  ;;  %v3990_v1 = vadd.f32 %v8037_v49, %v3947_v16  ;;  %v7399_v32 = vld [vmem:[#allocation4 + $0xd88] ss:$16 sps:$4 sm:$0xff]   ;;  %v3986_v46 = vadd.f32 %v8027_v38, %v3943_v28  ;;  %v7410_v18 = vld [vmem:[#allocation4 + $0xf6c] ss:$16 sps:$4 sm:$0xff]   ;;  %v7536_v16 = vld [vmem:[#allocation6 + $0x284] ss:$16 sps:$4 sm:$0xff]  }
 0x2a3   :  { %v8069_v42 = vpack.c.bf16 %v4555_v3, %v4551_v59  ;;  %4514 = vmatprep.subr.bf16.mxu1 %v7356_v57  ;;  %v7407_v57 = vld [vmem:[#allocation4 + $0xd6c] ss:$16 sps:$4 sm:$0xff]   ;;  %v7405_v3 = vld [vmem:[#allocation4 + $0xd68] ss:$16 sps:$4 sm:$0xff]   ;;  %v7539_v28 = vld [vmem:[#allocation6 + $0x264] ss:$16 sps:$4 sm:$0xff]  }
 0x2a4   :  { %v4033_v59 = vadd.f32 %v8039_v44, %v3990_v1  ;;  %v7408_v49 = vld [vmem:[#allocation4 + $0xf68] ss:$16 sps:$4 sm:$0xff]   ;;  %v7416_v38 = vld [vmem:[#allocation4 + $0xf4c] ss:$16 sps:$4 sm:$0xff]   ;;  %v7452_v1 = vld [vmem:[#allocation6 + $0x4] ss:$16 sps:$4 sm:$0xff]  }
 0x2a5   :  { %4472 = vmatpush1.bf16.msra.mxu0 %v7351_v60  ;;  %v4029_v60 = vadd.f32 %v8032_v52, %v3986_v46  ;;  %v7414_v44 = vld [vmem:[#allocation4 + $0xf48] ss:$16 sps:$4 sm:$0xff]   ;;  %v7422_v52 = vld [vmem:[#allocation4 + $0xf2c] ss:$16 sps:$4 sm:$0xff]   ;;  %v7450_v46 = vld [vmem:[#allocation6] ss:$16 sps:$4 sm:$0xff]  }
 0x2a6   :  { %4515 = vmatpush1.bf16.msra.mxu1 %v7354_v11  ;;  %4473 = vmatprep.subr.bf16.mxu0 %v7359_v15  ;;  %v4076_v58 = vadd.f32 %v8055_v43, %v4033_v59  ;;  %v7413_v11 = vld [vmem:[#allocation4 + $0xd4c] ss:$16 sps:$4 sm:$0xff]   ;;  %v7453_v59 = vld [vmem:[#allocation6 + $0x1e0] ss:$16 sps:$4 sm:$0xff]  }
 0x2a7   :  { %4516 = vmatprep.subr.bf16.mxu1 %v7362_v36  ;;  %v4072_v15 = vadd.f32 %v8045_v4, %v4029_v60  ;;  %v4161_v36 = vpop.f32.mrf.mxu0  ;;  %v7420_v4 = vld [vmem:[#allocation4 + $0xf28] ss:$16 sps:$4 sm:$0xff]   ;;  %v7458_v60 = vld [vmem:[#allocation6 + $0x1c4] ss:$16 sps:$4 sm:$0xff]  }
 0x2a9   :  { %4474 = vmatpush1.bf16.msra.mxu0 %v7357_v23  ;;  %v7411_v23 = vld [vmem:[#allocation4 + $0xd48] ss:$16 sps:$4 sm:$0xff]   ;;  %v4115_v43 = vadd.f32 %v8050_v22, %v4072_v15  ;;  %v7546_v15 = vld [vmem:[#allocation6 + $0x200] ss:$16 sps:$4 sm:$0xff]  }
 0x2aa   :  { %4517 = vmatpush1.bf16.msra.mxu1 %v7360_v34  ;;  %4475 = vmatprep.subr.bf16.mxu0 %v7365_v29  ;;  %v4119_v34 = vadd.f32 %v8057_v45, %v4076_v58  ;;  %v7419_v29 = vld [vmem:[#allocation4 + $0xd2c] ss:$16 sps:$4 sm:$0xff]   ;;  %v7426_v22 = vld [vmem:[#allocation4 + $0xf08] ss:$16 sps:$4 sm:$0xff]   ;;  %v7543_v58 = vld [vmem:[#allocation6 + $0x220] ss:$16 sps:$4 sm:$0xff]  }
 0x2ab   :  { %4518 = vmatprep.subr.bf16.mxu1 %v7368_v61  ;;  %v7428_v45 = vld [vmem:[#allocation4 + $0xf0c] ss:$16 sps:$4 sm:$0xff]  }
 0x2ac   :  { %v4162_v61 = vadd.f32 %v4161_v36, %v4119_v34  ;;  %v7459_v36 = vld [vmem:[#allocation6 + $0x1a0] ss:$16 sps:$4 sm:$0xff]   ;;  %v7464_v34 = vld [vmem:[#allocation6 + $0x184] ss:$16 sps:$4 sm:$0xff]  }
 0x2ad   :  { %4476 = vmatpush1.bf16.msra.mxu0 %v7363_v31  ;;  %v7417_v31 = vld [vmem:[#allocation4 + $0xd28] ss:$16 sps:$4 sm:$0xff]  }
 0x2ae   :  { %4519 = vmatpush1.bf16.msra.mxu1 %v7366_v33  ;;  %4477 = vmatprep.subr.bf16.mxu0 %v7371_v7  ;;  %v4158_v33 = vadd.f32 %v8063_v48, %v4115_v43  ;;  %v7425_v7 = vld [vmem:[#allocation4 + $0xd0c] ss:$16 sps:$4 sm:$0xff]   ;;  %v7429_v48 = vld [vmem:[#allocation6 + $0xe0] ss:$16 sps:$4 sm:$0xff]   ;;  %v7467_v43 = vld [vmem:[#allocation6 + $0x164] ss:$16 sps:$4 sm:$0xff]  }
 0x2af   :  { %4520 = vmatprep.subr.bf16.mxu1 %v7374_v2  ;;  %v4204_v2 = vpop.f32.mrf.mxu1 }
 0x2b1   :  { %4478 = vmatpush1.bf16.msra.mxu0 %v7369_v24  ;;  %v4205_v24 = vadd.f32 %v4204_v2, %v4162_v61  ;;  %v7552_v61 = vld [vmem:[#allocation6 + $0x3c0] ss:$16 sps:$4 sm:$0xff]  }
 0x2b2   :  { %4521 = vmatpush1.bf16.msra.mxu1 %v7372_v37  ;;  %4479 = vmatprep.subr.bf16.mxu0 %v7377_v39  ;;  %v7423_v37 = vld [vmem:[#allocation4 + $0xd08] ss:$16 sps:$4 sm:$0xff]   ;;  %v4201_v39 = vadd.f32 %v8066_v51, %v4158_v33  ;;  %v7432_v51 = vld [vmem:[#allocation6 + $0xc0] ss:$16 sps:$4 sm:$0xff]   ;;  %v7557_v33 = vld [vmem:[#allocation6 + $0x3a4] ss:$16 sps:$4 sm:$0xff]  }
 0x2b3   :  { %4522 = vmatprep.subr.bf16.mxu1 %v7380_v6  ;;  %v7431_v6 = vld [vmem:[#allocation6 + $0xe4] ss:$16 sps:$4 sm:$0xff]   ;;  %v7468_v2 = vld [vmem:[#allocation6 + $0x140] ss:$16 sps:$4 sm:$0xff]  }
 0x2b5   :  { %4480 = vmatpush1.bf16.msra.mxu0 %v7375_v40  ;;  %v4556_v40 = vmax.f32 %v4205_v24, 0.0  ;;  %v7473_v24 = vld [vmem:[#allocation6 + $0x124] ss:$16 sps:$4 sm:$0xff]  }
 0x2b6   :  { %4523 = vmatpush1.bf16.msra.mxu1 %v7378_v47  ;;  %4481 = vmatprep.subr.bf16.mxu0 %v7383_v35  ;;  %v4552_v47 = vmax.f32 %v4201_v39, 0.0  ;;  %v7434_v35 = vld [vmem:[#allocation6 + $0xc4] ss:$16 sps:$4 sm:$0xff]   ;;  %v7471_v39 = vld [vmem:[#allocation6 + $0x120] ss:$16 sps:$4 sm:$0xff]  }
 0x2b7   :  { %4524 = vmatprep.subr.bf16.mxu1 %v7386_v56 }
 0x2b8   :  { %v8089_v56 = vpack.c.bf16 %v4556_v40, %v4552_v47  ;;  %v7561_v40 = vld [vmem:[#allocation6 + $0x360] ss:$16 sps:$4 sm:$0xff]   ;;  %v7479_v47 = vld [vmem:[#allocation6 + $0xec] ss:$16 sps:$4 sm:$0xff]  }
 0x2b9   :  { %4482 = vmatpush2.bf16.msra.mxu0 %v7381_v54  ;;  %v7437_v54 = vld [vmem:[#allocation6 + $0xa4] ss:$16 sps:$4 sm:$0xff]  }
 0x2ba   :  { %4525 = vmatpush2.bf16.msra.mxu1 %v7384_v20  ;;  %4483 = vmatprep.subr.bf16.mxu0 %v7389_v19  ;;  %v7435_v20 = vld [vmem:[#allocation6 + $0xa0] ss:$16 sps:$4 sm:$0xff]   ;;  %v7440_v19 = vld [vmem:[#allocation6 + $0x84] ss:$16 sps:$4 sm:$0xff]  }
 0x2bb   :  { %4526 = vmatprep.subr.bf16.mxu1 %v7392_v25  ;;  %v7438_v25 = vld [vmem:[#allocation6 + $0x80] ss:$16 sps:$4 sm:$0xff]  }
 0x2bd   :  { %4484 = vmatpush2.bf16.msra.mxu0 %v7387_v26  ;;  %v7527_v26 = vld [vmem:[#allocation6 + $0x2e4] ss:$16 sps:$4 sm:$0xff]  }
 0x2be   :  { %4527 = vmatpush2.bf16.msra.mxu1 %v7390_v41  ;;  %4485 = vmatprep.subr.bf16.mxu0 %v7395_v27  ;;  %v7530_v41 = vld [vmem:[#allocation6 + $0x2c4] ss:$16 sps:$4 sm:$0xff]  }
 0x2bf   :  { %4528 = vmatprep.subr.bf16.mxu1 %v7398_v50  ;;  %v7533_v27 = vld [vmem:[#allocation6 + $0x2a4] ss:$16 sps:$4 sm:$0xff]  }
 0x2c0   :  { %v7446_v50 = vld [vmem:[#allocation6 + $0x44] ss:$16 sps:$4 sm:$0xff]  }
 0x2c1   :  { %4486 = vmatpush2.bf16.msra.mxu0 %v7393_v62  ;;  %v7444_v62 = vld [vmem:[#allocation6 + $0x40] ss:$16 sps:$4 sm:$0xff]  }
 0x2c2   :  { %4529 = vmatpush2.bf16.msra.mxu1 %v7396_v63  ;;  %4487 = vmatprep.subr.bf16.mxu0 %v7401_v17  ;;  %v7449_v63 = vld [vmem:[#allocation6 + $0x24] ss:$16 sps:$4 sm:$0xff]   ;;  %v7534_v17 = vld [vmem:[#allocation6 + $0x280] ss:$16 sps:$4 sm:$0xff]  }
 0x2c3   :  { %4530 = vmatprep.subr.bf16.mxu1 %v7404_v53  ;;  %v7447_v53 = vld [vmem:[#allocation6 + $0x20] ss:$16 sps:$4 sm:$0xff]  }
 0x2c5   :  { %4488 = vmatpush2.bf16.msra.mxu0 %v7399_v32  ;;  %v7537_v32 = vld [vmem:[#allocation6 + $0x260] ss:$16 sps:$4 sm:$0xff]  }
 0x2c6   :  { %4531 = vmatpush2.bf16.msra.mxu1 %v7402_v14  ;;  %4489 = vmatprep.subr.bf16.mxu0 %v7407_v57  ;;  %v7542_v14 = vld [vmem:[#allocation6 + $0x244] ss:$16 sps:$4 sm:$0xff]  }
 0x2c7   :  { %4532 = vmatprep.subr.bf16.mxu1 %v7410_v18  ;;  %v7455_v57 = vld [vmem:[#allocation6 + $0x1e4] ss:$16 sps:$4 sm:$0xff]   ;;  %v7540_v18 = vld [vmem:[#allocation6 + $0x240] ss:$16 sps:$4 sm:$0xff]  }
 0x2c9   :  { %4490 = vmatpush2.bf16.msra.mxu0 %v7405_v3  ;;  %v7545_v3 = vld [vmem:[#allocation6 + $0x224] ss:$16 sps:$4 sm:$0xff]  }
 0x2ca   :  { %4533 = vmatpush2.bf16.msra.mxu1 %v7408_v49  ;;  %4491 = vmatprep.subr.bf16.mxu0 %v7413_v11  ;;  %v7456_v49 = vld [vmem:[#allocation6 + $0x1c0] ss:$16 sps:$4 sm:$0xff]   ;;  %v7548_v11 = vld [vmem:[#allocation6 + $0x204] ss:$16 sps:$4 sm:$0xff]  }
 0x2cb   :  { %4534 = vmatprep.subr.bf16.mxu1 %v7416_v38  ;;  %v7461_v38 = vld [vmem:[#allocation6 + $0x1a4] ss:$16 sps:$4 sm:$0xff]  }
 0x2cd   :  { %4492 = vmatpush2.bf16.msra.mxu0 %v7411_v23  ;;  %v7551_v23 = vld [vmem:[#allocation6 + $0x3e4] ss:$16 sps:$4 sm:$0xff]  }
 0x2ce   :  { %4535 = vmatpush2.bf16.msra.mxu1 %v7414_v44  ;;  %4493 = vmatprep.subr.bf16.mxu0 %v7419_v29  ;;  %v7549_v44 = vld [vmem:[#allocation6 + $0x3e0] ss:$16 sps:$4 sm:$0xff]  }
 0x2cf   :  { %4536 = vmatprep.subr.bf16.mxu1 %v7422_v52  ;;  %v7462_v29 = vld [vmem:[#allocation6 + $0x180] ss:$16 sps:$4 sm:$0xff]   ;;  %v7554_v52 = vld [vmem:[#allocation6 + $0x3c4] ss:$16 sps:$4 sm:$0xff]  }
 0x2d1   :  { %4494 = vmatpush2.bf16.msra.mxu0 %v7417_v31  ;;  %v7465_v31 = vld [vmem:[#allocation6 + $0x160] ss:$16 sps:$4 sm:$0xff]  }
 0x2d2   :  { %4537 = vmatpush2.bf16.msra.mxu1 %v7420_v4  ;;  %4495 = vmatprep.subr.bf16.mxu0 %v7425_v7  ;;  %v7470_v4 = vld [vmem:[#allocation6 + $0x144] ss:$16 sps:$4 sm:$0xff]   ;;  %v7555_v7 = vld [vmem:[#allocation6 + $0x3a0] ss:$16 sps:$4 sm:$0xff]  }
 0x2d3   :  { %4538 = vmatprep.subr.bf16.mxu1 %v7428_v45  ;;  %v7560_v45 = vld [vmem:[#allocation6 + $0x384] ss:$16 sps:$4 sm:$0xff]  }
 0x2d5   :  { %4496 = vmatpush2.bf16.msra.mxu0 %v7423_v37  ;;  %v7558_v37 = vld [vmem:[#allocation6 + $0x380] ss:$16 sps:$4 sm:$0xff]  }
 0x2d6   :  { %4539 = vmatpush2.bf16.msra.mxu1 %v7426_v22  ;;  %5353 = vmatprep.subr.bf16.mxu0 %v7431_v6  ;;  %v7563_v22 = vld [vmem:[#allocation6 + $0x364] ss:$16 sps:$4 sm:$0xff]  }
 0x2d7   :  { %5396 = vmatprep.subr.bf16.mxu1 %v7527_v26  ;;  %v7476_v6 = vld [vmem:[#allocation6 + $0x104] ss:$16 sps:$4 sm:$0xff]   ;;  %v7488_v26 = vld [vmem:[#allocation6 + $0x8c] ss:$16 sps:$4 sm:$0xff]  }
 0x2d8   :  { %4498 = vmatmul.mubr.bf16.vlgmr.msra.gmra.mxu0 %v7944_v12  ;;  %v7528_v12 = vld [vmem:[#allocation6 + $0x2c0] ss:$16 sps:$4 sm:$0xff]  }
 0x2d9   :  { %4541 = vmatmul.mubr.bf16.vlgmr.msra.gmra.mxu1 %v7946_v13  ;;  %5354 = vmatpush1.bf16.msra.mxu0 %v7429_v48  ;;  %v7441_v13 = vld [vmem:[#allocation6 + $0x60] ss:$16 sps:$4 sm:$0xff]  }
 0x2da   :  { %5385 = vmatprep.mubr.bf16.mxu0 %v8089_v56  ;;  %5355 = vmatprep.subr.bf16.mxu0 %v7434_v35  ;;  %v7474_v48 = vld [vmem:[#allocation6 + $0x100] ss:$16 sps:$4 sm:$0xff]   ;;  %v7477_v35 = vld [vmem:[#allocation6 + $0xe8] ss:$16 sps:$4 sm:$0xff]  }
 0x2db   :  { %5397 = vmatpush1.bf16.msra.mxu1 %v7525_v5  ;;  %v7483_v5 = vld [vmem:[#allocation6 + $0xa8] ss:$16 sps:$4 sm:$0xff]  }
 0x2dc   :  { %5398 = vmatprep.subr.bf16.mxu1 %v7530_v41  ;;  %v7567_v41 = vld [vmem:[#allocation6 + $0x320] ss:$16 sps:$4 sm:$0xff]  }
 0x2dd   :  { %5356 = vmatpush1.bf16.msra.mxu0 %v7432_v51  ;;  %v7482_v51 = vld [vmem:[#allocation6 + $0xcc] ss:$16 sps:$4 sm:$0xff]  }
 0x2de   :  { %5357 = vmatprep.subr.bf16.mxu0 %v7437_v54  ;;  %v7480_v54 = vld [vmem:[#allocation6 + $0xc8] ss:$16 sps:$4 sm:$0xff]  }
 0x2df   :  { %5399 = vmatpush1.bf16.msra.mxu1 %v7528_v12  ;;  %v7486_v12 = vld [vmem:[#allocation6 + $0x88] ss:$16 sps:$4 sm:$0xff]  }
 0x2e0   :  { %5400 = vmatprep.subr.bf16.mxu1 %v7533_v27  ;;  %v7570_v27 = vld [vmem:[#allocation6 + $0x300] ss:$16 sps:$4 sm:$0xff]  }
 0x2e1   :  { %5358 = vmatpush1.bf16.msra.mxu0 %v7435_v20  ;;  %v7485_v20 = vld [vmem:[#allocation6 + $0xac] ss:$16 sps:$4 sm:$0xff]  }
 0x2e2   :  { %5359 = vmatprep.subr.bf16.mxu0 %v7440_v19  ;;  %v7566_v19 = vld [vmem:[#allocation6 + $0x344] ss:$16 sps:$4 sm:$0xff]  }
 0x2e3   :  { %5401 = vmatpush1.bf16.msra.mxu1 %v7531_v30  ;;  %v7494_v30 = vld [vmem:[#allocation6 + $0x4c] ss:$16 sps:$4 sm:$0xff]  }
 0x2e4   :  { %5402 = vmatprep.subr.bf16.mxu1 %v7536_v16  ;;  %v7492_v16 = vld [vmem:[#allocation6 + $0x48] ss:$16 sps:$4 sm:$0xff]  }
 0x2e5   :  { %5360 = vmatpush1.bf16.msra.mxu0 %v7438_v25  ;;  %v7564_v25 = vld [vmem:[#allocation6 + $0x340] ss:$16 sps:$4 sm:$0xff]  }
 0x2e6   :  { %5361 = vmatprep.subr.bf16.mxu0 %v7443_v55  ;;  %v7569_v55 = vld [vmem:[#allocation6 + $0x324] ss:$16 sps:$4 sm:$0xff]  }
 0x2e7   :  { %5403 = vmatpush1.bf16.msra.mxu1 %v7534_v17  ;;  %v7495_v17 = vld [vmem:[#allocation6 + $0x28] ss:$16 sps:$4 sm:$0xff]  }
 0x2e8   :  { %5404 = vmatprep.subr.bf16.mxu1 %v7539_v28  ;;  %v7498_v28 = vld [vmem:[#allocation6 + $0x8] ss:$16 sps:$4 sm:$0xff]  }
 0x2e9   :  { %5362 = vmatpush1.bf16.msra.mxu0 %v7441_v13  ;;  %v7491_v13 = vld [vmem:[#allocation6 + $0x6c] ss:$16 sps:$4 sm:$0xff]  }
 0x2ea   :  { %5363 = vmatprep.subr.bf16.mxu0 %v7446_v50  ;;  %v7489_v50 = vld [vmem:[#allocation6 + $0x68] ss:$16 sps:$4 sm:$0xff]  }
 0x2eb   :  { %5405 = vmatpush1.bf16.msra.mxu1 %v7537_v32  ;;  %v7501_v32 = vld [vmem:[#allocation6 + $0x1e8] ss:$16 sps:$4 sm:$0xff]  }
 0x2ec   :  { %5406 = vmatprep.subr.bf16.mxu1 %v7542_v14  ;;  %v7504_v14 = vld [vmem:[#allocation6 + $0x1c8] ss:$16 sps:$4 sm:$0xff]  }
 0x2ed   :  { %5364 = vmatpush1.bf16.msra.mxu0 %v7444_v62  ;;  %v7575_v62 = vld [vmem:[#allocation6 + $0x2ec] ss:$16 sps:$4 sm:$0xff]  }
 0x2ee   :  { %5365 = vmatprep.subr.bf16.mxu0 %v7449_v63  ;;  %v7497_v63 = vld [vmem:[#allocation6 + $0x2c] ss:$16 sps:$4 sm:$0xff]  }
 0x2ef   :  { %5407 = vmatpush1.bf16.msra.mxu1 %v7540_v18  ;;  %v7507_v18 = vld [vmem:[#allocation6 + $0x1a8] ss:$16 sps:$4 sm:$0xff]  }
 0x2f0   :  { %5408 = vmatprep.subr.bf16.mxu1 %v7545_v3  ;;  %v7510_v3 = vld [vmem:[#allocation6 + $0x188] ss:$16 sps:$4 sm:$0xff]  }
 0x2f1   :  { %5366 = vmatpush1.bf16.msra.mxu0 %v7447_v53  ;;  %v7500_v53 = vld [vmem:[#allocation6 + $0xc] ss:$16 sps:$4 sm:$0xff]  }
 0x2f2   :  { %5367 = vmatprep.subr.bf16.mxu0 %v7452_v1  ;;  %v7503_v1 = vld [vmem:[#allocation6 + $0x1ec] ss:$16 sps:$4 sm:$0xff]  }
 0x2f3   :  { %5409 = vmatpush1.bf16.msra.mxu1 %v7543_v58  ;;  %v7513_v58 = vld [vmem:[#allocation6 + $0x168] ss:$16 sps:$4 sm:$0xff]  }
 0x2f4   :  { %5410 = vmatprep.subr.bf16.mxu1 %v7548_v11  ;;  %v7516_v11 = vld [vmem:[#allocation6 + $0x148] ss:$16 sps:$4 sm:$0xff]  }
 0x2f5   :  { %5368 = vmatpush1.bf16.msra.mxu0 %v7450_v46  ;;  %v7506_v46 = vld [vmem:[#allocation6 + $0x1cc] ss:$16 sps:$4 sm:$0xff]  }
 0x2f6   :  { %5369 = vmatprep.subr.bf16.mxu0 %v7455_v57  ;;  %v7509_v57 = vld [vmem:[#allocation6 + $0x1ac] ss:$16 sps:$4 sm:$0xff]  }
 0x2f7   :  { %5411 = vmatpush1.bf16.msra.mxu1 %v7546_v15  ;;  %v7519_v15 = vld [vmem:[#allocation6 + $0x128] ss:$16 sps:$4 sm:$0xff]  }
 0x2f8   :  { %5412 = vmatprep.subr.bf16.mxu1 %v7551_v23  ;;  %v7522_v23 = vld [vmem:[#allocation6 + $0x108] ss:$16 sps:$4 sm:$0xff]  }
 0x2f9   :  { %5370 = vmatpush2.bf16.msra.mxu0 %v7453_v59  ;;  %v7512_v59 = vld [vmem:[#allocation6 + $0x18c] ss:$16 sps:$4 sm:$0xff]  }
 0x2fa   :  { %5371 = vmatprep.subr.bf16.mxu0 %v7458_v60  ;;  %v7515_v60 = vld [vmem:[#allocation6 + $0x16c] ss:$16 sps:$4 sm:$0xff]  }
 0x2fb   :  { %5413 = vmatpush2.bf16.msra.mxu1 %v7549_v44  ;;  %v4284_v44 = vpop.f32.mrf.mxu1 }
 0x2fc   :  { %5414 = vmatprep.subr.bf16.mxu1 %v7554_v52 }
 0x2fd   :  { %5372 = vmatpush2.bf16.msra.mxu0 %v7456_v49  ;;  %v7518_v49 = vld [vmem:[#allocation6 + $0x14c] ss:$16 sps:$4 sm:$0xff]   ;;  %v4286_v52 = vpop.f32.mrf.mxu1 }
 0x2fe   :  { %5373 = vmatprep.subr.bf16.mxu0 %v7461_v38  ;;  %v7521_v38 = vld [vmem:[#allocation6 + $0x12c] ss:$16 sps:$4 sm:$0xff]  }
 0x2ff   :  { %5415 = vmatpush2.bf16.msra.mxu1 %v7552_v61  ;;  %v4288_v61 = vpop.f32.mrf.mxu1 }
 0x300   :  { %5416 = vmatprep.subr.bf16.mxu1 %v7557_v33 }
 0x301   :  { %5374 = vmatpush2.bf16.msra.mxu0 %v7459_v36  ;;  %v7524_v36 = vld [vmem:[#allocation6 + $0x10c] ss:$16 sps:$4 sm:$0xff]   ;;  %v4290_v33 = vpop.f32.mrf.mxu1 }
 0x302   :  { %5375 = vmatprep.subr.bf16.mxu0 %v7464_v34  ;;  %v4241_v34 = vpop.f32.mrf.mxu0 }
 0x303   :  { %5417 = vmatpush2.bf16.msra.mxu1 %v7555_v7 }
 0x304   :  { %5418 = vmatprep.subr.bf16.mxu1 %v7560_v45 }
 0x305   :  { %5376 = vmatpush2.bf16.msra.mxu0 %v7462_v29  ;;  %v4243_v29 = vpop.f32.mrf.mxu0 }
 0x306   :  { %5377 = vmatprep.subr.bf16.mxu0 %v7467_v43 }
 0x307   :  { %5419 = vmatpush2.bf16.msra.mxu1 %v7558_v37  ;;  %v4245_v43 = vpop.f32.mrf.mxu0  ;;  %v1298_v37 = vrot.slane %v8071_v21, %v7867_v10 }
 0x308   :  { %5420 = vmatprep.subr.bf16.mxu1 %v7563_v22 }
 0x309   :  { %5378 = vmatpush2.bf16.msra.mxu0 %v7465_v31  ;;  %v4247_v31 = vpop.f32.mrf.mxu0 }
 0x30a   :  { %5379 = vmatprep.subr.bf16.mxu0 %v7470_v4 }
 0x30b   :  { %5421 = vmatpush2.bf16.msra.mxu1 %v7561_v40 }
 0x30c   :  { %5422 = vmatprep.subr.bf16.mxu1 %v7566_v19 }
 0x30d   :  { %5380 = vmatpush2.bf16.msra.mxu0 %v7468_v2 }
 0x30e   :  { %5381 = vmatprep.subr.bf16.mxu0 %v7473_v24 }
 0x30f   :  { %5423 = vmatpush2.bf16.msra.mxu1 %v7564_v25 }
 0x310   :  { %5424 = vmatprep.subr.bf16.mxu1 %v7569_v55 }
 0x311   :  { %5382 = vmatpush2.bf16.msra.mxu0 %v7471_v39 }
 0x312   :  { %5383 = vmatprep.subr.bf16.mxu0 %v7476_v6  ;;  %v4244_v6 = vadd.f32 %v4243_v29, %v1298_v37 }
 0x313   :  { %5425 = vmatpush2.bf16.msra.mxu1 %v7567_v41 }
 0x315   :  { %5384 = vmatpush2.bf16.msra.mxu0 %v7474_v48 }
 0x316   :  { %5439 = vmatprep.subr.bf16.mxu0 %v7479_v47 }
 0x318   :  { %5386 = vmatmul.mubr.bf16.vlgmr.msra.gmra.mxu0 %v8069_v42  ;;  %v4327_v4 = vpop.f32.mrf.mxu0 }
 0x319   :  { %5440 = vmatpush1.bf16.msra.mxu0 %v7477_v35  ;;  %5471 = vmatprep.mubr.bf16.mxu0 %v8089_v56  ;;  %v7572_v56 = vld [vmem:[#allocation6 + $0x304] ss:$16 sps:$4 sm:$0xff]   ;;  %v4370_v7 = vpop.f32.mrf.mxu1 }
 0x31a   :  { %5441 = vmatprep.subr.bf16.mxu0 %v7482_v51  ;;  %5426 = vmatprep.subr.bf16.mxu1 %v7572_v56  ;;  %v4329_v2 = vpop.f32.mrf.mxu0 }
 0x31b   :  { %5427 = vmatpush2.bf16.msra.mxu1 %v7570_v27  ;;  %v4372_v45 = vpop.f32.mrf.mxu1 }
 0x31c   :  { %5482 = vmatprep.subr.bf16.mxu1 %v7575_v62  ;;  %v4331_v24 = vpop.f32.mrf.mxu0 }
 0x31d   :  { %5442 = vmatpush1.bf16.msra.mxu0 %v7480_v54  ;;  %v4374_v39 = vpop.f32.mrf.mxu1  ;;  %v4287_v54 = vadd.f32 %v4286_v52, %v4244_v6  ;;  %v7621_v52 = vld [vmem:[#allocation7 + $0x78] sm:$0xff]  }
 0x31e   :  { %5443 = vmatprep.subr.bf16.mxu0 %v7485_v20  ;;  %v4333_v22 = vpop.f32.mrf.mxu0  ;;  %v4248_v20 = vadd.f32 %v4247_v31, %v1298_v37  ;;  %v7625_v37 = vld [vmem:[#allocation7 + $0x68] sm:$0xff]  }
 0x31f   :  { %v4376_v40 = vpop.f32.mrf.mxu1 }
 0x321   :  { %5444 = vmatpush1.bf16.msra.mxu0 %v7483_v5 }
 0x322   :  { %5445 = vmatprep.subr.bf16.mxu0 %v7488_v26  ;;  %v4330_v26 = vadd.f32 %v4329_v2, %v4287_v54  ;;  %v7624_v2 = vld [vmem:[#allocation7 + $0x30] sm:$0xff]   ;;  %v7628_v54 = vld [vmem:[#allocation7 + $0x20] sm:$0xff]  }
 0x324   :  { %v4373_v27 = vadd.f32 %v4372_v45, %v4330_v26  ;;  %v7582_v26 = vld [vmem:[#allocation6 + $0x288] ss:$16 sps:$4 sm:$0xff]  }
 0x325   :  { %5446 = vmatpush1.bf16.msra.mxu0 %v7486_v12  ;;  %v4291_v12 = vadd.f32 %v4290_v33, %v4248_v20  ;;  %v7629_v20 = vld [vmem:[#allocation7 + $0x58] sm:$0xff]  }
 0x326   :  { %5447 = vmatprep.subr.bf16.mxu0 %v7491_v13 }
 0x329   :  { %5448 = vmatpush1.bf16.msra.mxu0 %v7489_v50 }
 0x32a   :  { %5449 = vmatprep.subr.bf16.mxu0 %v7494_v30 }
 0x32d   :  { %5450 = vmatpush1.bf16.msra.mxu0 %v7492_v16 }
 0x32e   :  { %5451 = vmatprep.subr.bf16.mxu0 %v7497_v63 }
 0x331   :  { %5452 = vmatpush1.bf16.msra.mxu0 %v7495_v17 }
 0x332   :  { %5453 = vmatprep.subr.bf16.mxu0 %v7500_v53 }
 0x335   :  { %5454 = vmatpush1.bf16.msra.mxu0 %v7498_v28 }
 0x336   :  { %5455 = vmatprep.subr.bf16.mxu0 %v7503_v1 }
 0x339   :  { %5456 = vmatpush2.bf16.msra.mxu0 %v7501_v32 }
 0x33a   :  { %5457 = vmatprep.subr.bf16.mxu0 %v7506_v46 }
 0x33d   :  { %5458 = vmatpush2.bf16.msra.mxu0 %v7504_v14 }
 0x33e   :  { %5459 = vmatprep.subr.bf16.mxu0 %v7509_v57 }
 0x341   :  { %5460 = vmatpush2.bf16.msra.mxu0 %v7507_v18 }
 0x342   :  { %5461 = vmatprep.subr.bf16.mxu0 %v7512_v59 }
 0x345   :  { %5462 = vmatpush2.bf16.msra.mxu0 %v7510_v3 }
 0x346   :  { %5463 = vmatprep.subr.bf16.mxu0 %v7515_v60 }
 0x349   :  { %5464 = vmatpush2.bf16.msra.mxu0 %v7513_v58 }
 0x34a   :  { %5465 = vmatprep.subr.bf16.mxu0 %v7518_v49 }
 0x34d   :  { %5466 = vmatpush2.bf16.msra.mxu0 %v7516_v11 }
 0x34e   :  { %5467 = vmatprep.subr.bf16.mxu0 %v7521_v38 }
 0x351   :  { %5468 = vmatpush2.bf16.msra.mxu0 %v7519_v15 }
 0x352   :  { %5469 = vmatprep.subr.bf16.mxu0 %v7524_v36 }
 0x355   :  { %5470 = vmatpush2.bf16.msra.mxu0 %v7522_v23 }
 0x356   :  { %6605 = vmatprep.subr.bf16.mxu0 %v7621_v52  ;;  %v7641_v52 = vld [vmem:[#allocation7 + $0xe8] sm:$0xff]  }
 0x358   :  { %5472 = vmatmul.mubr.bf16.vlgmr.msra.gmra.mxu0 %v8069_v42  ;;  %v1294_v42 = vrot.slane %v8071_v21, %v7870_v0  ;;  %v4413_v47 = vpop.f32.mrf.mxu0  ;;  %v4334_v21 = vadd.f32 %v4333_v22, %v4291_v12  ;;  %v7573_v22 = vld [vmem:[#allocation6 + $0x2e8] ss:$16 sps:$4 sm:$0xff]   ;;  %v7590_v12 = vld [vmem:[#allocation6 + $0x24c] ss:$16 sps:$4 sm:$0xff]  }
 0x359   :  { %v4456_v51 = vpop.f32.mrf.mxu1 }
 0x35a   :  { %v4242_v48 = vadd.f32 %v4241_v34, %v1294_v42  ;;  %v4246_v35 = vadd.f32 %v4245_v43, %v1294_v42  ;;  %v4415_v25 = vpop.f32.mrf.mxu0  ;;  %v4377_v53 = vadd.f32 %v4376_v40, %v4334_v21  ;;  %v7622_v43 = vld [vmem:[#allocation7 + $0x38] sm:$0xff]  }
 0x35b   :  { %v4458_v55 = vpop.f32.mrf.mxu1  ;;  %v4416_v16 = vadd.f32 %v4415_v25, %v4373_v27  ;;  %6606 = vmatpush3.bf16.msra.mxu0 %v7622_v43  ;;  %v7578_v40 = vld [vmem:[#allocation6 + $0x2cc] ss:$16 sps:$4 sm:$0xff]   ;;  %v7591_v27 = vld [vmem:[#allocation6 + $0x228] ss:$16 sps:$4 sm:$0xff]  }
 0x35c   :  { %v4285_v19 = vadd.f32 %v4284_v44, %v4242_v48  ;;  %v4289_v5 = vadd.f32 %v4288_v61, %v4246_v35  ;;  %v4417_v56 = vpop.f32.mrf.mxu0  ;;  %v7623_v61 = vld [vmem:[#allocation7 + $0x70] sm:$0xff]   ;;  %v7626_v48 = vld [vmem:[#allocation7 + $0x28] sm:$0xff]  }
 0x35d   :  { %v4460_v50 = vpop.f32.mrf.mxu1  ;;  %v4459_v46 = vadd.f32 %v4458_v55, %v4416_v16  ;;  %6607 = vmatprep.subr.bf16.mxu0 %v7623_v61  ;;  %v7576_v35 = vld [vmem:[#allocation6 + $0x2c8] ss:$16 sps:$4 sm:$0xff]   ;;  %v7584_v25 = vld [vmem:[#allocation6 + $0x28c] ss:$16 sps:$4 sm:$0xff]   ;;  %v7643_v61 = vld [vmem:[#allocation7 + $0xe0] sm:$0xff]  }
 0x35e   :  { %v4328_v41 = vadd.f32 %v4327_v4, %v4285_v19  ;;  %v4332_v13 = vadd.f32 %v4331_v24, %v4289_v5  ;;  %v4419_v17 = vpop.f32.mrf.mxu0  ;;  %v7579_v19 = vld [vmem:[#allocation6 + $0x2a8] ss:$16 sps:$4 sm:$0xff]   ;;  %v7587_v55 = vld [vmem:[#allocation6 + $0x26c] ss:$16 sps:$4 sm:$0xff]  }
 0x35f   :  { %v4462_v1 = vpop.f32.mrf.mxu1  ;;  %v4420_v14 = vadd.f32 %v4419_v17, %v4377_v53  ;;  %6608 = vmatpush3.bf16.msra.mxu0 %v7624_v2  ;;  %v7630_v5 = vld [vmem:[#allocation7 + $0x18] sm:$0xff]   ;;  %v7642_v43 = vld [vmem:[#allocation7 + $0xa8] sm:$0xff]   ;;  %v7648_v2 = vld [vmem:[#allocation7 + $0x90] sm:$0xff]  }
 0x360   :  { %v4371_v30 = vadd.f32 %v4370_v7, %v4328_v41  ;;  %v4375_v62 = vadd.f32 %v4374_v39, %v4332_v13  ;;  %6609 = vmatprep.subr.bf16.mxu0 %v7625_v37  ;;  %v7585_v41 = vld [vmem:[#allocation6 + $0x268] ss:$16 sps:$4 sm:$0xff]   ;;  %v7596_v21 = vld [vmem:[#allocation6 + $0x20c] ss:$16 sps:$4 sm:$0xff]   ;;  %v7651_v37 = vld [vmem:[#allocation7 + $0xc0] sm:$0xff]  }
 0x361   :  { %v4463_v38 = vadd.f32 %v4462_v1, %v4420_v14  ;;  %v7588_v13 = vld [vmem:[#allocation6 + $0x248] ss:$16 sps:$4 sm:$0xff]   ;;  %v7602_v16 = vld [vmem:[#allocation6 + $0x3cc] ss:$16 sps:$4 sm:$0xff]  }
 0x362   :  { %v4414_v63 = vadd.f32 %v4413_v47, %v4371_v30  ;;  %v4418_v28 = vadd.f32 %v4417_v56, %v4375_v62  ;;  %v7627_v47 = vld [vmem:[#allocation7 + $0x60] sm:$0xff]   ;;  %v7593_v56 = vld [vmem:[#allocation6 + $0x22c] ss:$16 sps:$4 sm:$0xff]   ;;  %v7597_v62 = vld [vmem:[#allocation6 + $0x3e8] ss:$16 sps:$4 sm:$0xff]  }
 0x363   :  { %6610 = vmatpush3.bf16.msra.mxu0 %v7626_v48  ;;  %v7599_v30 = vld [vmem:[#allocation6 + $0x3ec] ss:$16 sps:$4 sm:$0xff]   ;;  %v7603_v53 = vld [vmem:[#allocation6 + $0x3a8] ss:$16 sps:$4 sm:$0xff]  }
 0x364   :  { %v4457_v18 = vadd.f32 %v4456_v51, %v4414_v63  ;;  %v4461_v3 = vadd.f32 %v4460_v50, %v4418_v28  ;;  %v7581_v51 = vld [vmem:[#allocation6 + $0x2ac] ss:$16 sps:$4 sm:$0xff]   ;;  %6611 = vmatprep.subr.bf16.mxu0 %v7627_v47  ;;  %v7594_v50 = vld [vmem:[#allocation6 + $0x208] ss:$16 sps:$4 sm:$0xff]  }
 0x365   :  { %v7600_v63 = vld [vmem:[#allocation6 + $0x3c8] ss:$16 sps:$4 sm:$0xff]   ;;  %v7605_v17 = vld [vmem:[#allocation6 + $0x3ac] ss:$16 sps:$4 sm:$0xff]  }
 0x366   :  { %v7608_v28 = vld [vmem:[#allocation6 + $0x38c] ss:$16 sps:$4 sm:$0xff]   ;;  %v7606_v1 = vld [vmem:[#allocation6 + $0x388] ss:$16 sps:$4 sm:$0xff]  }
 0x367   :  { %6612 = vmatpush3.bf16.msra.mxu0 %v7628_v54  ;;  %v7614_v14 = vld [vmem:[#allocation6 + $0x34c] ss:$16 sps:$4 sm:$0xff]  }
 0x368   :  { %6613 = vmatprep.subr.bf16.mxu0 %v7629_v20 }
 0x36b   :  { %6614 = vmatpush3.bf16.msra.mxu0 %v7630_v5 }
 0x398   :  { %v4499_v32 = vpop.f32.mrf.mxu0 }
 0x399   :  { %v4542_v57 = vpop.f32.mrf.mxu1  ;;  %v4500_v49 = vadd.f32 %v4499_v32, %v4457_v18  ;;  %v7611_v32 = vld [vmem:[#allocation6 + $0x36c] ss:$16 sps:$4 sm:$0xff]  }
 0x39a   :  { %v4501_v59 = vpop.f32.mrf.mxu0  ;;  %v7617_v18 = vld [vmem:[#allocation6 + $0x32c] ss:$16 sps:$4 sm:$0xff]  }
 0x39b   :  { %v4502_v60 = vadd.f32 %v4501_v59, %v4459_v46  ;;  %v4544_v58 = vpop.f32.mrf.mxu1  ;;  %v4543_v31 = vadd.f32 %v4542_v57, %v4500_v49  ;;  %v7609_v46 = vld [vmem:[#allocation6 + $0x368] ss:$16 sps:$4 sm:$0xff]   ;;  %v7632_v49 = vld [vmem:[#allocation7 + $0x10] sm:$0xff]  }
 0x39c   :  { %v4503_v11 = vpop.f32.mrf.mxu0  ;;  %v7612_v57 = vld [vmem:[#allocation6 + $0x348] ss:$16 sps:$4 sm:$0xff]  }
 0x39d   :  { %v4504_v15 = vadd.f32 %v4503_v11, %v4461_v3  ;;  %v4546_v36 = vpop.f32.mrf.mxu1  ;;  %v4545_v34 = vadd.f32 %v4544_v58, %v4502_v60  ;;  %v4553_v39 = vmax.f32 %v4543_v31, 0.0  ;;  %v7615_v59 = vld [vmem:[#allocation6 + $0x328] ss:$16 sps:$4 sm:$0xff]   ;;  %v7620_v3 = vld [vmem:[#allocation6 + $0x30c] ss:$16 sps:$4 sm:$0xff]   ;;  %v7631_v58 = vld [vmem:[#allocation7 + $0x50] sm:$0xff]  }
 0x39e   :  { %v4505_v23 = vpop.f32.mrf.mxu0  ;;  %v7618_v60 = vld [vmem:[#allocation6 + $0x308] ss:$16 sps:$4 sm:$0xff]   ;;  %6615 = vmatprep.subr.bf16.mxu0 %v7631_v58  ;;  %v7644_v31 = vld [vmem:[#allocation7 + $0xa0] sm:$0xff]  }
 0x39f   :  { %v4547_v44 = vadd.f32 %v4546_v36, %v4504_v15  ;;  %v4506_v29 = vadd.f32 %v4505_v23, %v4463_v38  ;;  %v4548_v33 = vpop.f32.mrf.mxu1  ;;  %v4554_v45 = vmax.f32 %v4545_v34, 0.0  ;;  %6616 = vmatpush3.bf16.msra.mxu0 %v7632_v49  ;;  %v7633_v11 = vld [vmem:[#allocation7 + $0x48] sm:$0xff]   ;;  %v7635_v15 = vld [vmem:[#allocation7 + $0x40] sm:$0xff]   ;;  %v7637_v23 = vld [vmem:[#allocation7 + $0xf8] sm:$0xff]  }
 0x3a0   :  { %v7634_v38 = vld [vmem:[#allocation7 + $0x8] sm:$0xff]   ;;  %6617 = vmatprep.subr.bf16.mxu0 %v7633_v11  ;;  %v7636_v36 = vld [vmem:[#allocation7] sm:$0xff]   ;;  %v7638_v34 = vld [vmem:[#allocation7 + $0xb8] sm:$0xff]  }
 0x3a1   :  { %v4549_v4 = vadd.f32 %v4548_v33, %v4506_v29  ;;  %v4557_v7 = vmax.f32 %v4547_v44, 0.0  ;;  %v7639_v44 = vld [vmem:[#allocation7 + $0xf0] sm:$0xff]   ;;  %v7645_v33 = vld [vmem:[#allocation7 + $0xd8] sm:$0xff]  }
 0x3a2   :  { %v7640_v29 = vld [vmem:[#allocation7 + $0xb0] sm:$0xff]  }
 0x3a3   :  { %v4558_v24 = vmax.f32 %v4549_v4, 0.0  ;;  %v8101_v6 = vpack.c.bf16 %v4557_v7, %v4553_v39  ;;  %6618 = vmatpush3.bf16.msra.mxu0 %v7634_v38  ;;  %v7646_v4 = vld [vmem:[#allocation7 + $0x98] sm:$0xff]   ;;  %v7647_v7 = vld [vmem:[#allocation7 + $0xd0] sm:$0xff]   ;;  %v7652_v39 = vld [vmem:[#allocation7 + $0x80] sm:$0xff]  }
 0x3a4   :  { %6619 = vmatprep.subr.bf16.mxu0 %v7635_v15 }
 0x3a5   :  { %v4562_v42 = vpack.c.bf16 %v4558_v24, %v4554_v45  ;;  %v7649_v45 = vld [vmem:[#allocation7 + $0xc8] sm:$0xff]  }
 0x3a6   :  { %v7650_v24 = vld [vmem:[#allocation7 + $0x88] sm:$0xff]  }
 0x3a7   :  { %5428 = vmatprep.mubr.bf16.mxu1 %v4562_v42  ;;  %6620 = vmatpush3.bf16.msra.mxu0 %v7636_v36 }
 0x3a8   :  { %5429 = vmatmul.mubr.bf16.vlgmr.msra.gmra.mxu1 %v8101_v6 }
 0x3a9   :  { %5483 = vmatpush1.bf16.msra.mxu1 %v7573_v22  ;;  %5514 = vmatprep.mubr.bf16.mxu1 %v4562_v42 }
 0x3aa   :  { %5484 = vmatprep.subr.bf16.mxu1 %v7578_v40 }
 0x3ad   :  { %5485 = vmatpush1.bf16.msra.mxu1 %v7576_v35 }
 0x3ae   :  { %5486 = vmatprep.subr.bf16.mxu1 %v7581_v51 }
 0x3b1   :  { %5487 = vmatpush1.bf16.msra.mxu1 %v7579_v19 }
 0x3b2   :  { %5488 = vmatprep.subr.bf16.mxu1 %v7584_v25 }
 0x3b5   :  { %5489 = vmatpush1.bf16.msra.mxu1 %v7582_v26 }
 0x3b6   :  { %5490 = vmatprep.subr.bf16.mxu1 %v7587_v55 }
 0x3b9   :  { %5491 = vmatpush1.bf16.msra.mxu1 %v7585_v41 }
 0x3ba   :  { %5492 = vmatprep.subr.bf16.mxu1 %v7590_v12 }
 0x3bd   :  { %5493 = vmatpush1.bf16.msra.mxu1 %v7588_v13 }
 0x3be   :  { %5494 = vmatprep.subr.bf16.mxu1 %v7593_v56 }
 0x3c1   :  { %5495 = vmatpush1.bf16.msra.mxu1 %v7591_v27 }
 0x3c2   :  { %5496 = vmatprep.subr.bf16.mxu1 %v7596_v21 }
 0x3c5   :  { %5497 = vmatpush1.bf16.msra.mxu1 %v7594_v50 }
 0x3c6   :  { %5498 = vmatprep.subr.bf16.mxu1 %v7599_v30 }
 0x3c9   :  { %5499 = vmatpush2.bf16.msra.mxu1 %v7597_v62 }
 0x3ca   :  { %5500 = vmatprep.subr.bf16.mxu1 %v7602_v16 }
 0x3cd   :  { %5501 = vmatpush2.bf16.msra.mxu1 %v7600_v63 }
 0x3ce   :  { %5502 = vmatprep.subr.bf16.mxu1 %v7605_v17 }
 0x3d1   :  { %5503 = vmatpush2.bf16.msra.mxu1 %v7603_v53 }
 0x3d2   :  { %5504 = vmatprep.subr.bf16.mxu1 %v7608_v28 }
 0x3d5   :  { %5505 = vmatpush2.bf16.msra.mxu1 %v7606_v1 }
 0x3d6   :  { %5506 = vmatprep.subr.bf16.mxu1 %v7611_v32 }
 0x3d8   :  { %v5387_v42 = vpop.f32.mrf.mxu0 }
 0x3d9   :  { %5507 = vmatpush2.bf16.msra.mxu1 %v7609_v46 }
 0x3da   :  { %5508 = vmatprep.subr.bf16.mxu1 %v7614_v14  ;;  %v5389_v22 = vpop.f32.mrf.mxu0 }
 0x3dc   :  { %v5391_v40 = vpop.f32.mrf.mxu0 }
 0x3dd   :  { %5509 = vmatpush2.bf16.msra.mxu1 %v7612_v57 }
 0x3de   :  { %5510 = vmatprep.subr.bf16.mxu1 %v7617_v18  ;;  %v5393_v51 = vpop.f32.mrf.mxu0 }
 0x3e1   :  { %5511 = vmatpush2.bf16.msra.mxu1 %v7615_v59 }
 0x3e2   :  { %5512 = vmatprep.subr.bf16.mxu1 %v7620_v3 }
 0x3e5   :  { %5513 = vmatpush2.bf16.msra.mxu1 %v7618_v60 }
 0x3e6   :  { %6627 = vmatprep.subr.bf16.mxu1 %v7637_v23 }
 0x3e8   :  { %5515 = vmatmul.mubr.bf16.vlgmr.msra.gmra.mxu1 %v8101_v6  ;;  %v4691_v6 = vld [vmem:[#allocation9 + $0x14] sm:$0xf] }
 0x3e9   :  { %6628 = vmatpush3.bf16.msra.mxu1 %v7638_v34  ;;  %v4700_v48 = vrot.slane %v4691_v6, %v7861_v8  ;;  %v4696_v47 = vrot.slane %v4691_v6, %v7864_v9  ;;  %v4708_v17 = vrot.slane %v4691_v6, %v7867_v10  ;;  %v4704_v53 = vrot.slane %v4691_v6, %v7870_v0 }
 0x3ea   :  { %6629 = vmatprep.subr.bf16.mxu1 %v7639_v44 }
 0x3eb   :  { %v5390_v20 = vadd.f32 %v5389_v22, %v4700_v48  ;;  %v5392_v19 = vadd.f32 %v5391_v40, %v4696_v47  ;;  %v5388_v25 = vadd.f32 %v5387_v42, %v4696_v47  ;;  %v5394_v26 = vadd.f32 %v5393_v51, %v4700_v48 }
 0x3ed   :  { %6630 = vmatpush3.bf16.msra.mxu1 %v7640_v29 }
 0x3ee   :  { %6631 = vmatprep.subr.bf16.mxu1 %v7641_v52 }
 0x3f1   :  { %6632 = vmatpush3.bf16.msra.mxu1 %v7642_v43  ;;  %v6572_v43 = vld [vmem:[#allocation9 + $0x18] ss:$0 sm:$0xff] }
 0x3f2   :  { %6633 = vmatprep.subr.bf16.mxu1 %v7643_v61 }
 0x3f5   :  { %6634 = vmatpush3.bf16.msra.mxu1 %v7644_v31 }
 0x3f6   :  { %6635 = vmatprep.subr.bf16.mxu1 %v7645_v33 }
 0x3f9   :  { %6636 = vmatpush3.bf16.msra.mxu1 %v7646_v4 }
 0x3fa   :  { %6637 = vmatprep.subr.bf16.mxu1 %v7647_v7 }
 0x3fd   :  { %6638 = vmatpush3.bf16.msra.mxu1 %v7648_v2 }
 0x3fe   :  { %6639 = vmatprep.subr.bf16.mxu1 %v7649_v45 }
 0x401   :  { %6640 = vmatpush3.bf16.msra.mxu1 %v7650_v24 }
 0x402   :  { %6641 = vmatprep.subr.bf16.mxu1 %v7651_v37 }
 0x405   :  { %6642 = vmatpush3.bf16.msra.mxu1 %v7652_v39 }
 0x418   :  { %v5473_v9 = vpop.f32.mrf.mxu0 }
 0x419   :  { %v5474_v57 = vadd.f32 %v5473_v9, %v4704_v53 }
 0x41a   :  { %v5475_v16 = vpop.f32.mrf.mxu0 }
 0x41b   :  { %v5476_v46 = vadd.f32 %v5475_v16, %v4708_v17 }
 0x41c   :  { %v5477_v63 = vpop.f32.mrf.mxu0 }
 0x41d   :  { %v5478_v14 = vadd.f32 %v5477_v63, %v4704_v53 }
 0x41e   :  { %v5479_v1 = vpop.f32.mrf.mxu0 }
 0x41f   :  { %v5480_v59 = vadd.f32 %v5479_v1, %v4708_v17 }
 0x468   :  { %v5430_v35 = vpop.f32.mrf.mxu1 }
 0x469   :  { %v5431_v12 = vadd.f32 %v5430_v35, %v5388_v25 }
 0x46a   :  { %v5432_v54 = vpop.f32.mrf.mxu1 }
 0x46b   :  { %v5433_v55 = vadd.f32 %v5432_v54, %v5390_v20  ;;  %v5525_v30 = vmax.f32 %v5431_v12, 0.0 }
 0x46c   :  { %v5434_v5 = vpop.f32.mrf.mxu1 }
 0x46d   :  { %v5435_v41 = vadd.f32 %v5434_v5, %v5392_v19  ;;  %v5526_v21 = vmax.f32 %v5433_v55, 0.0 }
 0x46e   :  { %v5436_v13 = vpop.f32.mrf.mxu1 }
 0x46f   :  { %v5437_v56 = vadd.f32 %v5436_v13, %v5394_v26  ;;  %v5529_v27 = vmax.f32 %v5435_v41, 0.0 }
 0x471   :  { %v5530_v50 = vmax.f32 %v5437_v56, 0.0  ;;  %v5533_v62 = vpack.c.bf16 %v5529_v27, %v5525_v30 }
 0x473   :  { %v5534_v8 = vpack.c.bf16 %v5530_v50, %v5526_v21 }
 0x475   :  { %5832 = vmatprep.mubr.bf16.mxu0 %v5534_v8 }
 0x476   :  { %5833 = vmatmul.mubr.bf16.vlgmr.msra.gmra.mxu0 %v5533_v62 }
 0x4a8   :  { %v5516_v28 = vpop.f32.mrf.mxu1 }
 0x4a9   :  { %v5517_v58 = vadd.f32 %v5516_v28, %v5474_v57 }
 0x4aa   :  { %v5518_v32 = vpop.f32.mrf.mxu1 }
 0x4ab   :  { %v5519_v3 = vadd.f32 %v5518_v32, %v5476_v46  ;;  %v5527_v23 = vmax.f32 %v5517_v58, 0.0 }
 0x4ac   :  { %v5520_v18 = vpop.f32.mrf.mxu1 }
 0x4ad   :  { %v5521_v60 = vadd.f32 %v5520_v18, %v5478_v14  ;;  %v5528_v15 = vmax.f32 %v5519_v3, 0.0 }
 0x4ae   :  { %v5522_v49 = vpop.f32.mrf.mxu1 }
 0x4af   :  { %v5523_v11 = vadd.f32 %v5522_v49, %v5480_v59  ;;  %v5531_v38 = vmax.f32 %v5521_v60, 0.0 }
 0x4b1   :  { %v5532_v36 = vmax.f32 %v5523_v11, 0.0  ;;  %v5535_v34 = vpack.c.bf16 %v5531_v38, %v5527_v23 }
 0x4b3   :  { %v5536_v10 = vpack.c.bf16 %v5532_v36, %v5528_v15 }
 0x4b5   :  { %5873 = vmatprep.mubr.bf16.mxu1 %v5536_v10 }
 0x4b6   :  { %5874 = vmatmul.mubr.bf16.vlgmr.msra.gmra.mxu1 %v5535_v34 }
 0x536   :  { %v6621_v0 = vpop.f32.mrf.mxu0 }
 0x538   :  { %v6622_v44 = vpop.f32.mrf.mxu0 }
 0x539   :  { %v6623_v52 = vadd.f32 %v6622_v44, %v6621_v0 }
 0x53a   :  { %v6624_v29 = vpop.f32.mrf.mxu0 }
 0x53b   :  { %v5835_v4 = vadd.f32 %v6623_v52, %v6572_v43 }
 0x53c   :  { %v6625_v61 = vpop.f32.mrf.mxu0 }
 0x53d   :  { %v6626_v7 = vadd.f32 %v6625_v61, %v6624_v29 }
 0x53f   :  { %v5838_v39 = vadd.f32 %v6626_v7, %v6572_v43 }
 0x576   :  { %v6643_v31 = vpop.f32.mrf.mxu1 }
 0x578   :  { %v6644_v33 = vpop.f32.mrf.mxu1 }
 0x579   :  { %v6645_v2 = vadd.f32 %v6644_v33, %v6643_v31 }
 0x57a   :  { %v6646_v45 = vpop.f32.mrf.mxu1 }
 0x57b   :  { %v5876_v24 = vadd.f32 %v6645_v2, %v5835_v4 }
 0x57c   :  { %v6647_v37 = vpop.f32.mrf.mxu1 }
 0x57d   :  { %5882 = vst [vmem:[%s8121_s6] sm:$0xff] %v5876_v24  ;;  %v6648_v42 = vadd.f32 %v6647_v37, %v6646_v45 }
 0x57f   :  { %v5879_v22 = vadd.f32 %v6648_v42, %v5838_v39 }
 0x581   :  { %5883 = vst [vmem:[%s8121_s6 + $0x8] sm:$0xff] %v5879_v22 }
 0x582   :  { %5888 = vsyncpa [#allocation3], 1 }
 0x583   :  { %5889 = vsyncpa [#allocation5], 1 }
 0x584   :  { %5890 = vsyncpa [#allocation8], 1 }

</bundles_post_ra>
